<compile_context>
chip_gen: v7x
topology: tpu7x:2x2x1
jax: 0.10.0
libtpu: 0.0.40
codegen_flags: <defaults>
</compile_context>

<pallas_src>
import jax
import jax.numpy as jnp
from jax.experimental import pallas as pl
from jax.experimental.pallas import tpu as pltpu


C_PAD = 128     # conv output channels padded to a full lane width
N_PAD = 128     # classifier logits padded to a full lane width
K_PAD = 128     # im2col contraction (3*3*3=27) padded to a full lane width
NEG_INF = -1e9  # bias value for padded logit columns (kills them in softmax)


# ---------------------------------------------------------------------------
# Fused kernel: conv(im2col matmul)+ReLU -> flatten relayout -> deep-K
# classifier matmul -> (optional) cross entropy.  Single grid step.
# ---------------------------------------------------------------------------
def _make_fused_kernel(compute_loss, n_pos, b_pad, b_real, c_pad):
    def kernel(patches_ref, conv_w_ref, conv_b_ref, cls_w_ref, cls_b_ref,
               *rest):
        if compute_loss:
            oh_ref, logits_ref, loss_ref, flat_ref = rest
        else:
            logits_ref, flat_ref = rest

        # Conv stem: one (P*B_pad, K_PAD) @ (K_PAD, C_PAD) matmul,
        # bf16 in / f32 accumulate, f32 bias + ReLU on the VPU.
        feat = jnp.dot(patches_ref[...], conv_w_ref[...],
                       preferred_element_type=jnp.float32)
        feat = jnp.maximum(feat + conv_b_ref[...], 0.0)

        # Relayout (position-major, batch-minor) rows into a lane-dense
        # (B_pad, P*C_PAD) scratch: 64 tile-aligned (b_pad, 128) copies.
        # cls_w rows are (position, channel) ordered, so this also realises
        # the NCHW flatten permutation with zero arithmetic.
        for p in range(n_pos):
            flat_ref[:, p * c_pad:(p + 1) * c_pad] = \
                feat[p * b_pad:(p + 1) * b_pad, :]

        # Classifier: single deep-K matmul (B_pad, P*C_PAD) @ (P*C_PAD, N_PAD).
        flat = flat_ref[...].astype(cls_w_ref.dtype)          # bf16 at the MXU
        logits = jnp.dot(flat, cls_w_ref[...],
                         preferred_element_type=jnp.float32)
        logits = logits + cls_b_ref[...]
        logits_ref[...] = logits

        if compute_loss:
            # Softmax cross entropy, mean over the *real* batch rows.
            # Padded logit columns carry a -1e9 bias -> vanish from the LSE;
            # padded batch rows have an all-zero one_hot row -> masked out.
            oh = oh_ref[...]
            m = jnp.max(logits, axis=-1, keepdims=True)
            lse = m + jnp.log(
                jnp.sum(jnp.exp(logits - m), axis=-1, keepdims=True))
            picked = jnp.sum(oh * logits, axis=-1, keepdims=True)
            row_valid = jnp.sum(oh, axis=-1, keepdims=True)   # 1 real, 0 pad
            loss_ref[0, 0] = jnp.sum(row_valid * (lse - picked)) * (1.0 / b_real)

    return kernel


def _fused_forward_call(patches, conv_w, conv_b, cls_w, cls_b, one_hot,
                        *, n_pos, b_pad, b_real, compute_loss):
    k_pad = patches.shape[1]

    in_specs = [
        pl.BlockSpec((n_pos * b_pad, k_pad), lambda i: (0, 0)),   # patches
        pl.BlockSpec((k_pad, C_PAD), lambda i: (0, 0)),           # conv_w
        pl.BlockSpec((1, C_PAD), lambda i: (0, 0)),               # conv_b
        pl.BlockSpec((n_pos * C_PAD, N_PAD), lambda i: (0, 0)),   # cls_w (resident)
        pl.BlockSpec((1, N_PAD), lambda i: (0, 0)),               # cls_b
    ]
    logits_spec = pl.BlockSpec((b_pad, N_PAD), lambda i: (0, 0))
    scratch = [pltpu.VMEM((b_pad, n_pos * C_PAD), jnp.float32)]   # flat feat

    if compute_loss:
        in_specs.append(pl.BlockSpec((b_pad, N_PAD), lambda i: (0, 0)))  # one_hot
        out_shape = (jax.ShapeDtypeStruct((b_pad, N_PAD), jnp.float32),
                     jax.ShapeDtypeStruct((1, 1), jnp.float32))
        out_specs = (logits_spec,
                     pl.BlockSpec(memory_space=pltpu.MemorySpace.SMEM))
        args = (patches, conv_w, conv_b, cls_w, cls_b, one_hot)
    else:
        out_shape = jax.ShapeDtypeStruct((b_pad, N_PAD), jnp.float32)
        out_specs = logits_spec
        args = (patches, conv_w, conv_b, cls_w, cls_b)

    kernel = _make_fused_kernel(compute_loss, n_pos, b_pad, b_real, C_PAD)
    return pl.pallas_call(
        kernel,
        out_shape=out_shape,
        grid_spec=pltpu.PrefetchScalarGridSpec(
            num_scalar_prefetch=0,
            grid=(1,),                       # collapsed reduction grid
            in_specs=in_specs,
            out_specs=out_specs,
            scratch_shapes=scratch,
        ),
        compiler_params=pltpu.CompilerParams(
            dimension_semantics=("arbitrary",)),
    )(*args)


# ---------------------------------------------------------------------------
# Wrapper (plain JAX, jitted): im2col, layout plumbing, parameter construction
# ---------------------------------------------------------------------------
class MultiModalModelPallas:
    """Pallas port of MultiModalModel.forward (small synthetic shapes)."""

    def __init__(self, key, in_ch=3, feat_ch=32, img_hw=16, num_labels=2):
        self.kh = self.kw = 3
        self.stride = 2
        self.pad = 1
        self.in_ch = in_ch
        self.feat_ch = feat_ch
        self.num_labels = num_labels
        self.out_hw = img_hw // self.stride
        self.n_pos = self.out_hw * self.out_hw           # P = H' * W'
        k_raw = self.kh * self.kw * in_ch                # 27
        self.k_raw = k_raw
        flat_dim = feat_ch * self.n_pos                  # analogue of 100352

        k1, k2, k3, k4 = jax.random.split(key, 4)

        # Conv stem weight (kh, kw, Cin, Cout) -> (K_PAD, C_PAD), bf16.
        wc = jax.random.normal(k1, (self.kh, self.kw, in_ch, feat_ch),
                               jnp.float32) * 0.1
        wc = wc.reshape(k_raw, feat_ch)
        wc = jnp.pad(wc, ((0, K_PAD - k_raw), (0, C_PAD - feat_ch)))
        self.conv_w = wc.astype(jnp.bfloat16)
        bc = jax.random.normal(k2, (1, feat_ch), jnp.float32) * 0.1
        self.conv_b = jnp.pad(bc, ((0, 0), (0, C_PAD - feat_ch)))   # f32

        # Classifier: PyTorch Linear weight is (num_labels, flat_dim) with the
        # flat dim in NCHW-flatten order (c * P + p).  Fold that permutation
        # into a (P*C_PAD, N_PAD) kernel weight with (p, c) row order.
        cls_w = jax.random.normal(k3, (num_labels, flat_dim), jnp.float32) * 0.01
        w3 = cls_w.reshape(num_labels, feat_ch, self.n_pos)   # [n, c, p]
        w3 = jnp.transpose(w3, (2, 1, 0))                      # [p, c, n]
        w3 = jnp.pad(w3, ((0, 0), (0, C_PAD - feat_ch),
                          (0, N_PAD - num_labels)))
        self.cls_w = w3.reshape(self.n_pos * C_PAD, N_PAD).astype(jnp.bfloat16)

        cls_b = jax.random.normal(k4, (num_labels,), jnp.float32) * 0.01
        bfull = jnp.full((1, N_PAD), NEG_INF, jnp.float32)
        self.cls_b = bfull.at[0, :num_labels].set(cls_b)        # f32

        self._fwd_train = jax.jit(self._forward_train)
        self._fwd_infer = jax.jit(self._forward_infer)

    @staticmethod
    def _round_up8(n):
        return max(8, ((n + 7) // 8) * 8)

    def _im2col(self, x_nchw, b_pad):
        # NCHW -> NHWC, pad, extract 3x3/stride-2 patches; rows ordered
        # (position-major, batch-minor) so each position's b_pad rows form one
        # tile-aligned block for the in-kernel flatten relayout.
        x = jnp.transpose(x_nchw, (0, 2, 3, 1)).astype(jnp.float32)
        x = jnp.pad(x, ((0, 0), (self.pad, self.pad),
                        (self.pad, self.pad), (0, 0)))
        B = x.shape[0]
        oh = ow = self.out_hw
        s = self.stride
        cols = []
        for i in range(self.kh):
            for j in range(self.kw):
                cols.append(x[:, i:i + s * oh:s, j:j + s * ow:s, :])
        patches = jnp.concatenate(cols, axis=-1)         # (B, oh, ow, K_raw)
        patches = patches.reshape(B, self.n_pos, self.k_raw)
        patches = jnp.pad(patches, ((0, b_pad - B), (0, 0), (0, 0)))
        patches = jnp.transpose(patches, (1, 0, 2))      # (P, B_pad, K_raw)
        patches = patches.reshape(self.n_pos * b_pad, self.k_raw)
        patches = jnp.pad(patches, ((0, 0), (0, K_PAD - self.k_raw)))
        return patches.astype(jnp.bfloat16)

    def _forward_train(self, pixel_values_nchw, labels):
        B = pixel_values_nchw.shape[0]
        b_pad = self._round_up8(B)
        patches = self._im2col(pixel_values_nchw, b_pad)
        one_hot = jax.nn.one_hot(labels, N_PAD, dtype=jnp.float32)
        one_hot = jnp.pad(one_hot, ((0, b_pad - B), (0, 0)))   # zero rows = masked
        logits_p, loss = _fused_forward_call(
            patches, self.conv_w, self.conv_b, self.cls_w, self.cls_b, one_hot,
            n_pos=self.n_pos, b_pad=b_pad, b_real=B, compute_loss=True)
        return loss[0, 0], logits_p[:B, :self.num_labels]

    def _forward_infer(self, pixel_values_nchw):
        B = pixel_values_nchw.shape[0]
        b_pad = self._round_up8(B)
        patches = self._im2col(pixel_values_nchw, b_pad)
        logits_p = _fused_forward_call(
            patches, self.conv_w, self.conv_b, self.cls_w, self.cls_b, None,
            n_pos=self.n_pos, b_pad=b_pad, b_real=B, compute_loss=False)
        return logits_p[:B, :self.num_labels]

    def forward(self, pixel_values, labels=None):
        if labels is not None:
            return self._fwd_train(pixel_values, labels)
        return self._fwd_infer(pixel_values)


if __name__ == "__main__":
    key = jax.random.PRNGKey(0)
    k_param, k_pix = jax.random.split(key)

    model = MultiModalModelPallas(k_param, in_ch=3, feat_ch=32, img_hw=16,
                                  num_labels=2)

    # pixel_values in PyTorch NCHW layout, small shape (B=2, C=3, H=W=16)
    pixel_values = jax.random.normal(k_pix, (2, 3, 16, 16), jnp.float32)
    labels = jnp.array([0, 1], dtype=jnp.int32)

    loss, logits = model.forward(pixel_values, labels)
    jax.block_until_ready((loss, logits))

    assert logits.shape == (2, 2)
    assert loss.shape == ()

    logits_only = model.forward(pixel_values)
    jax.block_until_ready(logits_only)
    assert logits_only.shape == (2, 2)

    print("KERNEL_OK")
</pallas_src>

<mosaic_0001>
module attributes {stable_mosaic.version = 11 : i64} {
  func.func @kernel(%arg0: i32, %arg1: memref<512x128xbf16, #tpu.memory_space<vmem>>, %arg2: memref<128x128xbf16, #tpu.memory_space<vmem>>, %arg3: memref<1x128xf32, #tpu.memory_space<vmem>>, %arg4: memref<8192x128xbf16, #tpu.memory_space<vmem>>, %arg5: memref<1x128xf32, #tpu.memory_space<vmem>>, %arg6: memref<8x128xf32, #tpu.memory_space<vmem>>, %arg7: memref<8x128xf32, #tpu.memory_space<vmem>>, %arg8: memref<1x1xf32, #tpu.memory_space<smem>>, %arg9: memref<8x8192xf32, #tpu.memory_space<vmem>>) attributes {dimension_semantics = [#tpu.dimension_semantics<arbitrary>], iteration_bounds = array<i64: 1>, scalar_prefetch = 0 : i64, scratch_operands = 1 : i64, tpu.core_type = #tpu.core_type<tc>, window_params = [{pipeline_mode = #tpu.pipeline_mode<synchronous>, transform_indices = @transform_0, window_bounds = array<i64: 512, 128>}, {pipeline_mode = #tpu.pipeline_mode<synchronous>, transform_indices = @transform_1, window_bounds = array<i64: 128, 128>}, {pipeline_mode = #tpu.pipeline_mode<synchronous>, transform_indices = @transform_2, window_bounds = array<i64: 1, 128>}, {pipeline_mode = #tpu.pipeline_mode<synchronous>, transform_indices = @transform_3, window_bounds = array<i64: 8192, 128>}, {pipeline_mode = #tpu.pipeline_mode<synchronous>, transform_indices = @transform_4, window_bounds = array<i64: 1, 128>}, {pipeline_mode = #tpu.pipeline_mode<synchronous>, transform_indices = @transform_5, window_bounds = array<i64: 8, 128>}, {pipeline_mode = #tpu.pipeline_mode<synchronous>, transform_indices = @transform_6, window_bounds = array<i64: 8, 128>}, {transform_indices = @transform_7, window_bounds = array<i64: 1, 1>}]} {
    %c0 = arith.constant 0 : index
    %c0_0 = arith.constant 0 : index
    %0 = vector.load %arg1[%c0, %c0_0] : memref<512x128xbf16, #tpu.memory_space<vmem>>, vector<512x128xbf16>
    %c0_1 = arith.constant 0 : index
    %c0_2 = arith.constant 0 : index
    %1 = vector.load %arg2[%c0_1, %c0_2] : memref<128x128xbf16, #tpu.memory_space<vmem>>, vector<128x128xbf16>
    %cst = arith.constant dense<0.000000e+00> : vector<512x128xf32>
    %2 = tpu.matmul %0, %1, %cst {dimension_numbers = #tpu.dot_dimension_numbers<[1], [0], [0], [1], [0, 0, 1, 1], [], []>} : vector<512x128xbf16>, vector<128x128xbf16>, vector<512x128xf32> -> vector<512x128xf32>
    %c0_3 = arith.constant 0 : index
    %c0_4 = arith.constant 0 : index
    %3 = vector.load %arg3[%c0_3, %c0_4] : memref<1x128xf32, #tpu.memory_space<vmem>>, vector<1x128xf32>
    %4 = vector.broadcast %3 : vector<1x128xf32> to vector<512x128xf32>
    %5 = arith.addf %2, %4 : vector<512x128xf32>
    %cst_5 = arith.constant 0.000000e+00 : f32
    %6 = vector.broadcast %cst_5 : f32 to vector<512x128xf32>
    %7 = arith.maximumf %5, %6 : vector<512x128xf32>
    %8 = vector.extract_strided_slice %7 {offsets = [0, 0], sizes = [8, 128], strides = [1, 1]} : vector<512x128xf32> to vector<8x128xf32>
    %c0_6 = arith.constant 0 : index
    %c0_7 = arith.constant 0 : index
    %9 = vector.load %arg9[%c0_6, %c0_7] : memref<8x8192xf32, #tpu.memory_space<vmem>>, vector<8x128xf32>
    tpu.vector_store %arg9[%c0_6, %c0_7], %8 {strides = array<i32>} : memref<8x8192xf32, #tpu.memory_space<vmem>>, vector<8x128xf32>,
    %10 = vector.extract_strided_slice %7 {offsets = [8, 0], sizes = [8, 128], strides = [1, 1]} : vector<512x128xf32> to vector<8x128xf32>
    %c0_8 = arith.constant 0 : index
    %c128 = arith.constant 128 : index
    %11 = vector.load %arg9[%c0_8, %c128] : memref<8x8192xf32, #tpu.memory_space<vmem>>, vector<8x128xf32>
    tpu.vector_store %arg9[%c0_8, %c128], %10 {strides = array<i32>} : memref<8x8192xf32, #tpu.memory_space<vmem>>, vector<8x128xf32>,
    %12 = vector.extract_strided_slice %7 {offsets = [16, 0], sizes = [8, 128], strides = [1, 1]} : vector<512x128xf32> to vector<8x128xf32>
    %c0_9 = arith.constant 0 : index
    %c256 = arith.constant 256 : index
    %13 = vector.load %arg9[%c0_9, %c256] : memref<8x8192xf32, #tpu.memory_space<vmem>>, vector<8x128xf32>
    tpu.vector_store %arg9[%c0_9, %c256], %12 {strides = array<i32>} : memref<8x8192xf32, #tpu.memory_space<vmem>>, vector<8x128xf32>,
    %14 = vector.extract_strided_slice %7 {offsets = [24, 0], sizes = [8, 128], strides = [1, 1]} : vector<512x128xf32> to vector<8x128xf32>
    %c0_10 = arith.constant 0 : index
    %c384 = arith.constant 384 : index
    %15 = vector.load %arg9[%c0_10, %c384] : memref<8x8192xf32, #tpu.memory_space<vmem>>, vector<8x128xf32>
    tpu.vector_store %arg9[%c0_10, %c384], %14 {strides = array<i32>} : memref<8x8192xf32, #tpu.memory_space<vmem>>, vector<8x128xf32>,
    %16 = vector.extract_strided_slice %7 {offsets = [32, 0], sizes = [8, 128], strides = [1, 1]} : vector<512x128xf32> to vector<8x128xf32>
    %c0_11 = arith.constant 0 : index
    %c512 = arith.constant 512 : index
    %17 = vector.load %arg9[%c0_11, %c512] : memref<8x8192xf32, #tpu.memory_space<vmem>>, vector<8x128xf32>
    tpu.vector_store %arg9[%c0_11, %c512], %16 {strides = array<i32>} : memref<8x8192xf32, #tpu.memory_space<vmem>>, vector<8x128xf32>,
    %18 = vector.extract_strided_slice %7 {offsets = [40, 0], sizes = [8, 128], strides = [1, 1]} : vector<512x128xf32> to vector<8x128xf32>
    %c0_12 = arith.constant 0 : index
    %c640 = arith.constant 640 : index
    %19 = vector.load %arg9[%c0_12, %c640] : memref<8x8192xf32, #tpu.memory_space<vmem>>, vector<8x128xf32>
    tpu.vector_store %arg9[%c0_12, %c640], %18 {strides = array<i32>} : memref<8x8192xf32, #tpu.memory_space<vmem>>, vector<8x128xf32>,
    %20 = vector.extract_strided_slice %7 {offsets = [48, 0], sizes = [8, 128], strides = [1, 1]} : vector<512x128xf32> to vector<8x128xf32>
    %c0_13 = arith.constant 0 : index
    %c768 = arith.constant 768 : index
    %21 = vector.load %arg9[%c0_13, %c768] : memref<8x8192xf32, #tpu.memory_space<vmem>>, vector<8x128xf32>
    tpu.vector_store %arg9[%c0_13, %c768], %20 {strides = array<i32>} : memref<8x8192xf32, #tpu.memory_space<vmem>>, vector<8x128xf32>,
    %22 = vector.extract_strided_slice %7 {offsets = [56, 0], sizes = [8, 128], strides = [1, 1]} : vector<512x128xf32> to vector<8x128xf32>
    %c0_14 = arith.constant 0 : index
    %c896 = arith.constant 896 : index
    %23 = vector.load %arg9[%c0_14, %c896] : memref<8x8192xf32, #tpu.memory_space<vmem>>, vector<8x128xf32>
    tpu.vector_store %arg9[%c0_14, %c896], %22 {strides = array<i32>} : memref<8x8192xf32, #tpu.memory_space<vmem>>, vector<8x128xf32>,
    %24 = vector.extract_strided_slice %7 {offsets = [64, 0], sizes = [8, 128], strides = [1, 1]} : vector<512x128xf32> to vector<8x128xf32>
    %c0_15 = arith.constant 0 : index
    %c1024 = arith.constant 1024 : index
    %25 = vector.load %arg9[%c0_15, %c1024] : memref<8x8192xf32, #tpu.memory_space<vmem>>, vector<8x128xf32>
    tpu.vector_store %arg9[%c0_15, %c1024], %24 {strides = array<i32>} : memref<8x8192xf32, #tpu.memory_space<vmem>>, vector<8x128xf32>,
    %26 = vector.extract_strided_slice %7 {offsets = [72, 0], sizes = [8, 128], strides = [1, 1]} : vector<512x128xf32> to vector<8x128xf32>
    %c0_16 = arith.constant 0 : index
    %c1152 = arith.constant 1152 : index
    %27 = vector.load %arg9[%c0_16, %c1152] : memref<8x8192xf32, #tpu.memory_space<vmem>>, vector<8x128xf32>
    tpu.vector_store %arg9[%c0_16, %c1152], %26 {strides = array<i32>} : memref<8x8192xf32, #tpu.memory_space<vmem>>, vector<8x128xf32>,
    %28 = vector.extract_strided_slice %7 {offsets = [80, 0], sizes = [8, 128], strides = [1, 1]} : vector<512x128xf32> to vector<8x128xf32>
    %c0_17 = arith.constant 0 : index
    %c1280 = arith.constant 1280 : index
    %29 = vector.load %arg9[%c0_17, %c1280] : memref<8x8192xf32, #tpu.memory_space<vmem>>, vector<8x128xf32>
    tpu.vector_store %arg9[%c0_17, %c1280], %28 {strides = array<i32>} : memref<8x8192xf32, #tpu.memory_space<vmem>>, vector<8x128xf32>,
    %30 = vector.extract_strided_slice %7 {offsets = [88, 0], sizes = [8, 128], strides = [1, 1]} : vector<512x128xf32> to vector<8x128xf32>
    %c0_18 = arith.constant 0 : index
    %c1408 = arith.constant 1408 : index
    %31 = vector.load %arg9[%c0_18, %c1408] : memref<8x8192xf32, #tpu.memory_space<vmem>>, vector<8x128xf32>
    tpu.vector_store %arg9[%c0_18, %c1408], %30 {strides = array<i32>} : memref<8x8192xf32, #tpu.memory_space<vmem>>, vector<8x128xf32>,
    %32 = vector.extract_strided_slice %7 {offsets = [96, 0], sizes = [8, 128], strides = [1, 1]} : vector<512x128xf32> to vector<8x128xf32>
    %c0_19 = arith.constant 0 : index
    %c1536 = arith.constant 1536 : index
    %33 = vector.load %arg9[%c0_19, %c1536] : memref<8x8192xf32, #tpu.memory_space<vmem>>, vector<8x128xf32>
    tpu.vector_store %arg9[%c0_19, %c1536], %32 {strides = array<i32>} : memref<8x8192xf32, #tpu.memory_space<vmem>>, vector<8x128xf32>,
    %34 = vector.extract_strided_slice %7 {offsets = [104, 0], sizes = [8, 128], strides = [1, 1]} : vector<512x128xf32> to vector<8x128xf32>
    %c0_20 = arith.constant 0 : index
    %c1664 = arith.constant 1664 : index
    %35 = vector.load %arg9[%c0_20, %c1664] : memref<8x8192xf32, #tpu.memory_space<vmem>>, vector<8x128xf32>
    tpu.vector_store %arg9[%c0_20, %c1664], %34 {strides = array<i32>} : memref<8x8192xf32, #tpu.memory_space<vmem>>, vector<8x128xf32>,
    %36 = vector.extract_strided_slice %7 {offsets = [112, 0], sizes = [8, 128], strides = [1, 1]} : vector<512x128xf32> to vector<8x128xf32>
    %c0_21 = arith.constant 0 : index
    %c1792 = arith.constant 1792 : index
    %37 = vector.load %arg9[%c0_21, %c1792] : memref<8x8192xf32, #tpu.memory_space<vmem>>, vector<8x128xf32>
    tpu.vector_store %arg9[%c0_21, %c1792], %36 {strides = array<i32>} : memref<8x8192xf32, #tpu.memory_space<vmem>>, vector<8x128xf32>,
    %38 = vector.extract_strided_slice %7 {offsets = [120, 0], sizes = [8, 128], strides = [1, 1]} : vector<512x128xf32> to vector<8x128xf32>
    %c0_22 = arith.constant 0 : index
    %c1920 = arith.constant 1920 : index
    %39 = vector.load %arg9[%c0_22, %c1920] : memref<8x8192xf32, #tpu.memory_space<vmem>>, vector<8x128xf32>
    tpu.vector_store %arg9[%c0_22, %c1920], %38 {strides = array<i32>} : memref<8x8192xf32, #tpu.memory_space<vmem>>, vector<8x128xf32>,
    %40 = vector.extract_strided_slice %7 {offsets = [128, 0], sizes = [8, 128], strides = [1, 1]} : vector<512x128xf32> to vector<8x128xf32>
    %c0_23 = arith.constant 0 : index
    %c2048 = arith.constant 2048 : index
    %41 = vector.load %arg9[%c0_23, %c2048] : memref<8x8192xf32, #tpu.memory_space<vmem>>, vector<8x128xf32>
    tpu.vector_store %arg9[%c0_23, %c2048], %40 {strides = array<i32>} : memref<8x8192xf32, #tpu.memory_space<vmem>>, vector<8x128xf32>,
    %42 = vector.extract_strided_slice %7 {offsets = [136, 0], sizes = [8, 128], strides = [1, 1]} : vector<512x128xf32> to vector<8x128xf32>
    %c0_24 = arith.constant 0 : index
    %c2176 = arith.constant 2176 : index
    %43 = vector.load %arg9[%c0_24, %c2176] : memref<8x8192xf32, #tpu.memory_space<vmem>>, vector<8x128xf32>
    tpu.vector_store %arg9[%c0_24, %c2176], %42 {strides = array<i32>} : memref<8x8192xf32, #tpu.memory_space<vmem>>, vector<8x128xf32>,
    %44 = vector.extract_strided_slice %7 {offsets = [144, 0], sizes = [8, 128], strides = [1, 1]} : vector<512x128xf32> to vector<8x128xf32>
    %c0_25 = arith.constant 0 : index
    %c2304 = arith.constant 2304 : index
    %45 = vector.load %arg9[%c0_25, %c2304] : memref<8x8192xf32, #tpu.memory_space<vmem>>, vector<8x128xf32>
    tpu.vector_store %arg9[%c0_25, %c2304], %44 {strides = array<i32>} : memref<8x8192xf32, #tpu.memory_space<vmem>>, vector<8x128xf32>,
    %46 = vector.extract_strided_slice %7 {offsets = [152, 0], sizes = [8, 128], strides = [1, 1]} : vector<512x128xf32> to vector<8x128xf32>
    %c0_26 = arith.constant 0 : index
    %c2432 = arith.constant 2432 : index
    %47 = vector.load %arg9[%c0_26, %c2432] : memref<8x8192xf32, #tpu.memory_space<vmem>>, vector<8x128xf32>
    tpu.vector_store %arg9[%c0_26, %c2432], %46 {strides = array<i32>} : memref<8x8192xf32, #tpu.memory_space<vmem>>, vector<8x128xf32>,
    %48 = vector.extract_strided_slice %7 {offsets = [160, 0], sizes = [8, 128], strides = [1, 1]} : vector<512x128xf32> to vector<8x128xf32>
    %c0_27 = arith.constant 0 : index
    %c2560 = arith.constant 2560 : index
    %49 = vector.load %arg9[%c0_27, %c2560] : memref<8x8192xf32, #tpu.memory_space<vmem>>, vector<8x128xf32>
    tpu.vector_store %arg9[%c0_27, %c2560], %48 {strides = array<i32>} : memref<8x8192xf32, #tpu.memory_space<vmem>>, vector<8x128xf32>,
    %50 = vector.extract_strided_slice %7 {offsets = [168, 0], sizes = [8, 128], strides = [1, 1]} : vector<512x128xf32> to vector<8x128xf32>
    %c0_28 = arith.constant 0 : index
    %c2688 = arith.constant 2688 : index
    %51 = vector.load %arg9[%c0_28, %c2688] : memref<8x8192xf32, #tpu.memory_space<vmem>>, vector<8x128xf32>
    tpu.vector_store %arg9[%c0_28, %c2688], %50 {strides = array<i32>} : memref<8x8192xf32, #tpu.memory_space<vmem>>, vector<8x128xf32>,
    %52 = vector.extract_strided_slice %7 {offsets = [176, 0], sizes = [8, 128], strides = [1, 1]} : vector<512x128xf32> to vector<8x128xf32>
    %c0_29 = arith.constant 0 : index
    %c2816 = arith.constant 2816 : index
    %53 = vector.load %arg9[%c0_29, %c2816] : memref<8x8192xf32, #tpu.memory_space<vmem>>, vector<8x128xf32>
    tpu.vector_store %arg9[%c0_29, %c2816], %52 {strides = array<i32>} : memref<8x8192xf32, #tpu.memory_space<vmem>>, vector<8x128xf32>,
    %54 = vector.extract_strided_slice %7 {offsets = [184, 0], sizes = [8, 128], strides = [1, 1]} : vector<512x128xf32> to vector<8x128xf32>
    %c0_30 = arith.constant 0 : index
    %c2944 = arith.constant 2944 : index
    %55 = vector.load %arg9[%c0_30, %c2944] : memref<8x8192xf32, #tpu.memory_space<vmem>>, vector<8x128xf32>
    tpu.vector_store %arg9[%c0_30, %c2944], %54 {strides = array<i32>} : memref<8x8192xf32, #tpu.memory_space<vmem>>, vector<8x128xf32>,
    %56 = vector.extract_strided_slice %7 {offsets = [192, 0], sizes = [8, 128], strides = [1, 1]} : vector<512x128xf32> to vector<8x128xf32>
    %c0_31 = arith.constant 0 : index
    %c3072 = arith.constant 3072 : index
    %57 = vector.load %arg9[%c0_31, %c3072] : memref<8x8192xf32, #tpu.memory_space<vmem>>, vector<8x128xf32>
    tpu.vector_store %arg9[%c0_31, %c3072], %56 {strides = array<i32>} : memref<8x8192xf32, #tpu.memory_space<vmem>>, vector<8x128xf32>,
    %58 = vector.extract_strided_slice %7 {offsets = [200, 0], sizes = [8, 128], strides = [1, 1]} : vector<512x128xf32> to vector<8x128xf32>
    %c0_32 = arith.constant 0 : index
    %c3200 = arith.constant 3200 : index
    %59 = vector.load %arg9[%c0_32, %c3200] : memref<8x8192xf32, #tpu.memory_space<vmem>>, vector<8x128xf32>
    tpu.vector_store %arg9[%c0_32, %c3200], %58 {strides = array<i32>} : memref<8x8192xf32, #tpu.memory_space<vmem>>, vector<8x128xf32>,
    %60 = vector.extract_strided_slice %7 {offsets = [208, 0], sizes = [8, 128], strides = [1, 1]} : vector<512x128xf32> to vector<8x128xf32>
    %c0_33 = arith.constant 0 : index
    %c3328 = arith.constant 3328 : index
    %61 = vector.load %arg9[%c0_33, %c3328] : memref<8x8192xf32, #tpu.memory_space<vmem>>, vector<8x128xf32>
    tpu.vector_store %arg9[%c0_33, %c3328], %60 {strides = array<i32>} : memref<8x8192xf32, #tpu.memory_space<vmem>>, vector<8x128xf32>,
    %62 = vector.extract_strided_slice %7 {offsets = [216, 0], sizes = [8, 128], strides = [1, 1]} : vector<512x128xf32> to vector<8x128xf32>
    %c0_34 = arith.constant 0 : index
    %c3456 = arith.constant 3456 : index
    %63 = vector.load %arg9[%c0_34, %c3456] : memref<8x8192xf32, #tpu.memory_space<vmem>>, vector<8x128xf32>
    tpu.vector_store %arg9[%c0_34, %c3456], %62 {strides = array<i32>} : memref<8x8192xf32, #tpu.memory_space<vmem>>, vector<8x128xf32>,
    %64 = vector.extract_strided_slice %7 {offsets = [224, 0], sizes = [8, 128], strides = [1, 1]} : vector<512x128xf32> to vector<8x128xf32>
    %c0_35 = arith.constant 0 : index
    %c3584 = arith.constant 3584 : index
    %65 = vector.load %arg9[%c0_35, %c3584] : memref<8x8192xf32, #tpu.memory_space<vmem>>, vector<8x128xf32>
    tpu.vector_store %arg9[%c0_35, %c3584], %64 {strides = array<i32>} : memref<8x8192xf32, #tpu.memory_space<vmem>>, vector<8x128xf32>,
    %66 = vector.extract_strided_slice %7 {offsets = [232, 0], sizes = [8, 128], strides = [1, 1]} : vector<512x128xf32> to vector<8x128xf32>
    %c0_36 = arith.constant 0 : index
    %c3712 = arith.constant 3712 : index
    %67 = vector.load %arg9[%c0_36, %c3712] : memref<8x8192xf32, #tpu.memory_space<vmem>>, vector<8x128xf32>
    tpu.vector_store %arg9[%c0_36, %c3712], %66 {strides = array<i32>} : memref<8x8192xf32, #tpu.memory_space<vmem>>, vector<8x128xf32>,
    %68 = vector.extract_strided_slice %7 {offsets = [240, 0], sizes = [8, 128], strides = [1, 1]} : vector<512x128xf32> to vector<8x128xf32>
    %c0_37 = arith.constant 0 : index
    %c3840 = arith.constant 3840 : index
    %69 = vector.load %arg9[%c0_37, %c3840] : memref<8x8192xf32, #tpu.memory_space<vmem>>, vector<8x128xf32>
    tpu.vector_store %arg9[%c0_37, %c3840], %68 {strides = array<i32>} : memref<8x8192xf32, #tpu.memory_space<vmem>>, vector<8x128xf32>,
    %70 = vector.extract_strided_slice %7 {offsets = [248, 0], sizes = [8, 128], strides = [1, 1]} : vector<512x128xf32> to vector<8x128xf32>
    %c0_38 = arith.constant 0 : index
    %c3968 = arith.constant 3968 : index
    %71 = vector.load %arg9[%c0_38, %c3968] : memref<8x8192xf32, #tpu.memory_space<vmem>>, vector<8x128xf32>
    tpu.vector_store %arg9[%c0_38, %c3968], %70 {strides = array<i32>} : memref<8x8192xf32, #tpu.memory_space<vmem>>, vector<8x128xf32>,
    %72 = vector.extract_strided_slice %7 {offsets = [256, 0], sizes = [8, 128], strides = [1, 1]} : vector<512x128xf32> to vector<8x128xf32>
    %c0_39 = arith.constant 0 : index
    %c4096 = arith.constant 4096 : index
    %73 = vector.load %arg9[%c0_39, %c4096] : memref<8x8192xf32, #tpu.memory_space<vmem>>, vector<8x128xf32>
    tpu.vector_store %arg9[%c0_39, %c4096], %72 {strides = array<i32>} : memref<8x8192xf32, #tpu.memory_space<vmem>>, vector<8x128xf32>,
    %74 = vector.extract_strided_slice %7 {offsets = [264, 0], sizes = [8, 128], strides = [1, 1]} : vector<512x128xf32> to vector<8x128xf32>
    %c0_40 = arith.constant 0 : index
    %c4224 = arith.constant 4224 : index
    %75 = vector.load %arg9[%c0_40, %c4224] : memref<8x8192xf32, #tpu.memory_space<vmem>>, vector<8x128xf32>
    tpu.vector_store %arg9[%c0_40, %c4224], %74 {strides = array<i32>} : memref<8x8192xf32, #tpu.memory_space<vmem>>, vector<8x128xf32>,
    %76 = vector.extract_strided_slice %7 {offsets = [272, 0], sizes = [8, 128], strides = [1, 1]} : vector<512x128xf32> to vector<8x128xf32>
    %c0_41 = arith.constant 0 : index
    %c4352 = arith.constant 4352 : index
    %77 = vector.load %arg9[%c0_41, %c4352] : memref<8x8192xf32, #tpu.memory_space<vmem>>, vector<8x128xf32>
    tpu.vector_store %arg9[%c0_41, %c4352], %76 {strides = array<i32>} : memref<8x8192xf32, #tpu.memory_space<vmem>>, vector<8x128xf32>,
    %78 = vector.extract_strided_slice %7 {offsets = [280, 0], sizes = [8, 128], strides = [1, 1]} : vector<512x128xf32> to vector<8x128xf32>
    %c0_42 = arith.constant 0 : index
    %c4480 = arith.constant 4480 : index
    %79 = vector.load %arg9[%c0_42, %c4480] : memref<8x8192xf32, #tpu.memory_space<vmem>>, vector<8x128xf32>
    tpu.vector_store %arg9[%c0_42, %c4480], %78 {strides = array<i32>} : memref<8x8192xf32, #tpu.memory_space<vmem>>, vector<8x128xf32>,
    %80 = vector.extract_strided_slice %7 {offsets = [288, 0], sizes = [8, 128], strides = [1, 1]} : vector<512x128xf32> to vector<8x128xf32>
    %c0_43 = arith.constant 0 : index
    %c4608 = arith.constant 4608 : index
    %81 = vector.load %arg9[%c0_43, %c4608] : memref<8x8192xf32, #tpu.memory_space<vmem>>, vector<8x128xf32>
    tpu.vector_store %arg9[%c0_43, %c4608], %80 {strides = array<i32>} : memref<8x8192xf32, #tpu.memory_space<vmem>>, vector<8x128xf32>,
    %82 = vector.extract_strided_slice %7 {offsets = [296, 0], sizes = [8, 128], strides = [1, 1]} : vector<512x128xf32> to vector<8x128xf32>
    %c0_44 = arith.constant 0 : index
    %c4736 = arith.constant 4736 : index
    %83 = vector.load %arg9[%c0_44, %c4736] : memref<8x8192xf32, #tpu.memory_space<vmem>>, vector<8x128xf32>
    tpu.vector_store %arg9[%c0_44, %c4736], %82 {strides = array<i32>} : memref<8x8192xf32, #tpu.memory_space<vmem>>, vector<8x128xf32>,
    %84 = vector.extract_strided_slice %7 {offsets = [304, 0], sizes = [8, 128], strides = [1, 1]} : vector<512x128xf32> to vector<8x128xf32>
    %c0_45 = arith.constant 0 : index
    %c4864 = arith.constant 4864 : index
    %85 = vector.load %arg9[%c0_45, %c4864] : memref<8x8192xf32, #tpu.memory_space<vmem>>, vector<8x128xf32>
    tpu.vector_store %arg9[%c0_45, %c4864], %84 {strides = array<i32>} : memref<8x8192xf32, #tpu.memory_space<vmem>>, vector<8x128xf32>,
    %86 = vector.extract_strided_slice %7 {offsets = [312, 0], sizes = [8, 128], strides = [1, 1]} : vector<512x128xf32> to vector<8x128xf32>
    %c0_46 = arith.constant 0 : index
    %c4992 = arith.constant 4992 : index
    %87 = vector.load %arg9[%c0_46, %c4992] : memref<8x8192xf32, #tpu.memory_space<vmem>>, vector<8x128xf32>
    tpu.vector_store %arg9[%c0_46, %c4992], %86 {strides = array<i32>} : memref<8x8192xf32, #tpu.memory_space<vmem>>, vector<8x128xf32>,
    %88 = vector.extract_strided_slice %7 {offsets = [320, 0], sizes = [8, 128], strides = [1, 1]} : vector<512x128xf32> to vector<8x128xf32>
    %c0_47 = arith.constant 0 : index
    %c5120 = arith.constant 5120 : index
    %89 = vector.load %arg9[%c0_47, %c5120] : memref<8x8192xf32, #tpu.memory_space<vmem>>, vector<8x128xf32>
    tpu.vector_store %arg9[%c0_47, %c5120], %88 {strides = array<i32>} : memref<8x8192xf32, #tpu.memory_space<vmem>>, vector<8x128xf32>,
    %90 = vector.extract_strided_slice %7 {offsets = [328, 0], sizes = [8, 128], strides = [1, 1]} : vector<512x128xf32> to vector<8x128xf32>
    %c0_48 = arith.constant 0 : index
    %c5248 = arith.constant 5248 : index
    %91 = vector.load %arg9[%c0_48, %c5248] : memref<8x8192xf32, #tpu.memory_space<vmem>>, vector<8x128xf32>
    tpu.vector_store %arg9[%c0_48, %c5248], %90 {strides = array<i32>} : memref<8x8192xf32, #tpu.memory_space<vmem>>, vector<8x128xf32>,
    %92 = vector.extract_strided_slice %7 {offsets = [336, 0], sizes = [8, 128], strides = [1, 1]} : vector<512x128xf32> to vector<8x128xf32>
    %c0_49 = arith.constant 0 : index
    %c5376 = arith.constant 5376 : index
    %93 = vector.load %arg9[%c0_49, %c5376] : memref<8x8192xf32, #tpu.memory_space<vmem>>, vector<8x128xf32>
    tpu.vector_store %arg9[%c0_49, %c5376], %92 {strides = array<i32>} : memref<8x8192xf32, #tpu.memory_space<vmem>>, vector<8x128xf32>,
    %94 = vector.extract_strided_slice %7 {offsets = [344, 0], sizes = [8, 128], strides = [1, 1]} : vector<512x128xf32> to vector<8x128xf32>
    %c0_50 = arith.constant 0 : index
    %c5504 = arith.constant 5504 : index
    %95 = vector.load %arg9[%c0_50, %c5504] : memref<8x8192xf32, #tpu.memory_space<vmem>>, vector<8x128xf32>
    tpu.vector_store %arg9[%c0_50, %c5504], %94 {strides = array<i32>} : memref<8x8192xf32, #tpu.memory_space<vmem>>, vector<8x128xf32>,
    %96 = vector.extract_strided_slice %7 {offsets = [352, 0], sizes = [8, 128], strides = [1, 1]} : vector<512x128xf32> to vector<8x128xf32>
    %c0_51 = arith.constant 0 : index
    %c5632 = arith.constant 5632 : index
    %97 = vector.load %arg9[%c0_51, %c5632] : memref<8x8192xf32, #tpu.memory_space<vmem>>, vector<8x128xf32>
    tpu.vector_store %arg9[%c0_51, %c5632], %96 {strides = array<i32>} : memref<8x8192xf32, #tpu.memory_space<vmem>>, vector<8x128xf32>,
    %98 = vector.extract_strided_slice %7 {offsets = [360, 0], sizes = [8, 128], strides = [1, 1]} : vector<512x128xf32> to vector<8x128xf32>
    %c0_52 = arith.constant 0 : index
    %c5760 = arith.constant 5760 : index
    %99 = vector.load %arg9[%c0_52, %c5760] : memref<8x8192xf32, #tpu.memory_space<vmem>>, vector<8x128xf32>
    tpu.vector_store %arg9[%c0_52, %c5760], %98 {strides = array<i32>} : memref<8x8192xf32, #tpu.memory_space<vmem>>, vector<8x128xf32>,
    %100 = vector.extract_strided_slice %7 {offsets = [368, 0], sizes = [8, 128], strides = [1, 1]} : vector<512x128xf32> to vector<8x128xf32>
    %c0_53 = arith.constant 0 : index
    %c5888 = arith.constant 5888 : index
    %101 = vector.load %arg9[%c0_53, %c5888] : memref<8x8192xf32, #tpu.memory_space<vmem>>, vector<8x128xf32>
    tpu.vector_store %arg9[%c0_53, %c5888], %100 {strides = array<i32>} : memref<8x8192xf32, #tpu.memory_space<vmem>>, vector<8x128xf32>,
    %102 = vector.extract_strided_slice %7 {offsets = [376, 0], sizes = [8, 128], strides = [1, 1]} : vector<512x128xf32> to vector<8x128xf32>
    %c0_54 = arith.constant 0 : index
    %c6016 = arith.constant 6016 : index
    %103 = vector.load %arg9[%c0_54, %c6016] : memref<8x8192xf32, #tpu.memory_space<vmem>>, vector<8x128xf32>
    tpu.vector_store %arg9[%c0_54, %c6016], %102 {strides = array<i32>} : memref<8x8192xf32, #tpu.memory_space<vmem>>, vector<8x128xf32>,
    %104 = vector.extract_strided_slice %7 {offsets = [384, 0], sizes = [8, 128], strides = [1, 1]} : vector<512x128xf32> to vector<8x128xf32>
    %c0_55 = arith.constant 0 : index
    %c6144 = arith.constant 6144 : index
    %105 = vector.load %arg9[%c0_55, %c6144] : memref<8x8192xf32, #tpu.memory_space<vmem>>, vector<8x128xf32>
    tpu.vector_store %arg9[%c0_55, %c6144], %104 {strides = array<i32>} : memref<8x8192xf32, #tpu.memory_space<vmem>>, vector<8x128xf32>,
    %106 = vector.extract_strided_slice %7 {offsets = [392, 0], sizes = [8, 128], strides = [1, 1]} : vector<512x128xf32> to vector<8x128xf32>
    %c0_56 = arith.constant 0 : index
    %c6272 = arith.constant 6272 : index
    %107 = vector.load %arg9[%c0_56, %c6272] : memref<8x8192xf32, #tpu.memory_space<vmem>>, vector<8x128xf32>
    tpu.vector_store %arg9[%c0_56, %c6272], %106 {strides = array<i32>} : memref<8x8192xf32, #tpu.memory_space<vmem>>, vector<8x128xf32>,
    %108 = vector.extract_strided_slice %7 {offsets = [400, 0], sizes = [8, 128], strides = [1, 1]} : vector<512x128xf32> to vector<8x128xf32>
    %c0_57 = arith.constant 0 : index
    %c6400 = arith.constant 6400 : index
    %109 = vector.load %arg9[%c0_57, %c6400] : memref<8x8192xf32, #tpu.memory_space<vmem>>, vector<8x128xf32>
    tpu.vector_store %arg9[%c0_57, %c6400], %108 {strides = array<i32>} : memref<8x8192xf32, #tpu.memory_space<vmem>>, vector<8x128xf32>,
    %110 = vector.extract_strided_slice %7 {offsets = [408, 0], sizes = [8, 128], strides = [1, 1]} : vector<512x128xf32> to vector<8x128xf32>
    %c0_58 = arith.constant 0 : index
    %c6528 = arith.constant 6528 : index
    %111 = vector.load %arg9[%c0_58, %c6528] : memref<8x8192xf32, #tpu.memory_space<vmem>>, vector<8x128xf32>
    tpu.vector_store %arg9[%c0_58, %c6528], %110 {strides = array<i32>} : memref<8x8192xf32, #tpu.memory_space<vmem>>, vector<8x128xf32>,
    %112 = vector.extract_strided_slice %7 {offsets = [416, 0], sizes = [8, 128], strides = [1, 1]} : vector<512x128xf32> to vector<8x128xf32>
    %c0_59 = arith.constant 0 : index
    %c6656 = arith.constant 6656 : index
    %113 = vector.load %arg9[%c0_59, %c6656] : memref<8x8192xf32, #tpu.memory_space<vmem>>, vector<8x128xf32>
    tpu.vector_store %arg9[%c0_59, %c6656], %112 {strides = array<i32>} : memref<8x8192xf32, #tpu.memory_space<vmem>>, vector<8x128xf32>,
    %114 = vector.extract_strided_slice %7 {offsets = [424, 0], sizes = [8, 128], strides = [1, 1]} : vector<512x128xf32> to vector<8x128xf32>
    %c0_60 = arith.constant 0 : index
    %c6784 = arith.constant 6784 : index
    %115 = vector.load %arg9[%c0_60, %c6784] : memref<8x8192xf32, #tpu.memory_space<vmem>>, vector<8x128xf32>
    tpu.vector_store %arg9[%c0_60, %c6784], %114 {strides = array<i32>} : memref<8x8192xf32, #tpu.memory_space<vmem>>, vector<8x128xf32>,
    %116 = vector.extract_strided_slice %7 {offsets = [432, 0], sizes = [8, 128], strides = [1, 1]} : vector<512x128xf32> to vector<8x128xf32>
    %c0_61 = arith.constant 0 : index
    %c6912 = arith.constant 6912 : index
    %117 = vector.load %arg9[%c0_61, %c6912] : memref<8x8192xf32, #tpu.memory_space<vmem>>, vector<8x128xf32>
    tpu.vector_store %arg9[%c0_61, %c6912], %116 {strides = array<i32>} : memref<8x8192xf32, #tpu.memory_space<vmem>>, vector<8x128xf32>,
    %118 = vector.extract_strided_slice %7 {offsets = [440, 0], sizes = [8, 128], strides = [1, 1]} : vector<512x128xf32> to vector<8x128xf32>
    %c0_62 = arith.constant 0 : index
    %c7040 = arith.constant 7040 : index
    %119 = vector.load %arg9[%c0_62, %c7040] : memref<8x8192xf32, #tpu.memory_space<vmem>>, vector<8x128xf32>
    tpu.vector_store %arg9[%c0_62, %c7040], %118 {strides = array<i32>} : memref<8x8192xf32, #tpu.memory_space<vmem>>, vector<8x128xf32>,
    %120 = vector.extract_strided_slice %7 {offsets = [448, 0], sizes = [8, 128], strides = [1, 1]} : vector<512x128xf32> to vector<8x128xf32>
    %c0_63 = arith.constant 0 : index
    %c7168 = arith.constant 7168 : index
    %121 = vector.load %arg9[%c0_63, %c7168] : memref<8x8192xf32, #tpu.memory_space<vmem>>, vector<8x128xf32>
    tpu.vector_store %arg9[%c0_63, %c7168], %120 {strides = array<i32>} : memref<8x8192xf32, #tpu.memory_space<vmem>>, vector<8x128xf32>,
    %122 = vector.extract_strided_slice %7 {offsets = [456, 0], sizes = [8, 128], strides = [1, 1]} : vector<512x128xf32> to vector<8x128xf32>
    %c0_64 = arith.constant 0 : index
    %c7296 = arith.constant 7296 : index
    %123 = vector.load %arg9[%c0_64, %c7296] : memref<8x8192xf32, #tpu.memory_space<vmem>>, vector<8x128xf32>
    tpu.vector_store %arg9[%c0_64, %c7296], %122 {strides = array<i32>} : memref<8x8192xf32, #tpu.memory_space<vmem>>, vector<8x128xf32>,
    %124 = vector.extract_strided_slice %7 {offsets = [464, 0], sizes = [8, 128], strides = [1, 1]} : vector<512x128xf32> to vector<8x128xf32>
    %c0_65 = arith.constant 0 : index
    %c7424 = arith.constant 7424 : index
    %125 = vector.load %arg9[%c0_65, %c7424] : memref<8x8192xf32, #tpu.memory_space<vmem>>, vector<8x128xf32>
    tpu.vector_store %arg9[%c0_65, %c7424], %124 {strides = array<i32>} : memref<8x8192xf32, #tpu.memory_space<vmem>>, vector<8x128xf32>,
    %126 = vector.extract_strided_slice %7 {offsets = [472, 0], sizes = [8, 128], strides = [1, 1]} : vector<512x128xf32> to vector<8x128xf32>
    %c0_66 = arith.constant 0 : index
    %c7552 = arith.constant 7552 : index
    %127 = vector.load %arg9[%c0_66, %c7552] : memref<8x8192xf32, #tpu.memory_space<vmem>>, vector<8x128xf32>
    tpu.vector_store %arg9[%c0_66, %c7552], %126 {strides = array<i32>} : memref<8x8192xf32, #tpu.memory_space<vmem>>, vector<8x128xf32>,
    %128 = vector.extract_strided_slice %7 {offsets = [480, 0], sizes = [8, 128], strides = [1, 1]} : vector<512x128xf32> to vector<8x128xf32>
    %c0_67 = arith.constant 0 : index
    %c7680 = arith.constant 7680 : index
    %129 = vector.load %arg9[%c0_67, %c7680] : memref<8x8192xf32, #tpu.memory_space<vmem>>, vector<8x128xf32>
    tpu.vector_store %arg9[%c0_67, %c7680], %128 {strides = array<i32>} : memref<8x8192xf32, #tpu.memory_space<vmem>>, vector<8x128xf32>,
    %130 = vector.extract_strided_slice %7 {offsets = [488, 0], sizes = [8, 128], strides = [1, 1]} : vector<512x128xf32> to vector<8x128xf32>
    %c0_68 = arith.constant 0 : index
    %c7808 = arith.constant 7808 : index
    %131 = vector.load %arg9[%c0_68, %c7808] : memref<8x8192xf32, #tpu.memory_space<vmem>>, vector<8x128xf32>
    tpu.vector_store %arg9[%c0_68, %c7808], %130 {strides = array<i32>} : memref<8x8192xf32, #tpu.memory_space<vmem>>, vector<8x128xf32>,
    %132 = vector.extract_strided_slice %7 {offsets = [496, 0], sizes = [8, 128], strides = [1, 1]} : vector<512x128xf32> to vector<8x128xf32>
    %c0_69 = arith.constant 0 : index
    %c7936 = arith.constant 7936 : index
    %133 = vector.load %arg9[%c0_69, %c7936] : memref<8x8192xf32, #tpu.memory_space<vmem>>, vector<8x128xf32>
    tpu.vector_store %arg9[%c0_69, %c7936], %132 {strides = array<i32>} : memref<8x8192xf32, #tpu.memory_space<vmem>>, vector<8x128xf32>,
    %134 = vector.extract_strided_slice %7 {offsets = [504, 0], sizes = [8, 128], strides = [1, 1]} : vector<512x128xf32> to vector<8x128xf32>
    %c0_70 = arith.constant 0 : index
    %c8064 = arith.constant 8064 : index
    %135 = vector.load %arg9[%c0_70, %c8064] : memref<8x8192xf32, #tpu.memory_space<vmem>>, vector<8x128xf32>
    tpu.vector_store %arg9[%c0_70, %c8064], %134 {strides = array<i32>} : memref<8x8192xf32, #tpu.memory_space<vmem>>, vector<8x128xf32>,
    %c0_71 = arith.constant 0 : index
    %c0_72 = arith.constant 0 : index
    %136 = vector.load %arg9[%c0_71, %c0_72] : memref<8x8192xf32, #tpu.memory_space<vmem>>, vector<8x8192xf32>
    %137 = arith.truncf %136 : vector<8x8192xf32> to vector<8x8192xbf16>
    %c0_73 = arith.constant 0 : index
    %c0_74 = arith.constant 0 : index
    %138 = vector.load %arg4[%c0_73, %c0_74] : memref<8192x128xbf16, #tpu.memory_space<vmem>>, vector<8192x128xbf16>
    %cst_75 = arith.constant dense<0.000000e+00> : vector<8x128xf32>
    %139 = tpu.matmul %137, %138, %cst_75 {dimension_numbers = #tpu.dot_dimension_numbers<[1], [0], [0], [1], [0, 0, 1, 1], [], []>} : vector<8x8192xbf16>, vector<8192x128xbf16>, vector<8x128xf32> -> vector<8x128xf32>
    %c0_76 = arith.constant 0 : index
    %c0_77 = arith.constant 0 : index
    %140 = vector.load %arg5[%c0_76, %c0_77] : memref<1x128xf32, #tpu.memory_space<vmem>>, vector<1x128xf32>
    %141 = vector.broadcast %140 : vector<1x128xf32> to vector<8x128xf32>
    %142 = arith.addf %139, %141 : vector<8x128xf32>
    %c0_78 = arith.constant 0 : index
    %c0_79 = arith.constant 0 : index
    %143 = vector.load %arg7[%c0_78, %c0_79] : memref<8x128xf32, #tpu.memory_space<vmem>>, vector<8x128xf32>
    tpu.vector_store %arg7[%c0_78, %c0_79], %142 {strides = array<i32>} : memref<8x128xf32, #tpu.memory_space<vmem>>, vector<8x128xf32>,
    %c0_80 = arith.constant 0 : index
    %c0_81 = arith.constant 0 : index
    %144 = vector.load %arg6[%c0_80, %c0_81] : memref<8x128xf32, #tpu.memory_space<vmem>>, vector<8x128xf32>
    %cst_82 = arith.constant dense<0xFF800000> : vector<8xf32>
    %145 = vector.multi_reduction <maximumf>, %142, %cst_82 [1] : vector<8x128xf32> to vector<8xf32>
    %146 = vector.shape_cast %145 : vector<8xf32> to vector<8x1xf32>
    %147 = vector.broadcast %146 : vector<8x1xf32> to vector<8x128xf32>
    %148 = arith.subf %142, %147 : vector<8x128xf32>
    %149 = math.exp %148 : vector<8x128xf32>
    %cst_83 = arith.constant dense<0.000000e+00> : vector<8xf32>
    %150 = vector.multi_reduction <add>, %149, %cst_83 [1] : vector<8x128xf32> to vector<8xf32>
    %151 = vector.shape_cast %150 : vector<8xf32> to vector<8x1xf32>
    %152 = math.log %151 : vector<8x1xf32>
    %153 = arith.addf %146, %152 : vector<8x1xf32>
    %154 = arith.mulf %144, %142 : vector<8x128xf32>
    %cst_84 = arith.constant dense<0.000000e+00> : vector<8xf32>
    %155 = vector.multi_reduction <add>, %154, %cst_84 [1] : vector<8x128xf32> to vector<8xf32>
    %156 = vector.shape_cast %155 : vector<8xf32> to vector<8x1xf32>
    %cst_85 = arith.constant dense<0.000000e+00> : vector<8xf32>
    %157 = vector.multi_reduction <add>, %144, %cst_85 [1] : vector<8x128xf32> to vector<8xf32>
    %158 = vector.shape_cast %157 : vector<8xf32> to vector<8x1xf32>
    %159 = arith.subf %153, %156 : vector<8x1xf32>
    %160 = arith.mulf %158, %159 : vector<8x1xf32>
    %161 = vector.shape_cast %160 : vector<8x1xf32> to vector<1x8x1xf32>
    %cst_86 = arith.constant dense<0.000000e+00> : vector<1xf32>
    %162 = vector.multi_reduction <add>, %161, %cst_86 [1, 2] : vector<1x8x1xf32> to vector<1xf32>
    %163 = vector.shape_cast %162 : vector<1xf32> to vector<1x1x1xf32>
    %164 = vector.extract %163[0, 0, 0] : f32 from vector<1x1x1xf32>
    %cst_87 = arith.constant 5.000000e-01 : f32
    %165 = arith.mulf %164, %cst_87 : f32
    %c0_88 = arith.constant 0 : index
    %c0_89 = arith.constant 0 : index
    %166 = memref.load %arg8[%c0_88, %c0_89] : memref<1x1xf32, #tpu.memory_space<smem>>
    memref.store %165, %arg8[%c0_88, %c0_89] : memref<1x1xf32, #tpu.memory_space<smem>>
    return
  }
  func.func @transform_0(%arg0: i32) -> (i32, i32) {
    %c0_i32 = arith.constant 0 : i32
    %c0_i32_0 = arith.constant 0 : i32
    %c0_i32_1 = arith.constant 0 : i32
    return %c0_i32, %c0_i32_0 : i32, i32
  }
  func.func @transform_1(%arg0: i32) -> (i32, i32) {
    %c0_i32 = arith.constant 0 : i32
    %c0_i32_0 = arith.constant 0 : i32
    %c0_i32_1 = arith.constant 0 : i32
    return %c0_i32, %c0_i32_0 : i32, i32
  }
  func.func @transform_2(%arg0: i32) -> (i32, i32) {
    %c0_i32 = arith.constant 0 : i32
    %c0_i32_0 = arith.constant 0 : i32
    %c0_i32_1 = arith.constant 0 : i32
    return %c0_i32, %c0_i32_0 : i32, i32
  }
  func.func @transform_3(%arg0: i32) -> (i32, i32) {
    %c0_i32 = arith.constant 0 : i32
    %c0_i32_0 = arith.constant 0 : i32
    %c0_i32_1 = arith.constant 0 : i32
    return %c0_i32, %c0_i32_0 : i32, i32
  }
  func.func @transform_4(%arg0: i32) -> (i32, i32) {
    %c0_i32 = arith.constant 0 : i32
    %c0_i32_0 = arith.constant 0 : i32
    %c0_i32_1 = arith.constant 0 : i32
    return %c0_i32, %c0_i32_0 : i32, i32
  }
  func.func @transform_5(%arg0: i32) -> (i32, i32) {
    %c0_i32 = arith.constant 0 : i32
    %c0_i32_0 = arith.constant 0 : i32
    %c0_i32_1 = arith.constant 0 : i32
    return %c0_i32, %c0_i32_0 : i32, i32
  }
  func.func @transform_6(%arg0: i32) -> (i32, i32) {
    %c0_i32 = arith.constant 0 : i32
    %c0_i32_0 = arith.constant 0 : i32
    %c0_i32_1 = arith.constant 0 : i32
    return %c0_i32, %c0_i32_0 : i32, i32
  }
  func.func @transform_7(%arg0: i32) -> (i32, i32) {
    %c0_i32 = arith.constant 0 : i32
    %c0_i32_0 = arith.constant 0 : i32
    %c0_i32_1 = arith.constant 0 : i32
    return %c0_i32, %c0_i32_0 : i32, i32
  }
}

</mosaic_0001>

<bundles_post_ra>
// kernel: _forward_train.1
= control target key start
LH: loop header
LB: loop body
LE: loop exit
PB: predicated region body
PF: predicated region fallthrough
CT: control target
= control target key end

     0   :  { %s10302_s0 = inlined_call_operand.vmem [shape: bf16[512,128], index: 0, kind: input, shape index: {}]   ;;  %s10303_s1 = inlined_call_operand.vmem [shape: bf16[128,128], index: 1, kind: input, shape index: {}]   ;;  %s10304_s2 = inlined_call_operand.vmem [shape: f32[1,128], index: 2, kind: input, shape index: {}]   ;;  %s10305_s3 = inlined_call_operand.vmem [shape: bf16[8192,128], index: 3, kind: input, shape index: {}]   ;;  %s10306_s4 = inlined_call_operand.vmem [shape: f32[1,128], index: 4, kind: input, shape index: {}]   ;;  %s10307_s5 = inlined_call_operand.vmem [shape: f32[8,128], index: 5, kind: input, shape index: {}]   ;;  %s10308_s6 = inlined_call_operand.vmem [shape: f32[8,128], index: 6, kind: output, shape index: {0}]   ;;  %s10309_s7 = inlined_call_operand.hbm [shape: f32[1,1], index: 7, kind: output, shape index: {1}]  }
   0x1   :  { %v7713_v0 = vld [vmem:[%s10303_s1] sm:$0xff]   ;;  %v7714_v1 = vld [vmem:[%s10303_s1 + $0x8] sm:$0xff]   ;;  %v7715_v2 = vld [vmem:[%s10303_s1 + $0x10] sm:$0xff]  }
   0x2   :  { %7630 = vmatprep.subr.bf16.mxu0 %v7713_v0  ;;  %v7716_v3 = vld [vmem:[%s10303_s1 + $0x18] sm:$0xff]   ;;  %v7721_v4 = vld [vmem:[%s10302_s0] sm:$0xff]   ;;  %v7718_v6 = vld [vmem:[%s10303_s1 + $0x28] sm:$0xff]  }
   0x3   :  { %7631 = vmatpush3.bf16.msra.mxu0 %v7713_v0  ;;  %7646 = vmatprep.mubr.bf16.mxu0 %v7721_v4  ;;  %v7717_v5 = vld [vmem:[%s10303_s1 + $0x20] sm:$0xff]   ;;  %v7719_v7 = vld [vmem:[%s10303_s1 + $0x30] sm:$0xff]   ;;  %v7720_v8 = vld [vmem:[%s10303_s1 + $0x38] sm:$0xff]  }
   0x4   :  { %7632 = vmatprep.subr.bf16.mxu0 %v7714_v1  ;;  %v7722_v9 = vld [vmem:[%s10302_s0 + $0x8] sm:$0xff]   ;;  %v7742_v10 = vld [vmem:[%s10305_s3 + $0x40] sm:$0xff]   ;;  %v7723_v11 = vld [vmem:[%s10302_s0 + $0x10] sm:$0xff]  }
   0x5   :  { %6926 = vmatprep.subr.bf16.mxu1 %v7742_v10  ;;  %v7744_v12 = vld [vmem:[%s10305_s3] sm:$0xff]   ;;  %v7745_v13 = vld [vmem:[%s10305_s3 + $0x48] sm:$0xff]   ;;  %v7748_v15 = vld [vmem:[%s10305_s3 + $0x50] sm:$0xff]  }
   0x6   :  { %6927 = vmatpush3.bf16.msra.mxu1 %v7744_v12  ;;  %v7746_v14 = vld [vmem:[%s10305_s3 + $0x8] sm:$0xff]   ;;  %v7724_v16 = vld [vmem:[%s10302_s0 + $0x18] sm:$0xff]   ;;  %v7750_v17 = vld [vmem:[%s10305_s3 + $0x10] sm:$0xff]  }
   0x7   :  { %7633 = vmatpush3.bf16.msra.mxu0 %v7714_v1  ;;  %6928 = vmatprep.subr.bf16.mxu1 %v7745_v13  ;;  %v7751_v18 = vld [vmem:[%s10305_s3 + $0x58] sm:$0xff]   ;;  %v7725_v19 = vld [vmem:[%s10302_s0 + $0x20] sm:$0xff]   ;;  %v7726_v23 = vld [vmem:[%s10302_s0 + $0x28] sm:$0xff]  }
   0x8   :  { %7634 = vmatprep.subr.bf16.mxu0 %v7715_v2  ;;  %v7752_v20 = vld [vmem:[%s10305_s3 + $0x18] sm:$0xff]   ;;  %v7754_v21 = vld [vmem:[%s10305_s3 + $0x60] sm:$0xff]   ;;  %v7727_v25 = vld [vmem:[%s10302_s0 + $0x30] sm:$0xff]  }
   0x9   :  { %v7755_v22 = vld [vmem:[%s10305_s3 + $0x240] sm:$0xff]   ;;  %v7759_v27 = vld [vmem:[%s10305_s3 + $0x68] sm:$0xff]   ;;  %v7728_v31 = vld [vmem:[%s10302_s0 + $0x38] sm:$0xff]  }
   0xa   :  { %6929 = vmatpush3.bf16.msra.mxu1 %v7746_v14  ;;  %v7757_v24 = vld [vmem:[%s10305_s3 + $0x20] sm:$0xff]   ;;  %v7760_v28 = vld [vmem:[%s10305_s3 + $0x248] sm:$0xff]   ;;  %v7731_v34 = vld [vmem:[%s10302_s0 + $0x50] sm:$0xff]  }
   0xb   :  { %7635 = vmatpush3.bf16.msra.mxu0 %v7715_v2  ;;  %6930 = vmatprep.subr.bf16.mxu1 %v7748_v15  ;;  %v7758_v26 = vld [vmem:[%s10305_s3 + $0x200] sm:$0xff]   ;;  %v7761_v29 = vld [vmem:[%s10305_s3 + $0x28] sm:$0xff]   ;;  %v7732_v35 = vld [vmem:[%s10302_s0 + $0x58] sm:$0xff]  }
   0xc   :  { %7636 = vmatprep.subr.bf16.mxu0 %v7716_v3  ;;  %v7762_v30 = vld [vmem:[%s10305_s3 + $0x208] sm:$0xff]   ;;  %v7729_v32 = vld [vmem:[%s10302_s0 + $0x40] sm:$0xff]   ;;  %v7735_v38 = vld [vmem:[%s10302_s0 + $0x70] sm:$0xff]  }
   0xd   :  { %v7730_v33 = vld [vmem:[%s10302_s0 + $0x48] sm:$0xff]   ;;  %v7733_v36 = vld [vmem:[%s10302_s0 + $0x60] sm:$0xff]   ;;  %v7736_v39 = vld [vmem:[%s10302_s0 + $0x78] sm:$0xff]  }
   0xe   :  { %6931 = vmatpush3.bf16.msra.mxu1 %v7750_v17  ;;  %v7734_v37 = vld [vmem:[%s10302_s0 + $0x68] sm:$0xff]   ;;  %v7737_v40 = vld [vmem:[%s10302_s0 + $0x80] sm:$0xff]   ;;  %v7739_v42 = vld [vmem:[%s10302_s0 + $0x90] sm:$0xff]  }
   0xf   :  { %7637 = vmatpush3.bf16.msra.mxu0 %v7716_v3  ;;  %6932 = vmatprep.subr.bf16.mxu1 %v7751_v18  ;;  %v7738_v41 = vld [vmem:[%s10302_s0 + $0x88] sm:$0xff]   ;;  %v7740_v43 = vld [vmem:[%s10302_s0 + $0x98] sm:$0xff]   ;;  %v7741_v44 = vld [vmem:[%s10302_s0 + $0xa0] sm:$0xff]  }
  0x10   :  { %7638 = vmatprep.subr.bf16.mxu0 %v7717_v5  ;;  %v7743_v45 = vld [vmem:[%s10302_s0 + $0xa8] sm:$0xff]   ;;  %v7747_v46 = vld [vmem:[%s10302_s0 + $0xb0] sm:$0xff]   ;;  %v7749_v47 = vld [vmem:[%s10302_s0 + $0xb8] sm:$0xff]  }
  0x11   :  { %v7764_v48 = vld [vmem:[%s10305_s3 + $0x70] sm:$0xff]   ;;  %v7753_v49 = vld [vmem:[%s10302_s0 + $0xc0] sm:$0xff]   ;;  %v7769_v53 = vld [vmem:[%s10305_s3 + $0x78] sm:$0xff]  }
  0x12   :  { %6933 = vmatpush3.bf16.msra.mxu1 %v7752_v20  ;;  %v7765_v50 = vld [vmem:[%s10305_s3 + $0x250] sm:$0xff]   ;;  %v7770_v54 = vld [vmem:[%s10305_s3 + $0x258] sm:$0xff]   ;;  %v7774_v57 = vld [vmem:[%s10305_s3 + $0xc0] sm:$0xff]  }
  0x13   :  { %7639 = vmatpush3.bf16.msra.mxu0 %v7717_v5  ;;  %6934 = vmatprep.subr.bf16.mxu1 %v7754_v21  ;;  %v7767_v51 = vld [vmem:[%s10305_s3 + $0x30] sm:$0xff]   ;;  %v7771_v55 = vld [vmem:[%s10305_s3 + $0x38] sm:$0xff]   ;;  %v7775_v58 = vld [vmem:[%s10305_s3 + $0x260] sm:$0xff]  }
  0x14   :  { %7640 = vmatprep.subr.bf16.mxu0 %v7718_v6  ;;  %v7768_v52 = vld [vmem:[%s10305_s3 + $0x210] sm:$0xff]   ;;  %v7772_v56 = vld [vmem:[%s10305_s3 + $0x218] sm:$0xff]   ;;  %v7756_v59 = vld [vmem:[%s10302_s0 + $0xc8] sm:$0xff]  }
  0x15   :  { %v7763_v60 = vld [vmem:[%s10302_s0 + $0xd0] sm:$0xff]   ;;  %v7778_v61 = vld [vmem:[%s10305_s3 + $0x220] sm:$0xff]   ;;  %v7780_v62 = vld [vmem:[%s10305_s3 + $0x268] sm:$0xff]  }
  0x16   :  { %6935 = vmatpush3.bf16.msra.mxu1 %v7757_v24  ;;  %v7782_v63 = vld [vmem:[%s10305_s3 + $0x228] sm:$0xff]   ;;  %v7766_v0 = vld [vmem:[%s10302_s0 + $0xd8] sm:$0xff]   ;;  %v7785_v1 = vld [vmem:[%s10305_s3 + $0x270] sm:$0xff]  }
  0x17   :  { %7641 = vmatpush3.bf16.msra.mxu0 %v7718_v6  ;;  %6936 = vmatprep.subr.bf16.mxu1 %v7759_v27  ;;  %v7773_v2 = vld [vmem:[%s10302_s0 + $0xe0] sm:$0xff]   ;;  %v7788_v3 = vld [vmem:[%s10305_s3 + $0x230] sm:$0xff]   ;;  %v7790_v4 = vld [vmem:[%s10305_s3 + $0x278] sm:$0xff]  }
  0x18   :  { %7642 = vmatprep.subr.bf16.mxu0 %v7719_v7  ;;  %v7792_v5 = vld [vmem:[%s10305_s3 + $0x238] sm:$0xff]   ;;  %v7776_v6 = vld [vmem:[%s10302_s0 + $0xe8] sm:$0xff]   ;;  %v8550_v10 = vld [vmem:[%s10304_s2] ss:$0 sm:$0xff] }
  0x1a   :  { %6937 = vmatpush3.bf16.msra.mxu1 %v7761_v29 }
  0x1b   :  { %7643 = vmatpush3.bf16.msra.mxu0 %v7719_v7  ;;  %6938 = vmatprep.subr.bf16.mxu1 %v7764_v48  ;;  %v7794_v7 = vld [vmem:[%s10305_s3 + $0x340] sm:$0xff]  }
  0x1c   :  { %7644 = vmatprep.subr.bf16.mxu0 %v7720_v8 }
  0x1e   :  { %6939 = vmatpush3.bf16.msra.mxu1 %v7767_v51 }
  0x1f   :  { %7645 = vmatpush3.bf16.msra.mxu0 %v7720_v8  ;;  %6940 = vmatprep.subr.bf16.mxu1 %v7769_v53  ;;  %v7783_v8 = vld [vmem:[%s10302_s0 + $0xf0] sm:$0xff]   ;;  %v7799_v53 = vld [vmem:[%s10305_s3 + $0xa8] sm:$0xff]  }
  0x20   :  { %7014 = vmatprep.subr.bf16.mxu0 %v7755_v22  ;;  %v7777_v22 = vld [vmem:[%s10305_s3 + $0x80] sm:$0xff]  }
  0x22   :  { %7647 = vmatmul.mubr.bf16.vlgmr.msra.gmra.mrb[0].mxu0 %v7722_v9  ;;  %6941 = vmatpush3.bf16.msra.mxu1 %v7771_v55  ;;  %v7786_v9 = vld [vmem:[%s10302_s0 + $0xf8] sm:$0xff]   ;;  %v7800_v55 = vld [vmem:[%s10305_s3 + $0x308] sm:$0xff]  }
  0x23   :  { %7650 = vmatprep.mubr.bf16.mxu0 %v7723_v11  ;;  %7015 = vmatpush3.bf16.msra.mxu0 %v7758_v26  ;;  %v7779_v26 = vld [vmem:[%s10305_s3 + $0xc8] sm:$0xff]  }
  0x24   :  { %7016 = vmatprep.subr.bf16.mxu0 %v7760_v28  ;;  %6948 = vmatprep.subr.bf16.mxu1 %v7774_v57  ;;  %v7801_v57 = vld [vmem:[%s10305_s3 + $0xf0] sm:$0xff]  }
  0x27   :  { %7017 = vmatpush3.bf16.msra.mxu0 %v7762_v30  ;;  %v7781_v30 = vld [vmem:[%s10305_s3 + $0x88] sm:$0xff]  }
  0x28   :  { %7018 = vmatprep.subr.bf16.mxu0 %v7765_v50  ;;  %v7798_v50 = vld [vmem:[%s10305_s3 + $0x348] sm:$0xff]  }
  0x2a   :  { %7651 = vmatmul.mubr.bf16.gmra.mrb[4].mxu0 %v7724_v16 }
  0x2b   :  { %7654 = vmatprep.mubr.bf16.mxu0 %v7725_v19  ;;  %7019 = vmatpush3.bf16.msra.mxu0 %v7768_v52 }
  0x2c   :  { %7020 = vmatprep.subr.bf16.mxu0 %v7770_v54 }
  0x2f   :  { %7021 = vmatpush3.bf16.msra.mxu0 %v7772_v56 }
  0x30   :  { %7022 = vmatprep.subr.bf16.mxu0 %v7775_v58  ;;  %v7802_v58 = vld [vmem:[%s10305_s3 + $0x350] sm:$0xff]  }
  0x32   :  { %7655 = vmatmul.mubr.bf16.gmra.mrb[8].mxu0 %v7726_v23 }
  0x33   :  { %7658 = vmatprep.mubr.bf16.mxu0 %v7727_v25  ;;  %7023 = vmatpush3.bf16.msra.mxu0 %v7778_v61  ;;  %v7804_v61 = vld [vmem:[%s10305_s3 + $0x310] sm:$0xff]  }
  0x34   :  { %7024 = vmatprep.subr.bf16.mxu0 %v7780_v62 }
  0x37   :  { %7025 = vmatpush3.bf16.msra.mxu0 %v7782_v63 }
  0x38   :  { %7026 = vmatprep.subr.bf16.mxu0 %v7785_v1  ;;  %v7805_v1 = vld [vmem:[%s10305_s3 + $0xf8] sm:$0xff]  }
  0x3a   :  { %7659 = vmatmul.mubr.bf16.gmra.mrb[12].mxu0 %v7728_v31  ;;  %v7784_v31 = vld [vmem:[%s10305_s3 + $0xd0] sm:$0xff]  }
  0x3b   :  { %7662 = vmatprep.mubr.bf16.mxu0 %v7729_v32  ;;  %7027 = vmatpush3.bf16.msra.mxu0 %v7788_v3 }
  0x3c   :  { %7028 = vmatprep.subr.bf16.mxu0 %v7790_v4 }
  0x3f   :  { %7029 = vmatpush3.bf16.msra.mxu0 %v7792_v5 }
  0x40   :  { %7058 = vmatprep.subr.bf16.mxu0 %v7794_v7 }
  0x42   :  { %7663 = vmatmul.mubr.bf16.gmra.mrb[16].mxu0 %v7730_v33  ;;  %v7787_v33 = vld [vmem:[%s10305_s3 + $0x90] sm:$0xff]  }
  0x43   :  { %7666 = vmatprep.mubr.bf16.mxu0 %v7731_v34 }
  0x4a   :  { %7667 = vmatmul.mubr.bf16.gmra.mrb[20].mxu0 %v7732_v35  ;;  %v7789_v35 = vld [vmem:[%s10305_s3 + $0xd8] sm:$0xff]  }
  0x4b   :  { %7670 = vmatprep.mubr.bf16.mxu0 %v7733_v36 }
  0x52   :  { %7671 = vmatmul.mubr.bf16.gmra.mrb[24].mxu0 %v7734_v37 }
  0x53   :  { %7674 = vmatprep.mubr.bf16.mxu0 %v7735_v38 }
  0x5a   :  { %7675 = vmatmul.mubr.bf16.gmra.mrb[28].mxu0 %v7736_v39 }
  0x5b   :  { %7678 = vmatprep.mubr.bf16.mxu0 %v7737_v40 }
  0x62   :  { %7679 = vmatmul.mubr.bf16.gmra.mrb[32].mxu0 %v7738_v41  ;;  %v7791_v41 = vld [vmem:[%s10305_s3 + $0x98] sm:$0xff]  }
  0x63   :  { %7682 = vmatprep.mubr.bf16.mxu0 %v7739_v42  ;;  %v7793_v42 = vld [vmem:[%s10305_s3 + $0xe0] sm:$0xff]  }
  0x6a   :  { %7683 = vmatmul.mubr.bf16.gmra.mrb[36].mxu0 %v7740_v43 }
  0x6b   :  { %7686 = vmatprep.mubr.bf16.mxu0 %v7741_v44 }
  0x72   :  { %7687 = vmatmul.mubr.bf16.gmra.mrb[40].mxu0 %v7743_v45  ;;  %v7795_v45 = vld [vmem:[%s10305_s3 + $0xa0] sm:$0xff]  }
  0x73   :  { %7690 = vmatprep.mubr.bf16.mxu0 %v7747_v46 }
  0x7a   :  { %7691 = vmatmul.mubr.bf16.gmra.mrb[44].mxu0 %v7749_v47  ;;  %v7796_v47 = vld [vmem:[%s10305_s3 + $0x300] sm:$0xff]  }
  0x7b   :  { %7694 = vmatprep.mubr.bf16.mxu0 %v7753_v49  ;;  %v7797_v49 = vld [vmem:[%s10305_s3 + $0xe8] sm:$0xff]  }
  0x82   :  { %7695 = vmatmul.mubr.bf16.gmra.mrb[48].mxu0 %v7756_v59 }
  0x83   :  { %7698 = vmatprep.mubr.bf16.mxu0 %v7763_v60  ;;  %v7803_v60 = vld [vmem:[%s10305_s3 + $0xb0] sm:$0xff]  }
  0x8a   :  { %7699 = vmatmul.mubr.bf16.gmra.mrb[52].mxu0 %v7766_v0 }
  0x8b   :  { %7702 = vmatprep.mubr.bf16.mxu0 %v7773_v2  ;;  %v7806_v2 = vld [vmem:[%s10305_s3 + $0x358] sm:$0xff]  }
  0x92   :  { %7703 = vmatmul.mubr.bf16.gmra.mrb[56].mxu0 %v7776_v6  ;;  %v7807_v6 = vld [vmem:[%s10305_s3 + $0xb8] sm:$0xff]  }
  0x93   :  { %7706 = vmatprep.mubr.bf16.mxu0 %v7783_v8  ;;  %v7808_v8 = vld [vmem:[%s10305_s3 + $0x318] sm:$0xff]  }
  0x9a   :  { %7707 = vmatmul.mubr.bf16.gmra.mrb[60].mxu0 %v7786_v9 }
  0xf5   :  { %v8552_v11 = vpop.f32.mrb[0].mxu0 }
  0xf6   :  { %v388_v12 = vpop.f32.mrb[1].mxu0  ;;  %v397_v0 = vadd.f32 %v8552_v11, %v8550_v10  ;;  %v7809_v11 = vld [vmem:[%s10305_s3 + $0x140] sm:$0xff]  }
  0xf7   :  { %v389_v13 = vadd.f32 %v8550_v10, %v388_v12  ;;  %v7649_v14 = vpop.f32.mrb[2].mxu0  ;;  %v7810_v12 = vld [vmem:[%s10305_s3 + $0x360] sm:$0xff]  }
  0xf8   :  { %v400_v15 = vadd.f32 %v7649_v14, %v8550_v10  ;;  %v391_v16 = vpop.f32.mrb[3].mxu0  ;;  %v645_v9 = vmax.f32 %v397_v0, 0.0  ;;  %v7811_v14 = vld [vmem:[%s10305_s3 + $0x100] sm:$0xff]   ;;  %v7833_v0 = vld [vmem:[%s10305_s3 + $0x170] sm:$0xff]  }
  0xf9   :  { %v392_v17 = vadd.f32 %v8550_v10, %v391_v16  ;;  %v643_v18 = vmax.f32 %v389_v13, 0.0  ;;  %v7813_v16 = vld [vmem:[%s10305_s3 + $0x148] sm:$0xff]  }
  0xfa   :  { %v646_v19 = vmax.f32 %v400_v15, 0.0  ;;  %v7812_v15 = vld [vmem:[%s10305_s3 + $0x320] sm:$0xff]  }
  0xfb   :  { %v644_v20 = vmax.f32 %v392_v17, 0.0  ;;  %v835_v24 = vpack.c.bf16 %v643_v18, %v643_v18  ;;  %v837_v18 = vpack.c.bf16 %v645_v9, %v645_v9 }
  0xfc   :  { %v838_v27 = vpack.c.bf16 %v646_v19, %v646_v19  ;;  %v7814_v19 = vld [vmem:[%s10305_s3 + $0x368] sm:$0xff]  }
  0xfd   :  { %v836_v21 = vpack.c.bf16 %v644_v20, %v644_v20  ;;  %v8560_v23 = vpop.f32.mrb[4].mxu0 }
  0xfe   :  { %v8562_v25 = vpop.f32.mrb[5].mxu0 }
  0xff   :  { %5034 = vmatprep.mubr.bf16.mxu1 %v836_v21  ;;  %v8567_v28 = vpop.f32.mrb[6].mxu0 }
 0x100   :  { %5035 = vmatmul.mubr.bf16.vlgmr.msra.gmra.mrb[0].mxu1 %v835_v24  ;;  %v407_v29 = vpop.f32.mrb[7].mxu0  ;;  %v7815_v24 = vld [vmem:[%s10305_s3 + $0x108] sm:$0xff]   ;;  %v416_v9 = vadd.f32 %v8567_v28, %v8550_v10  ;;  %v7842_v28 = vld [vmem:[%s10305_s3 + $0x460] sm:$0xff]  }
 0x101   :  { %6949 = vmatpush3.bf16.msra.mxu1 %v7777_v22  ;;  %5074 = vmatprep.mubr.bf16.mxu1 %v838_v27  ;;  %v408_v4 = vadd.f32 %v8550_v10, %v407_v29  ;;  %v7816_v27 = vld [vmem:[%s10305_s3 + $0x328] sm:$0xff]   ;;  %v7817_v29 = vld [vmem:[%s10305_s3 + $0x150] sm:$0xff]  }
 0x102   :  { %6950 = vmatprep.subr.bf16.mxu1 %v7779_v26 }
 0x103   :  { %v648_v13 = vmax.f32 %v408_v4, 0.0  ;;  %v7836_v4 = vld [vmem:[%s10305_s3 + $0x410] sm:$0xff]  }
 0x105   :  { %6951 = vmatpush3.bf16.msra.mxu1 %v7781_v30  ;;  %v8575_v32 = vpop.f32.mrb[8].mxu0  ;;  %v840_v21 = vpack.c.bf16 %v648_v13, %v648_v13  ;;  %v7818_v30 = vld [vmem:[%s10305_s3 + $0x370] sm:$0xff]   ;;  %v7841_v13 = vld [vmem:[%s10305_s3 + $0x1c0] sm:$0xff]  }
 0x106   :  { %v420_v34 = vpop.f32.mrb[9].mxu0  ;;  %6952 = vmatprep.subr.bf16.mxu1 %v7784_v31 }
 0x107   :  { %v421_v36 = vadd.f32 %v8550_v10, %v420_v34  ;;  %v8584_v37 = vpop.f32.mrb[10].mxu0  ;;  %v7820_v34 = vld [vmem:[%s10305_s3 + $0x330] sm:$0xff]  }
 0x108   :  { %v423_v38 = vpop.f32.mrb[11].mxu0 }
 0x109   :  { %v651_v39 = vmax.f32 %v421_v36, 0.0  ;;  %v424_v40 = vadd.f32 %v8550_v10, %v423_v38  ;;  %6953 = vmatpush3.bf16.msra.mxu1 %v7787_v33  ;;  %v7819_v33 = vld [vmem:[%s10305_s3 + $0x110] sm:$0xff]   ;;  %v7821_v36 = vld [vmem:[%s10305_s3 + $0x158] sm:$0xff]  }
 0x10a   :  { %6954 = vmatprep.subr.bf16.mxu1 %v7789_v35  ;;  %v7822_v38 = vld [vmem:[%s10305_s3 + $0x378] sm:$0xff]  }
 0x10b   :  { %v652_v43 = vmax.f32 %v424_v40, 0.0  ;;  %v843_v44 = vpack.c.bf16 %v651_v39, %v651_v39 }
 0x10d   :  { %v844_v46 = vpack.c.bf16 %v652_v43, %v652_v43  ;;  %6955 = vmatpush3.bf16.msra.mxu1 %v7791_v41  ;;  %v8599_v48 = vpop.f32.mrb[12].mxu0  ;;  %v7823_v43 = vld [vmem:[%s10305_s3 + $0x118] sm:$0xff]  }
 0x10e   :  { %6956 = vmatprep.subr.bf16.mxu1 %v7793_v42  ;;  %v8607_v51 = vpop.f32.mrb[13].mxu0 }
 0x10f   :  { %5194 = vmatprep.mubr.bf16.mxu0 %v844_v46  ;;  %v8609_v52 = vpop.f32.mrb[14].mxu0  ;;  %v437_v31 = vadd.f32 %v8550_v10, %v8607_v51  ;;  %v7825_v46 = vld [vmem:[%s10305_s3 + $0x160] sm:$0xff]  }
 0x110   :  { %5195 = vmatmul.mubr.bf16.vlgmr.msra.gmra.mrb[64].mxu0 %v843_v44  ;;  %v439_v54 = vpop.f32.mrb[15].mxu0  ;;  %v7827_v51 = vld [vmem:[%s10305_s3 + $0x120] sm:$0xff]  }
 0x111   :  { %6957 = vmatpush3.bf16.msra.mxu1 %v7795_v45  ;;  %7059 = vmatpush3.bf16.msra.mxu0 %v7796_v47  ;;  %v440_v56 = vadd.f32 %v8550_v10, %v439_v54  ;;  %v655_v42 = vmax.f32 %v437_v31, 0.0  ;;  %v7824_v45 = vld [vmem:[%s10305_s3 + $0x338] sm:$0xff]   ;;  %v7826_v47 = vld [vmem:[%s10305_s3 + $0x440] sm:$0xff]   ;;  %v7850_v31 = vld [vmem:[%s10305_s3 + $0x470] sm:$0xff]  }
 0x112   :  { %6958 = vmatprep.subr.bf16.mxu1 %v7797_v49  ;;  %7060 = vmatprep.subr.bf16.mxu0 %v7798_v50 }
 0x113   :  { %v656_v59 = vmax.f32 %v440_v56, 0.0  ;;  %v847_v50 = vpack.c.bf16 %v655_v42, %v655_v42  ;;  %v7830_v56 = vld [vmem:[%s10305_s3 + $0x448] sm:$0xff]  }
 0x115   :  { %6959 = vmatpush3.bf16.msra.mxu1 %v7799_v53  ;;  %7061 = vmatpush3.bf16.msra.mxu0 %v7800_v55  ;;  %v848_v62 = vpack.c.bf16 %v656_v59, %v656_v59  ;;  %v8630_v63 = vpop.f32.mrb[16].mxu0  ;;  %v7828_v53 = vld [vmem:[%s10305_s3 + $0x400] sm:$0xff]   ;;  %v7829_v55 = vld [vmem:[%s10305_s3 + $0x168] sm:$0xff]  }
 0x116   :  { %6960 = vmatprep.subr.bf16.mxu1 %v7801_v57  ;;  %7062 = vmatprep.subr.bf16.mxu0 %v7802_v58  ;;  %v8640_v3 = vpop.f32.mrb[17].mxu0 }
 0x117   :  { %5274 = vmatprep.mubr.bf16.mxu0 %v848_v62  ;;  %v8643_v5 = vpop.f32.mrb[18].mxu0  ;;  %v7832_v62 = vld [vmem:[%s10305_s3 + $0x408] sm:$0xff]  }
 0x118   :  { %v455_v7 = vpop.f32.mrb[19].mxu0 }
 0x119   :  { %6961 = vmatpush3.bf16.msra.mxu1 %v7803_v60  ;;  %7063 = vmatpush3.bf16.msra.mxu0 %v7804_v61  ;;  %v456_v40 = vadd.f32 %v8550_v10, %v455_v7  ;;  %v7831_v60 = vld [vmem:[%s10305_s3 + $0x128] sm:$0xff]   ;;  %v7837_v7 = vld [vmem:[%s10305_s3 + $0x178] sm:$0xff]  }
 0x11a   :  { %6962 = vmatprep.subr.bf16.mxu1 %v7805_v1  ;;  %7064 = vmatprep.subr.bf16.mxu0 %v7806_v2  ;;  %v7834_v1 = vld [vmem:[%s10305_s3 + $0x450] sm:$0xff]  }
 0x11b   :  { %v660_v49 = vmax.f32 %v456_v40, 0.0  ;;  %v7835_v2 = vld [vmem:[%s10305_s3 + $0x130] sm:$0xff]   ;;  %v7854_v40 = vld [vmem:[%s10305_s3 + $0x478] sm:$0xff]  }
 0x11d   :  { %6963 = vmatpush3.bf16.msra.mxu1 %v7807_v6  ;;  %7065 = vmatpush3.bf16.msra.mxu0 %v7808_v8  ;;  %v8666_v17 = vpop.f32.mrb[20].mxu0  ;;  %v852_v58 = vpack.c.bf16 %v660_v49, %v660_v49  ;;  %v405_v6 = vadd.f32 %v8550_v10, %v8562_v25  ;;  %v7838_v8 = vld [vmem:[%s10305_s3 + $0x458] sm:$0xff]  }
 0x11e   :  { %6970 = vmatprep.subr.bf16.mxu1 %v7809_v11  ;;  %7066 = vmatprep.subr.bf16.mxu0 %v7810_v12  ;;  %v8671_v20 = vpop.f32.mrb[21].mxu0  ;;  %v7839_v11 = vld [vmem:[%s10305_s3 + $0x138] sm:$0xff]  }
 0x11f   :  { %v8673_v22 = vpop.f32.mrb[22].mxu0  ;;  %v7840_v25 = vld [vmem:[%s10305_s3 + $0x418] sm:$0xff]   ;;  %v647_v12 = vmax.f32 %v405_v6, 0.0  ;;  %v7866_v6 = vld [vmem:[%s10305_s3 + $0x550] sm:$0xff]  }
 0x120   :  { %5075 = vmatmul.mubr.bf16.vlgmr.msra.gmra.mrb[4].mxu1 %v837_v18  ;;  %v8678_v26 = vpop.f32.mrb[23].mxu0  ;;  %v7845_v18 = vld [vmem:[%s10305_s3 + $0x1c8] sm:$0xff]  }
 0x121   :  { %6971 = vmatpush3.bf16.msra.mxu1 %v7811_v14  ;;  %7067 = vmatpush3.bf16.msra.mxu0 %v7812_v15  ;;  %v650_v14 = vmax.f32 %v416_v9, 0.0  ;;  %v7843_v15 = vld [vmem:[%s10305_s3 + $0x180] sm:$0xff]   ;;  %v7868_v9 = vld [vmem:[%s10305_s3 + $0x510] sm:$0xff]  }
 0x122   :  { %6972 = vmatprep.subr.bf16.mxu1 %v7813_v16  ;;  %7068 = vmatprep.subr.bf16.mxu0 %v7814_v19  ;;  %v7844_v16 = vld [vmem:[%s10305_s3 + $0x420] sm:$0xff]   ;;  %v839_v19 = vpack.c.bf16 %v647_v12, %v647_v12  ;;  %v7870_v12 = vld [vmem:[%s10305_s3 + $0x558] sm:$0xff]  }
 0x123   :  { %5114 = vmatprep.mubr.bf16.mxu1 %v840_v21  ;;  %v842_v21 = vpack.c.bf16 %v650_v14, %v650_v14 }
 0x125   :  { %6973 = vmatpush3.bf16.msra.mxu1 %v7815_v24  ;;  %7069 = vmatpush3.bf16.msra.mxu0 %v7816_v27  ;;  %v8697_v35 = vpop.f32.mrb[24].mxu0  ;;  %v7846_v24 = vld [vmem:[%s10305_s3 + $0x468] sm:$0xff]  }
 0x126   :  { %6974 = vmatprep.subr.bf16.mxu1 %v7817_v29  ;;  %7070 = vmatprep.subr.bf16.mxu0 %v7818_v30  ;;  %v8705_v39 = vpop.f32.mrb[25].mxu0  ;;  %v7847_v27 = vld [vmem:[%s10305_s3 + $0x188] sm:$0xff]   ;;  %v7849_v30 = vld [vmem:[%s10305_s3 + $0x1d0] sm:$0xff]  }
 0x127   :  { %v8708_v41 = vpop.f32.mrb[26].mxu0  ;;  %v7848_v29 = vld [vmem:[%s10305_s3 + $0x428] sm:$0xff]  }
 0x128   :  { %v8713_v44 = vpop.f32.mrb[27].mxu0 }
 0x129   :  { %6975 = vmatpush3.bf16.msra.mxu1 %v7819_v33  ;;  %7071 = vmatpush3.bf16.msra.mxu0 %v7820_v34  ;;  %v7851_v33 = vld [vmem:[%s10305_s3 + $0x190] sm:$0xff]  }
 0x12a   :  { %6976 = vmatprep.subr.bf16.mxu1 %v7821_v36  ;;  %7072 = vmatprep.subr.bf16.mxu0 %v7822_v38  ;;  %v7852_v34 = vld [vmem:[%s10305_s3 + $0x430] sm:$0xff]   ;;  %v453_v36 = vadd.f32 %v8550_v10, %v8640_v3  ;;  %v7853_v38 = vld [vmem:[%s10305_s3 + $0x1d8] sm:$0xff]   ;;  %v472_v3 = vadd.f32 %v8550_v10, %v8678_v26  ;;  %v7858_v26 = vld [vmem:[%s10305_s3 + $0x540] sm:$0xff]  }
 0x12c   :  { %v659_v49 = vmax.f32 %v453_v36, 0.0  ;;  %v7884_v36 = vld [vmem:[%s10305_s3 + $0x530] sm:$0xff]  }
 0x12d   :  { %6977 = vmatpush3.bf16.msra.mxu1 %v7823_v43  ;;  %7073 = vmatpush3.bf16.msra.mxu0 %v7824_v45  ;;  %v8730_v54 = vpop.f32.mrb[28].mxu0  ;;  %v7855_v43 = vld [vmem:[%s10305_s3 + $0x198] sm:$0xff]  }
 0x12e   :  { %6978 = vmatprep.subr.bf16.mxu1 %v7825_v46  ;;  %7102 = vmatprep.subr.bf16.mxu0 %v7826_v47  ;;  %v8738_v57 = vpop.f32.mrb[29].mxu0  ;;  %v7856_v46 = vld [vmem:[%s10305_s3 + $0x438] sm:$0xff]  }
 0x12f   :  { %v8740_v59 = vpop.f32.mrb[30].mxu0 }
 0x130   :  { %5275 = vmatmul.mubr.bf16.vlgmr.msra.gmra.mrb[68].mxu0 %v847_v50  ;;  %v8745_v61 = vpop.f32.mrb[31].mxu0 }
 0x131   :  { %6979 = vmatpush3.bf16.msra.mxu1 %v7827_v51  ;;  %7103 = vmatpush3.bf16.msra.mxu0 %v7828_v53  ;;  %v7857_v51 = vld [vmem:[%s10305_s3 + $0x1e0] sm:$0xff]  }
 0x132   :  { %6980 = vmatprep.subr.bf16.mxu1 %v7829_v55  ;;  %7104 = vmatprep.subr.bf16.mxu0 %v7830_v56  ;;  %v7859_v53 = vld [vmem:[%s10305_s3 + $0x1a0] sm:$0xff]   ;;  %v664_v55 = vmax.f32 %v472_v3, 0.0 }
 0x133   :  { %5354 = vmatprep.mubr.bf16.mxu0 %v852_v58  ;;  %v7860_v56 = vld [vmem:[%s10305_s3 + $0x500] sm:$0xff]   ;;  %v851_v58 = vpack.c.bf16 %v659_v49, %v659_v49 }
 0x135   :  { %6981 = vmatpush3.bf16.msra.mxu1 %v7831_v60  ;;  %7105 = vmatpush3.bf16.msra.mxu0 %v7832_v62  ;;  %v8822_v42 = vpop.f32.mrb[32].mxu0  ;;  %v7861_v60 = vld [vmem:[%s10305_s3 + $0x1e8] sm:$0xff]  }
 0x136   :  { %6982 = vmatprep.subr.bf16.mxu1 %v7833_v0  ;;  %7106 = vmatprep.subr.bf16.mxu0 %v7834_v1  ;;  %v8829_v45 = vpop.f32.mrb[33].mxu0  ;;  %v7862_v62 = vld [vmem:[%s10305_s3 + $0x548] sm:$0xff]   ;;  %v856_v1 = vpack.c.bf16 %v664_v55, %v664_v55 }
 0x137   :  { %v8834_v47 = vpop.f32.mrb[34].mxu0  ;;  %v7863_v0 = vld [vmem:[%s10305_s3 + $0x1a8] sm:$0xff]  }
 0x138   :  { %v8836_v50 = vpop.f32.mrb[35].mxu0 }
 0x139   :  { %6983 = vmatpush3.bf16.msra.mxu1 %v7835_v2  ;;  %7107 = vmatpush3.bf16.msra.mxu0 %v7836_v4  ;;  %v7864_v2 = vld [vmem:[%s10305_s3 + $0x508] sm:$0xff]   ;;  %v7865_v4 = vld [vmem:[%s10305_s3 + $0x1f0] sm:$0xff]  }
 0x13a   :  { %6984 = vmatprep.subr.bf16.mxu1 %v7837_v7  ;;  %7108 = vmatprep.subr.bf16.mxu0 %v7838_v8  ;;  %v7867_v7 = vld [vmem:[%s10305_s3 + $0x1b0] sm:$0xff]   ;;  %v432_v8 = vadd.f32 %v8584_v37, %v8550_v10  ;;  %v7871_v37 = vld [vmem:[%s10305_s3 + $0x1b8] sm:$0xff]  }
 0x13d   :  { %6985 = vmatpush3.bf16.msra.mxu1 %v7839_v11  ;;  %7109 = vmatpush3.bf16.msra.mxu0 %v7840_v25  ;;  %v7869_v11 = vld [vmem:[%s10305_s3 + $0x1f8] sm:$0xff]   ;;  %v413_v25 = vadd.f32 %v8560_v23, %v8550_v10  ;;  %v7873_v23 = vld [vmem:[%s10305_s3 + $0x2c0] sm:$0xff]   ;;  %v8934_v3 = vpop.f32.mrb[36].mxu0 }
 0x13e   :  { %6992 = vmatprep.subr.bf16.mxu1 %v7841_v13  ;;  %7110 = vmatprep.subr.bf16.mxu0 %v7842_v28  ;;  %v654_v13 = vmax.f32 %v432_v8, 0.0  ;;  %v7872_v28 = vld [vmem:[%s10305_s3 + $0x518] sm:$0xff]   ;;  %v8941_v49 = vpop.f32.mrb[37].mxu0  ;;  %v7898_v8 = vld [vmem:[%s10305_s3 + $0x650] sm:$0xff]  }
 0x13f   :  { %v649_v14 = vmax.f32 %v413_v25, 0.0 }
 0x140   :  { %5115 = vmatmul.mubr.bf16.vlgmr.msra.gmra.mrb[8].mxu1 %v839_v19  ;;  %v7877_v19 = vld [vmem:[%s10305_s3 + $0x2c8] sm:$0xff]  }
 0x141   :  { %6993 = vmatpush3.bf16.msra.mxu1 %v7843_v15  ;;  %5154 = vmatprep.mubr.bf16.mxu1 %v842_v21  ;;  %v7874_v15 = vld [vmem:[%s10305_s3 + $0x560] sm:$0xff]   ;;  %v846_v21 = vpack.c.bf16 %v654_v13, %v654_v13 }
 0x142   :  { %7111 = vmatpush3.bf16.msra.mxu0 %v7844_v16  ;;  %6994 = vmatprep.subr.bf16.mxu1 %v7845_v18  ;;  %v7875_v16 = vld [vmem:[%s10305_s3 + $0x280] sm:$0xff]  }
 0x143   :  { %7112 = vmatprep.subr.bf16.mxu0 %v7846_v24  ;;  %v7876_v18 = vld [vmem:[%s10305_s3 + $0x520] sm:$0xff]   ;;  %v841_v24 = vpack.c.bf16 %v649_v14, %v649_v14 }
 0x145   :  { %6995 = vmatpush3.bf16.msra.mxu1 %v7847_v27  ;;  %v7878_v27 = vld [vmem:[%s10305_s3 + $0x568] sm:$0xff]  }
 0x146   :  { %7113 = vmatpush3.bf16.msra.mxu0 %v7848_v29  ;;  %6996 = vmatprep.subr.bf16.mxu1 %v7849_v30  ;;  %v7879_v29 = vld [vmem:[%s10305_s3 + $0x288] sm:$0xff]  }
 0x147   :  { %7114 = vmatprep.subr.bf16.mxu0 %v7850_v31  ;;  %v7880_v30 = vld [vmem:[%s10305_s3 + $0x528] sm:$0xff]   ;;  %v7881_v31 = vld [vmem:[%s10305_s3 + $0x2d0] sm:$0xff]  }
 0x149   :  { %6997 = vmatpush3.bf16.msra.mxu1 %v7851_v33  ;;  %v7882_v33 = vld [vmem:[%s10305_s3 + $0x570] sm:$0xff]  }
 0x14a   :  { %7115 = vmatpush3.bf16.msra.mxu0 %v7852_v34  ;;  %6998 = vmatprep.subr.bf16.mxu1 %v7853_v38  ;;  %v7883_v34 = vld [vmem:[%s10305_s3 + $0x290] sm:$0xff]   ;;  %v469_v38 = vadd.f32 %v8550_v10, %v8671_v20  ;;  %v488_v20 = vadd.f32 %v8550_v10, %v8713_v44  ;;  %v7890_v10 = vld [vmem:[%s10305_s3 + $0x640] sm:$0xff]  }
 0x14b   :  { %7116 = vmatprep.subr.bf16.mxu0 %v7854_v40  ;;  %v7885_v40 = vld [vmem:[%s10305_s3 + $0x2d8] sm:$0xff]   ;;  %v7891_v44 = vld [vmem:[%s10305_s3 + $0x2a0] sm:$0xff]  }
 0x14d   :  { %6999 = vmatpush3.bf16.msra.mxu1 %v7855_v43  ;;  %v7886_v43 = vld [vmem:[%s10305_s3 + $0x578] sm:$0xff]  }
 0x14e   :  { %7117 = vmatpush3.bf16.msra.mxu0 %v7856_v46  ;;  %7000 = vmatprep.subr.bf16.mxu1 %v7857_v51  ;;  %v7887_v46 = vld [vmem:[%s10305_s3 + $0x298] sm:$0xff]  }
 0x14f   :  { %7146 = vmatprep.subr.bf16.mxu0 %v7858_v26  ;;  %v7888_v51 = vld [vmem:[%s10305_s3 + $0x538] sm:$0xff]   ;;  %v8946_v26 = vpop.f32.mrb[38].mxu0 }
 0x150   :  { %v8948_v55 = vpop.f32.mrb[39].mxu0 }
 0x151   :  { %7001 = vmatpush3.bf16.msra.mxu1 %v7859_v53  ;;  %5355 = vmatmul.mubr.bf16.vlgmr.msra.gmra.mrb[72].mxu0 %v851_v58  ;;  %v663_v53 = vmax.f32 %v469_v38, 0.0  ;;  %v668_v58 = vmax.f32 %v488_v20, 0.0  ;;  %v7916_v38 = vld [vmem:[%s10305_s3 + $0x630] sm:$0xff]   ;;  %v9051_v20 = vpop.f32.mrb[40].mxu0 }
 0x152   :  { %7147 = vmatpush3.bf16.msra.mxu0 %v7860_v56  ;;  %7002 = vmatprep.subr.bf16.mxu1 %v7861_v60  ;;  %v7889_v56 = vld [vmem:[%s10305_s3 + $0x2e0] sm:$0xff]  }
 0x153   :  { %7148 = vmatprep.subr.bf16.mxu0 %v7862_v62  ;;  %5434 = vmatprep.mubr.bf16.mxu0 %v856_v1  ;;  %v7892_v60 = vld [vmem:[%s10305_s3 + $0x600] sm:$0xff]   ;;  %v855_v62 = vpack.c.bf16 %v663_v53, %v663_v53  ;;  %v7894_v1 = vld [vmem:[%s10305_s3 + $0x648] sm:$0xff]   ;;  %v9058_v53 = vpop.f32.mrb[41].mxu0 }
 0x155   :  { %7003 = vmatpush3.bf16.msra.mxu1 %v7863_v0  ;;  %v7893_v0 = vld [vmem:[%s10305_s3 + $0x2e8] sm:$0xff]  }
 0x156   :  { %7149 = vmatpush3.bf16.msra.mxu0 %v7864_v2  ;;  %7004 = vmatprep.subr.bf16.mxu1 %v7865_v4  ;;  %v7895_v2 = vld [vmem:[%s10305_s3 + $0x2a8] sm:$0xff]   ;;  %v860_v4 = vpack.c.bf16 %v668_v58, %v668_v58 }
 0x157   :  { %7150 = vmatprep.subr.bf16.mxu0 %v7866_v6  ;;  %v7896_v6 = vld [vmem:[%s10305_s3 + $0x608] sm:$0xff]  }
 0x159   :  { %7005 = vmatpush3.bf16.msra.mxu1 %v7867_v7  ;;  %v7897_v7 = vld [vmem:[%s10305_s3 + $0x2f0] sm:$0xff]  }
 0x15a   :  { %7151 = vmatpush3.bf16.msra.mxu0 %v7868_v9  ;;  %7006 = vmatprep.subr.bf16.mxu1 %v7869_v11  ;;  %v7899_v9 = vld [vmem:[%s10305_s3 + $0x2b0] sm:$0xff]   ;;  %v8986_v11 = vld [vmem:[%s10304_s2] ss:$0 sm:$0xff] }
 0x15b   :  { %7152 = vmatprep.subr.bf16.mxu0 %v7870_v12  ;;  %v448_v25 = vadd.f32 %v8986_v11, %v8609_v52  ;;  %v7900_v12 = vld [vmem:[%s10305_s3 + $0x610] sm:$0xff]   ;;  %v429_v13 = vadd.f32 %v8986_v11, %v8575_v32  ;;  %v7903_v52 = vld [vmem:[%s10305_s3 + $0x2b8] sm:$0xff]   ;;  %v7905_v32 = vld [vmem:[%s10305_s3 + $0x3c0] sm:$0xff]  }
 0x15d   :  { %7007 = vmatpush3.bf16.msra.mxu1 %v7871_v37  ;;  %v7901_v37 = vld [vmem:[%s10305_s3 + $0x2f8] sm:$0xff]   ;;  %v658_v14 = vmax.f32 %v448_v25, 0.0  ;;  %v7929_v25 = vld [vmem:[%s10305_s3 + $0x3f0] sm:$0xff]  }
 0x15e   :  { %7153 = vmatpush3.bf16.msra.mxu0 %v7872_v28  ;;  %7036 = vmatprep.subr.bf16.mxu1 %v7873_v23  ;;  %v7902_v28 = vld [vmem:[%s10305_s3 + $0x658] sm:$0xff]  }
 0x15f   :  { %7154 = vmatprep.subr.bf16.mxu0 %v7874_v15  ;;  %v7904_v23 = vld [vmem:[%s10305_s3 + $0x618] sm:$0xff]   ;;  %v653_v15 = vmax.f32 %v429_v13, 0.0  ;;  %v464_v13 = vadd.f32 %v8986_v11, %v8643_v5 }
 0x160   :  { %5155 = vmatmul.mubr.bf16.vlgmr.msra.gmra.mrb[12].mxu1 %v841_v24  ;;  %v850_v24 = vpack.c.bf16 %v658_v14, %v658_v14  ;;  %v445_v14 = vadd.f32 %v8986_v11, %v8599_v48  ;;  %v7935_v5 = vld [vmem:[%s10305_s3 + $0x3b8] sm:$0xff]   ;;  %v7937_v48 = vld [vmem:[%s10305_s3 + $0x4c0] sm:$0xff]  }
 0x161   :  { %7037 = vmatpush3.bf16.msra.mxu1 %v7875_v16  ;;  %5234 = vmatprep.mubr.bf16.mxu1 %v846_v21  ;;  %v7906_v16 = vld [vmem:[%s10305_s3 + $0x660] sm:$0xff]   ;;  %v7909_v21 = vld [vmem:[%s10305_s3 + $0x3c8] sm:$0xff]  }
 0x162   :  { %7155 = vmatpush3.bf16.msra.mxu0 %v7876_v18  ;;  %7038 = vmatprep.subr.bf16.mxu1 %v7877_v19  ;;  %v7907_v18 = vld [vmem:[%s10305_s3 + $0x380] sm:$0xff]  }
 0x163   :  { %7156 = vmatprep.subr.bf16.mxu0 %v7878_v27  ;;  %v7908_v19 = vld [vmem:[%s10305_s3 + $0x620] sm:$0xff]   ;;  %v845_v27 = vpack.c.bf16 %v653_v15, %v653_v15  ;;  %v662_v15 = vmax.f32 %v464_v13, 0.0 }
 0x165   :  { %7039 = vmatpush3.bf16.msra.mxu1 %v7879_v29  ;;  %v7910_v29 = vld [vmem:[%s10305_s3 + $0x668] sm:$0xff]  }
 0x166   :  { %7157 = vmatpush3.bf16.msra.mxu0 %v7880_v30  ;;  %7040 = vmatprep.subr.bf16.mxu1 %v7881_v31  ;;  %v7911_v30 = vld [vmem:[%s10305_s3 + $0x388] sm:$0xff]  }
 0x167   :  { %7158 = vmatprep.subr.bf16.mxu0 %v7882_v33  ;;  %v7912_v31 = vld [vmem:[%s10305_s3 + $0x628] sm:$0xff]   ;;  %v7913_v33 = vld [vmem:[%s10305_s3 + $0x3d0] sm:$0xff]  }
 0x169   :  { %7041 = vmatpush3.bf16.msra.mxu1 %v7883_v34  ;;  %v7914_v34 = vld [vmem:[%s10305_s3 + $0x670] sm:$0xff]  }
 0x16a   :  { %7159 = vmatpush3.bf16.msra.mxu0 %v7884_v36  ;;  %7042 = vmatprep.subr.bf16.mxu1 %v7885_v40  ;;  %v7915_v36 = vld [vmem:[%s10305_s3 + $0x390] sm:$0xff]   ;;  %v485_v40 = vadd.f32 %v8986_v11, %v8705_v39  ;;  %v504_v39 = vadd.f32 %v8986_v11, %v8745_v61  ;;  %v7922_v61 = vld [vmem:[%s10305_s3 + $0x740] sm:$0xff]  }
 0x16b   :  { %7160 = vmatprep.subr.bf16.mxu0 %v7886_v43  ;;  %v7917_v43 = vld [vmem:[%s10305_s3 + $0x3d8] sm:$0xff]  }
 0x16d   :  { %7043 = vmatpush3.bf16.msra.mxu1 %v7887_v46  ;;  %v7918_v46 = vld [vmem:[%s10305_s3 + $0x678] sm:$0xff]  }
 0x16e   :  { %7161 = vmatpush3.bf16.msra.mxu0 %v7888_v51  ;;  %7044 = vmatprep.subr.bf16.mxu1 %v7889_v56  ;;  %v7919_v51 = vld [vmem:[%s10305_s3 + $0x398] sm:$0xff]  }
 0x16f   :  { %7190 = vmatprep.subr.bf16.mxu0 %v7890_v10  ;;  %v7920_v56 = vld [vmem:[%s10305_s3 + $0x638] sm:$0xff]   ;;  %v9063_v10 = vpop.f32.mrb[42].mxu0 }
 0x170   :  { %v9065_v58 = vpop.f32.mrb[43].mxu0 }
 0x171   :  { %7045 = vmatpush3.bf16.msra.mxu1 %v7891_v44  ;;  %5435 = vmatmul.mubr.bf16.vlgmr.msra.gmra.mrb[76].mxu0 %v855_v62  ;;  %v667_v44 = vmax.f32 %v485_v40, 0.0  ;;  %v7923_v62 = vld [vmem:[%s10305_s3 + $0x3a0] sm:$0xff]   ;;  %v7946_v40 = vld [vmem:[%s10305_s3 + $0x770] sm:$0xff]  }
 0x172   :  { %7191 = vmatpush3.bf16.msra.mxu0 %v7892_v60  ;;  %7046 = vmatprep.subr.bf16.mxu1 %v7893_v0  ;;  %v7921_v60 = vld [vmem:[%s10305_s3 + $0x3e0] sm:$0xff]   ;;  %v672_v0 = vmax.f32 %v504_v39, 0.0  ;;  %v7947_v39 = vld [vmem:[%s10305_s3 + $0x490] sm:$0xff]  }
 0x173   :  { %7192 = vmatprep.subr.bf16.mxu0 %v7894_v1  ;;  %5514 = vmatprep.mubr.bf16.mxu0 %v860_v4  ;;  %v7924_v1 = vld [vmem:[%s10305_s3 + $0x700] sm:$0xff]   ;;  %v7925_v4 = vld [vmem:[%s10305_s3 + $0x3e8] sm:$0xff]  }
 0x175   :  { %7047 = vmatpush3.bf16.msra.mxu1 %v7895_v2  ;;  %v859_v2 = vpack.c.bf16 %v667_v44, %v667_v44  ;;  %v7948_v44 = vld [vmem:[%s10305_s3 + $0x730] sm:$0xff]  }
 0x176   :  { %7193 = vmatpush3.bf16.msra.mxu0 %v7896_v6  ;;  %7048 = vmatprep.subr.bf16.mxu1 %v7897_v7  ;;  %v7926_v6 = vld [vmem:[%s10305_s3 + $0x748] sm:$0xff]  }
 0x177   :  { %7194 = vmatprep.subr.bf16.mxu0 %v7898_v8  ;;  %v7927_v7 = vld [vmem:[%s10305_s3 + $0x3a8] sm:$0xff]   ;;  %v864_v8 = vpack.c.bf16 %v672_v0, %v672_v0 }
 0x179   :  { %7049 = vmatpush3.bf16.msra.mxu1 %v7899_v9  ;;  %v7928_v9 = vld [vmem:[%s10305_s3 + $0x708] sm:$0xff]  }
 0x17a   :  { %7195 = vmatpush3.bf16.msra.mxu0 %v7900_v12  ;;  %7050 = vmatprep.subr.bf16.mxu1 %v7901_v37  ;;  %v7930_v12 = vld [vmem:[%s10305_s3 + $0x750] sm:$0xff]  }
 0x17b   :  { %7196 = vmatprep.subr.bf16.mxu0 %v7902_v28  ;;  %v7931_v37 = vld [vmem:[%s10305_s3 + $0x3b0] sm:$0xff]  }
 0x17c   :  { %v7932_v28 = vld [vmem:[%s10305_s3 + $0x710] sm:$0xff]  }
 0x17d   :  { %7051 = vmatpush3.bf16.msra.mxu1 %v7903_v52  ;;  %v7933_v52 = vld [vmem:[%s10305_s3 + $0x3f8] sm:$0xff]  }
 0x17e   :  { %7197 = vmatpush3.bf16.msra.mxu0 %v7904_v23  ;;  %7080 = vmatprep.subr.bf16.mxu1 %v7905_v32  ;;  %v7934_v23 = vld [vmem:[%s10305_s3 + $0x758] sm:$0xff]  }
 0x17f   :  { %7198 = vmatprep.subr.bf16.mxu0 %v7906_v16  ;;  %v7936_v32 = vld [vmem:[%s10305_s3 + $0x718] sm:$0xff]   ;;  %v657_v16 = vmax.f32 %v445_v14, 0.0  ;;  %v7956_v14 = vld [vmem:[%s10305_s3 + $0x800] sm:$0xff]  }
 0x180   :  { %5235 = vmatmul.mubr.bf16.vlgmr.msra.gmra.mrb[16].mxu1 %v845_v27  ;;  %v854_v27 = vpack.c.bf16 %v662_v15, %v662_v15  ;;  %v7958_v15 = vld [vmem:[%s10305_s3 + $0x848] sm:$0xff]  }
 0x181   :  { %7081 = vmatpush3.bf16.msra.mxu1 %v7907_v18  ;;  %5314 = vmatprep.mubr.bf16.mxu1 %v850_v24  ;;  %v7938_v18 = vld [vmem:[%s10305_s3 + $0x760] sm:$0xff]   ;;  %v7941_v24 = vld [vmem:[%s10305_s3 + $0x4c8] sm:$0xff]  }
 0x182   :  { %7199 = vmatpush3.bf16.msra.mxu0 %v7908_v19  ;;  %7082 = vmatprep.subr.bf16.mxu1 %v7909_v21  ;;  %v7939_v19 = vld [vmem:[%s10305_s3 + $0x480] sm:$0xff]  }
 0x183   :  { %7200 = vmatprep.subr.bf16.mxu0 %v7910_v29  ;;  %v7940_v21 = vld [vmem:[%s10305_s3 + $0x720] sm:$0xff]   ;;  %v849_v29 = vpack.c.bf16 %v657_v16, %v657_v16 }
 0x185   :  { %7083 = vmatpush3.bf16.msra.mxu1 %v7911_v30  ;;  %v7942_v30 = vld [vmem:[%s10305_s3 + $0x768] sm:$0xff]  }
 0x186   :  { %7201 = vmatpush3.bf16.msra.mxu0 %v7912_v31  ;;  %7084 = vmatprep.subr.bf16.mxu1 %v7913_v33  ;;  %v7943_v31 = vld [vmem:[%s10305_s3 + $0x488] sm:$0xff]   ;;  %v9140_v33 = vpop.f32.mrb[44].mxu0 }
 0x187   :  { %7202 = vmatprep.subr.bf16.mxu0 %v7914_v34  ;;  %v7944_v34 = vld [vmem:[%s10305_s3 + $0x728] sm:$0xff]  }
 0x189   :  { %7085 = vmatpush3.bf16.msra.mxu1 %v7915_v36  ;;  %v7945_v36 = vld [vmem:[%s10305_s3 + $0x4d0] sm:$0xff]  }
 0x18a   :  { %7203 = vmatpush3.bf16.msra.mxu0 %v7916_v38  ;;  %7086 = vmatprep.subr.bf16.mxu1 %v7917_v43  ;;  %v9148_v38 = vpop.f32.mrb[45].mxu0 }
 0x18b   :  { %7204 = vmatprep.subr.bf16.mxu0 %v7918_v46  ;;  %v9153_v43 = vpop.f32.mrb[46].mxu0 }
 0x18c   :  { %v9155_v46 = vpop.f32.mrb[47].mxu0 }
 0x18d   :  { %7087 = vmatpush3.bf16.msra.mxu1 %v7919_v51  ;;  %v501_v51 = vadd.f32 %v8986_v11, %v8738_v57  ;;  %v7950_v57 = vld [vmem:[%s10305_s3 + $0x778] sm:$0xff]  }
 0x18e   :  { %7205 = vmatpush3.bf16.msra.mxu0 %v7920_v56  ;;  %7088 = vmatprep.subr.bf16.mxu1 %v7921_v60  ;;  %v9162_v56 = vpop.f32.mrb[48].mxu0  ;;  %v7949_v60 = vld [vmem:[%s10305_s3 + $0x4d8] sm:$0xff]  }
 0x18f   :  { %7234 = vmatprep.subr.bf16.mxu0 %v7922_v61  ;;  %v9170_v61 = vpop.f32.mrb[49].mxu0 }
 0x190   :  { %v9177_v0 = vpop.f32.mrb[50].mxu0 }
 0x191   :  { %7089 = vmatpush3.bf16.msra.mxu1 %v7923_v62  ;;  %5515 = vmatmul.mubr.bf16.vlgmr.msra.gmra.mrb[80].mxu0 %v859_v2  ;;  %v520_v62 = vadd.f32 %v8986_v11, %v8836_v50  ;;  %v9182_v2 = vpop.f32.mrb[51].mxu0  ;;  %v7953_v50 = vld [vmem:[%s10305_s3 + $0x4e0] sm:$0xff]  }
 0x192   :  { %7235 = vmatpush3.bf16.msra.mxu0 %v7924_v1  ;;  %7090 = vmatprep.subr.bf16.mxu1 %v7925_v4  ;;  %v7951_v1 = vld [vmem:[%s10305_s3 + $0x498] sm:$0xff]   ;;  %v671_v4 = vmax.f32 %v501_v51, 0.0  ;;  %v461_v51 = vadd.f32 %v8986_v11, %v8630_v63 }
 0x193   :  { %7236 = vmatprep.subr.bf16.mxu0 %v7926_v6  ;;  %5594 = vmatprep.mubr.bf16.mxu0 %v864_v8  ;;  %v9184_v6 = vpop.f32.mrb[52].mxu0  ;;  %v7968_v63 = vld [vmem:[%s10305_s3 + $0x818] sm:$0xff]  }
 0x194   :  { %v9192_v8 = vpop.f32.mrb[53].mxu0  ;;  %v863_v13 = vpack.c.bf16 %v671_v4, %v671_v4  ;;  %v7971_v4 = vld [vmem:[%s10305_s3 + $0x580] sm:$0xff]  }
 0x195   :  { %7091 = vmatpush3.bf16.msra.mxu1 %v7927_v7  ;;  %v7952_v7 = vld [vmem:[%s10305_s3 + $0x738] sm:$0xff]  }
 0x196   :  { %7237 = vmatpush3.bf16.msra.mxu0 %v7928_v9  ;;  %7092 = vmatprep.subr.bf16.mxu1 %v7929_v25  ;;  %v7954_v9 = vld [vmem:[%s10305_s3 + $0x840] sm:$0xff]   ;;  %v676_v25 = vmax.f32 %v520_v62, 0.0 }
 0x197   :  { %7238 = vmatprep.subr.bf16.mxu0 %v7930_v12  ;;  %v9197_v12 = vpop.f32.mrb[54].mxu0  ;;  %v7969_v62 = vld [vmem:[%s10305_s3 + $0x5c0] sm:$0xff]  }
 0x199   :  { %7093 = vmatpush3.bf16.msra.mxu1 %v7931_v37  ;;  %v9199_v37 = vpop.f32.mrb[55].mxu0 }
 0x19a   :  { %7239 = vmatpush3.bf16.msra.mxu0 %v7932_v28  ;;  %7094 = vmatprep.subr.bf16.mxu1 %v7933_v52  ;;  %v7955_v28 = vld [vmem:[%s10305_s3 + $0x4a0] sm:$0xff]   ;;  %v9204_v52 = vpop.f32.mrb[56].mxu0 }
 0x19b   :  { %7240 = vmatprep.subr.bf16.mxu0 %v7934_v23  ;;  %v7957_v23 = vld [vmem:[%s10305_s3 + $0x4e8] sm:$0xff]  }
 0x19d   :  { %7095 = vmatpush3.bf16.msra.mxu1 %v7935_v5  ;;  %v9212_v5 = vpop.f32.mrb[57].mxu0 }
 0x19e   :  { %7241 = vmatpush3.bf16.msra.mxu0 %v7936_v32  ;;  %7124 = vmatprep.subr.bf16.mxu1 %v7937_v48  ;;  %v868_v32 = vpack.c.bf16 %v676_v25, %v676_v25  ;;  %v9217_v16 = vpop.f32.mrb[58].mxu0  ;;  %v7959_v48 = vld [vmem:[%s10305_s3 + $0x4a8] sm:$0xff]  }
 0x19f   :  { %7242 = vmatprep.subr.bf16.mxu0 %v7938_v18  ;;  %v9222_v18 = vpop.f32.mrb[59].mxu0 }
 0x1a0   :  { %5315 = vmatmul.mubr.bf16.vlgmr.msra.gmra.mrb[20].mxu1 %v849_v29  ;;  %v7962_v29 = vld [vmem:[%s10305_s3 + $0x850] sm:$0xff]  }
 0x1a1   :  { %7125 = vmatpush3.bf16.msra.mxu1 %v7939_v19  ;;  %5394 = vmatprep.mubr.bf16.mxu1 %v854_v27  ;;  %v7960_v19 = vld [vmem:[%s10305_s3 + $0x808] sm:$0xff]  }
 0x1a2   :  { %7243 = vmatpush3.bf16.msra.mxu0 %v7940_v21  ;;  %7126 = vmatprep.subr.bf16.mxu1 %v7941_v24  ;;  %v9227_v21 = vpop.f32.mrb[60].mxu0  ;;  %v7961_v24 = vld [vmem:[%s10305_s3 + $0x4f0] sm:$0xff]  }
 0x1a3   :  { %7244 = vmatprep.subr.bf16.mxu0 %v7942_v30  ;;  %v9232_v27 = vpop.f32.mrb[61].mxu0 }
 0x1a4   :  { %v9237_v30 = vpop.f32.mrb[62].mxu0 }
 0x1a5   :  { %7127 = vmatpush3.bf16.msra.mxu1 %v7943_v31  ;;  %v480_v31 = vadd.f32 %v8986_v11, %v8673_v22  ;;  %v7965_v22 = vld [vmem:[%s10305_s3 + $0x4f8] sm:$0xff]  }
 0x1a6   :  { %7245 = vmatpush3.bf16.msra.mxu0 %v7944_v34  ;;  %7128 = vmatprep.subr.bf16.mxu1 %v7945_v36  ;;  %v7963_v34 = vld [vmem:[%s10305_s3 + $0x4b0] sm:$0xff]   ;;  %v9244_v36 = vpop.f32.mrb[63].mxu0 }
 0x1a7   :  { %7246 = vmatprep.subr.bf16.mxu0 %v7946_v40  ;;  %v7964_v40 = vld [vmem:[%s10305_s3 + $0x810] sm:$0xff]  }
 0x1a9   :  { %7129 = vmatpush3.bf16.msra.mxu1 %v7947_v39  ;;  %v7966_v39 = vld [vmem:[%s10305_s3 + $0x858] sm:$0xff]  }
 0x1aa   :  { %7247 = vmatpush3.bf16.msra.mxu0 %v7948_v44  ;;  %7130 = vmatprep.subr.bf16.mxu1 %v7949_v60  ;;  %v666_v44 = vmax.f32 %v480_v31, 0.0  ;;  %v7967_v60 = vld [vmem:[%s10305_s3 + $0x4b8] sm:$0xff]   ;;  %v536_v31 = vadd.f32 %v8986_v11, %v8948_v55  ;;  %v7987_v55 = vld [vmem:[%s10305_s3 + $0x5a0] sm:$0xff]  }
 0x1ab   :  { %7248 = vmatprep.subr.bf16.mxu0 %v7950_v57  ;;  %v661_v57 = vmax.f32 %v461_v51, 0.0  ;;  %v7985_v51 = vld [vmem:[%s10305_s3 + $0x5e0] sm:$0xff]  }
 0x1ad   :  { %7131 = vmatpush3.bf16.msra.mxu1 %v7951_v1  ;;  %v7970_v1 = vld [vmem:[%s10305_s3 + $0x860] sm:$0xff]   ;;  %v853_v25 = vpack.c.bf16 %v661_v57, %v661_v57  ;;  %v7990_v57 = vld [vmem:[%s10305_s3 + $0x948] sm:$0xff]  }
 0x1ae   :  { %7249 = vmatpush3.bf16.msra.mxu0 %v7952_v7  ;;  %7132 = vmatprep.subr.bf16.mxu1 %v7953_v50  ;;  %v7972_v7 = vld [vmem:[%s10305_s3 + $0x820] sm:$0xff]   ;;  %v7973_v50 = vld [vmem:[%s10305_s3 + $0x5c8] sm:$0xff]  }
 0x1af   :  { %7278 = vmatprep.subr.bf16.mxu0 %v7954_v9  ;;  %v858_v9 = vpack.c.bf16 %v666_v44, %v666_v44  ;;  %v7988_v44 = vld [vmem:[%s10305_s3 + $0x900] sm:$0xff]  }
 0x1b1   :  { %7133 = vmatpush3.bf16.msra.mxu1 %v7955_v28  ;;  %5595 = vmatmul.mubr.bf16.vlgmr.msra.gmra.mrb[84].mxu0 %v863_v13  ;;  %v7974_v13 = vld [vmem:[%s10305_s3 + $0x868] sm:$0xff]  }
 0x1b2   :  { %7279 = vmatpush3.bf16.msra.mxu0 %v7956_v14  ;;  %7134 = vmatprep.subr.bf16.mxu1 %v7957_v23  ;;  %v7975_v28 = vld [vmem:[%s10305_s3 + $0x588] sm:$0xff]   ;;  %v7977_v23 = vld [vmem:[%s10305_s3 + $0x5d0] sm:$0xff]  }
 0x1b3   :  { %7280 = vmatprep.subr.bf16.mxu0 %v7958_v15  ;;  %5674 = vmatprep.mubr.bf16.mxu0 %v868_v32  ;;  %v7976_v14 = vld [vmem:[%s10305_s3 + $0x828] sm:$0xff]   ;;  %v7978_v15 = vld [vmem:[%s10305_s3 + $0x870] sm:$0xff]  }
 0x1b4   :  { %v7979_v32 = vld [vmem:[%s10305_s3 + $0x590] sm:$0xff]  }
 0x1b5   :  { %7135 = vmatpush3.bf16.msra.mxu1 %v7959_v48  ;;  %v517_v48 = vadd.f32 %v8986_v11, %v8829_v45  ;;  %v7983_v45 = vld [vmem:[%s10305_s3 + $0x598] sm:$0xff]  }
 0x1b6   :  { %7281 = vmatpush3.bf16.msra.mxu0 %v7960_v19  ;;  %7136 = vmatprep.subr.bf16.mxu1 %v7961_v24  ;;  %v7980_v19 = vld [vmem:[%s10305_s3 + $0x830] sm:$0xff]   ;;  %v7981_v24 = vld [vmem:[%s10305_s3 + $0x5d8] sm:$0xff]  }
 0x1b7   :  { %7282 = vmatprep.subr.bf16.mxu0 %v7962_v29  ;;  %v7982_v29 = vld [vmem:[%s10305_s3 + $0x878] sm:$0xff]  }
 0x1b9   :  { %7137 = vmatpush3.bf16.msra.mxu1 %v7963_v34  ;;  %v675_v34 = vmax.f32 %v517_v48, 0.0 }
 0x1ba   :  { %7283 = vmatpush3.bf16.msra.mxu0 %v7964_v40  ;;  %7138 = vmatprep.subr.bf16.mxu1 %v7965_v22  ;;  %v7984_v40 = vld [vmem:[%s10305_s3 + $0x838] sm:$0xff]   ;;  %v7986_v22 = vld [vmem:[%s10305_s3 + $0x940] sm:$0xff]  }
 0x1bb   :  { %7284 = vmatprep.subr.bf16.mxu0 %v7966_v39  ;;  %v680_v39 = vmax.f32 %v536_v31, 0.0  ;;  %v8002_v31 = vld [vmem:[%s10305_s3 + $0x960] sm:$0xff]  }
 0x1bd   :  { %7139 = vmatpush3.bf16.msra.mxu1 %v7967_v60  ;;  %v7989_v60 = vld [vmem:[%s10305_s3 + $0x5e8] sm:$0xff]  }
 0x1be   :  { %7285 = vmatpush3.bf16.msra.mxu0 %v7968_v63  ;;  %7168 = vmatprep.subr.bf16.mxu1 %v7969_v62  ;;  %v867_v63 = vpack.c.bf16 %v675_v34, %v675_v34  ;;  %v7991_v62 = vld [vmem:[%s10305_s3 + $0x5a8] sm:$0xff]   ;;  %v8003_v34 = vld [vmem:[%s10305_s3 + $0x680] sm:$0xff]  }
 0x1bf   :  { %7286 = vmatprep.subr.bf16.mxu0 %v7970_v1  ;;  %v872_v1 = vpack.c.bf16 %v680_v39, %v680_v39  ;;  %v8006_v39 = vld [vmem:[%s10305_s3 + $0x968] sm:$0xff]  }
 0x1c0   :  { %5395 = vmatmul.mubr.bf16.vlgmr.msra.gmra.mrb[24].mxu1 %v853_v25  ;;  %v496_v25 = vadd.f32 %v8986_v11, %v8708_v41  ;;  %v7997_v41 = vld [vmem:[%s10305_s3 + $0x5f8] sm:$0xff]  }
 0x1c1   :  { %7169 = vmatpush3.bf16.msra.mxu1 %v7971_v4  ;;  %5474 = vmatprep.mubr.bf16.mxu1 %v858_v9  ;;  %v7992_v4 = vld [vmem:[%s10305_s3 + $0x908] sm:$0xff]   ;;  %v7994_v9 = vld [vmem:[%s10305_s3 + $0x950] sm:$0xff]  }
 0x1c2   :  { %7287 = vmatpush3.bf16.msra.mxu0 %v7972_v7  ;;  %7170 = vmatprep.subr.bf16.mxu1 %v7973_v50  ;;  %v7993_v7 = vld [vmem:[%s10305_s3 + $0x5f0] sm:$0xff]  }
 0x1c3   :  { %7288 = vmatprep.subr.bf16.mxu0 %v7974_v13 }
 0x1c5   :  { %7171 = vmatpush3.bf16.msra.mxu1 %v7975_v28  ;;  %v7995_v28 = vld [vmem:[%s10305_s3 + $0x5b0] sm:$0xff]  }
 0x1c6   :  { %7289 = vmatpush3.bf16.msra.mxu0 %v7976_v14  ;;  %7172 = vmatprep.subr.bf16.mxu1 %v7977_v23 }
 0x1c7   :  { %7290 = vmatprep.subr.bf16.mxu0 %v7978_v15  ;;  %v7996_v15 = vld [vmem:[%s10305_s3 + $0x910] sm:$0xff]  }
 0x1c9   :  { %7173 = vmatpush3.bf16.msra.mxu1 %v7979_v32  ;;  %v477_v32 = vadd.f32 %v8986_v11, %v8666_v17  ;;  %v8000_v17 = vld [vmem:[%s10305_s3 + $0x918] sm:$0xff]  }
 0x1ca   :  { %7291 = vmatpush3.bf16.msra.mxu0 %v7980_v19  ;;  %7174 = vmatprep.subr.bf16.mxu1 %v7981_v24  ;;  %v7998_v19 = vld [vmem:[%s10305_s3 + $0x958] sm:$0xff]   ;;  %v670_v24 = vmax.f32 %v496_v25, 0.0 }
 0x1cb   :  { %7292 = vmatprep.subr.bf16.mxu0 %v7982_v29  ;;  %v7999_v29 = vld [vmem:[%s10305_s3 + $0x5b8] sm:$0xff]   ;;  %v665_v11 = vmax.f32 %v477_v32, 0.0 }
 0x1cd   :  { %7175 = vmatpush3.bf16.msra.mxu1 %v7983_v45  ;;  %v8001_v45 = vld [vmem:[%s10305_s3 + $0x6c0] sm:$0xff]  }
 0x1ce   :  { %7293 = vmatpush3.bf16.msra.mxu0 %v7984_v40  ;;  %7176 = vmatprep.subr.bf16.mxu1 %v7985_v51  ;;  %v8004_v40 = vld [vmem:[%s10305_s3 + $0x920] sm:$0xff]   ;;  %v8005_v51 = vld [vmem:[%s10305_s3 + $0x6c8] sm:$0xff]  }
 0x1cf   :  { %7322 = vmatprep.subr.bf16.mxu0 %v7986_v22  ;;  %v862_v22 = vpack.c.bf16 %v670_v24, %v670_v24  ;;  %v8018_v24 = vld [vmem:[%s10305_s3 + $0xa40] sm:$0xff]  }
 0x1d1   :  { %7177 = vmatpush3.bf16.msra.mxu1 %v7987_v55  ;;  %5675 = vmatmul.mubr.bf16.vlgmr.msra.gmra.mrb[88].mxu0 %v867_v63  ;;  %v857_v55 = vpack.c.bf16 %v665_v11, %v665_v11  ;;  %v8009_v63 = vld [vmem:[%s10305_s3 + $0x6d0] sm:$0xff]   ;;  %v8021_v11 = vld [vmem:[%s10305_s3 + $0x6e8] sm:$0xff]  }
 0x1d2   :  { %7323 = vmatpush3.bf16.msra.mxu0 %v7988_v44  ;;  %7178 = vmatprep.subr.bf16.mxu1 %v7989_v60  ;;  %v8007_v44 = vld [vmem:[%s10305_s3 + $0x688] sm:$0xff]  }
 0x1d3   :  { %v6942_v50 = vpop.f32.mrb[0].mxu1  ;;  %7324 = vmatprep.subr.bf16.mxu0 %v7990_v57  ;;  %5754 = vmatprep.mubr.bf16.mxu0 %v872_v1  ;;  %v8008_v60 = vld [vmem:[%s10305_s3 + $0x928] sm:$0xff]   ;;  %v8010_v57 = vld [vmem:[%s10305_s3 + $0x970] sm:$0xff]   ;;  %v9402_v1 = vld [vmem:[%s10304_s2] ss:$0 sm:$0xff] }
 0x1d4   :  { %v6943_v13 = vpop.f32.mrb[1].mxu1  ;;  %v552_v32 = vadd.f32 %v9402_v1, %v9065_v58  ;;  %v8019_v58 = vld [vmem:[%s10305_s3 + $0x6a0] sm:$0xff]  }
 0x1d5   :  { %v9350_v14 = vadd.f32 %v6943_v13, %v6942_v50  ;;  %7179 = vmatpush3.bf16.msra.mxu1 %v7991_v62  ;;  %v6945_v23 = vpop.f32.mrb[2].mxu1 }
 0x1d6   :  { %7325 = vmatpush3.bf16.msra.mxu0 %v7992_v4  ;;  %v6946_v48 = vpop.f32.mrb[3].mxu1  ;;  %7180 = vmatprep.subr.bf16.mxu1 %v7993_v7  ;;  %v533_v4 = vadd.f32 %v9402_v1, %v8941_v49  ;;  %v8011_v7 = vld [vmem:[%s10305_s3 + $0x690] sm:$0xff]   ;;  %v8014_v49 = vld [vmem:[%s10305_s3 + $0x978] sm:$0xff]  }
 0x1d7   :  { %7326 = vmatprep.subr.bf16.mxu0 %v7994_v9  ;;  %v8012_v9 = vld [vmem:[%s10305_s3 + $0x930] sm:$0xff]  }
 0x1d8   :  { %v679_v48 = vmax.f32 %v533_v4, 0.0 }
 0x1d9   :  { %7181 = vmatpush3.bf16.msra.mxu1 %v7995_v28  ;;  %v8013_v28 = vld [vmem:[%s10305_s3 + $0x6d8] sm:$0xff]  }
 0x1da   :  { %7327 = vmatpush3.bf16.msra.mxu0 %v7996_v15  ;;  %7182 = vmatprep.subr.bf16.mxu1 %v7997_v41  ;;  %v8015_v15 = vld [vmem:[%s10305_s3 + $0x698] sm:$0xff]  }
 0x1db   :  { %7328 = vmatprep.subr.bf16.mxu0 %v7998_v19  ;;  %v8016_v41 = vld [vmem:[%s10305_s3 + $0x938] sm:$0xff]   ;;  %v8017_v19 = vld [vmem:[%s10305_s3 + $0x6e0] sm:$0xff]  }
 0x1dd   :  { %7183 = vmatpush3.bf16.msra.mxu1 %v7999_v29  ;;  %v684_v29 = vmax.f32 %v552_v32, 0.0  ;;  %v8033_v32 = vld [vmem:[%s10305_s3 + $0x7c0] sm:$0xff]  }
 0x1de   :  { %7329 = vmatpush3.bf16.msra.mxu0 %v8000_v17  ;;  %7212 = vmatprep.subr.bf16.mxu1 %v8001_v45  ;;  %v8020_v17 = vld [vmem:[%s10305_s3 + $0xa00] sm:$0xff]   ;;  %v871_v45 = vpack.c.bf16 %v679_v48, %v679_v48 }
 0x1df   :  { %7330 = vmatprep.subr.bf16.mxu0 %v8002_v31  ;;  %v8022_v31 = vld [vmem:[%s10305_s3 + $0xa48] sm:$0xff]   ;;  %v8034_v48 = vld [vmem:[%s10305_s3 + $0xa60] sm:$0xff]  }
 0x1e0   :  { %5475 = vmatmul.mubr.bf16.vlgmr.msra.gmra.mrb[28].mxu1 %v857_v55  ;;  %v8025_v55 = vld [vmem:[%s10305_s3 + $0x6f0] sm:$0xff]  }
 0x1e1   :  { %7213 = vmatpush3.bf16.msra.mxu1 %v8003_v34  ;;  %5554 = vmatprep.mubr.bf16.mxu1 %v862_v22  ;;  %v8023_v34 = vld [vmem:[%s10305_s3 + $0x6a8] sm:$0xff]  }
 0x1e2   :  { %7331 = vmatpush3.bf16.msra.mxu0 %v8004_v40  ;;  %7214 = vmatprep.subr.bf16.mxu1 %v8005_v51  ;;  %v876_v40 = vpack.c.bf16 %v684_v29, %v684_v29  ;;  %v6373_v51 = vld [vmem:[%s10306_s4] ss:$0 sm:$0xff]  ;;  %v8024_v22 = vld [vmem:[%s10305_s3 + $0xa08] sm:$0xff]  }
 0x1e3   :  { %7332 = vmatprep.subr.bf16.mxu0 %v8006_v39  ;;  %v7030_v62 = vpop.f32.mrb[64].mxu0 }
 0x1e4   :  { %v7031_v50 = vpop.f32.mrb[65].mxu0 }
 0x1e5   :  { %7215 = vmatpush3.bf16.msra.mxu1 %v8007_v44  ;;  %v9412_v25 = vadd.f32 %v7031_v50, %v7030_v62  ;;  %v7033_v13 = vpop.f32.mrb[66].mxu0  ;;  %v8026_v44 = vld [vmem:[%s10305_s3 + $0xa50] sm:$0xff]   ;;  %v5037_v62 = vadd.f32 %v9350_v14, %v6373_v51  ;;  %v8030_v14 = vld [vmem:[%s10305_s3 + $0xa58] sm:$0xff]   ;;  %v549_v51 = vadd.f32 %v9402_v1, %v9058_v53 }
 0x1e6   :  { %7333 = vmatpush3.bf16.msra.mxu0 %v8008_v60  ;;  %7216 = vmatprep.subr.bf16.mxu1 %v8009_v63  ;;  %v7034_v23 = vpop.f32.mrb[67].mxu0  ;;  %v512_v60 = vadd.f32 %v9402_v1, %v8740_v59  ;;  %v8028_v50 = vld [vmem:[%s10305_s3 + $0xa10] sm:$0xff]   ;;  %v8029_v59 = vld [vmem:[%s10305_s3 + $0x6f8] sm:$0xff]  }
 0x1e7   :  { %7334 = vmatprep.subr.bf16.mxu0 %v8010_v57  ;;  %v8027_v57 = vld [vmem:[%s10305_s3 + $0x6b0] sm:$0xff]   ;;  %v8031_v23 = vld [vmem:[%s10305_s3 + $0x6b8] sm:$0xff]  }
 0x1e8   :  { %v8046_v53 = vld [vmem:[%s10305_s3 + $0xa78] sm:$0xff]  }
 0x1e9   :  { %7217 = vmatpush3.bf16.msra.mxu1 %v8011_v7 }
 0x1ea   :  { %7335 = vmatpush3.bf16.msra.mxu0 %v8012_v9  ;;  %7218 = vmatprep.subr.bf16.mxu1 %v8013_v28  ;;  %v493_v9 = vadd.f32 %v9402_v1, %v8697_v35  ;;  %v8032_v35 = vld [vmem:[%s10305_s3 + $0xa18] sm:$0xff]  }
 0x1eb   :  { %7336 = vmatprep.subr.bf16.mxu0 %v8014_v49  ;;  %v674_v49 = vmax.f32 %v512_v60, 0.0 }
 0x1ed   :  { %7219 = vmatpush3.bf16.msra.mxu1 %v8015_v15  ;;  %v669_v15 = vmax.f32 %v493_v9, 0.0  ;;  %v8049_v9 = vld [vmem:[%s10305_s3 + $0x7e0] sm:$0xff]  }
 0x1ee   :  { %7337 = vmatpush3.bf16.msra.mxu0 %v8016_v41  ;;  %7220 = vmatprep.subr.bf16.mxu1 %v8017_v19  ;;  %v8035_v41 = vld [vmem:[%s10305_s3 + $0x780] sm:$0xff]  }
 0x1ef   :  { %7366 = vmatprep.subr.bf16.mxu0 %v8018_v24  ;;  %v8036_v19 = vld [vmem:[%s10305_s3 + $0xa20] sm:$0xff]   ;;  %v8037_v24 = vld [vmem:[%s10305_s3 + $0x7c8] sm:$0xff]   ;;  %v861_v29 = vpack.c.bf16 %v669_v15, %v669_v15 }
 0x1f0   :  { %v8055_v15 = vld [vmem:[%s10305_s3 + $0x7a8] sm:$0xff]  }
 0x1f1   :  { %7221 = vmatpush3.bf16.msra.mxu1 %v8019_v58  ;;  %5755 = vmatmul.mubr.bf16.vlgmr.msra.gmra.mrb[92].mxu0 %v871_v45  ;;  %v866_v58 = vpack.c.bf16 %v674_v49, %v674_v49  ;;  %v8040_v45 = vld [vmem:[%s10305_s3 + $0xa28] sm:$0xff]  }
 0x1f2   :  { %7367 = vmatpush3.bf16.msra.mxu0 %v8020_v17  ;;  %7222 = vmatprep.subr.bf16.mxu1 %v8021_v11  ;;  %v8038_v17 = vld [vmem:[%s10305_s3 + $0xa68] sm:$0xff]  }
 0x1f3   :  { %v6964_v39 = vpop.f32.mrb[4].mxu1  ;;  %7368 = vmatprep.subr.bf16.mxu0 %v8022_v31  ;;  %5834 = vmatprep.mubr.bf16.mxu0 %v876_v40  ;;  %v8039_v11 = vld [vmem:[%s10305_s3 + $0x788] sm:$0xff]   ;;  %v8041_v31 = vld [vmem:[%s10305_s3 + $0x7d0] sm:$0xff]  }
 0x1f4   :  { %v6965_v63 = vpop.f32.mrb[5].mxu1  ;;  %v8053_v49 = vld [vmem:[%s10305_s3 + $0x7e8] sm:$0xff]  }
 0x1f5   :  { %v6966_v4 = vadd.f32 %v6965_v63, %v6964_v39  ;;  %v6967_v7 = vpop.f32.mrb[6].mxu1  ;;  %7223 = vmatpush3.bf16.msra.mxu1 %v8023_v34  ;;  %v8042_v34 = vld [vmem:[%s10305_s3 + $0xa70] sm:$0xff]   ;;  %v8045_v63 = vld [vmem:[%s10305_s3 + $0x7d8] sm:$0xff]  }
 0x1f6   :  { %7369 = vmatpush3.bf16.msra.mxu0 %v8024_v22  ;;  %v6968_v13 = vpop.f32.mrb[7].mxu1  ;;  %7224 = vmatprep.subr.bf16.mxu1 %v8025_v55  ;;  %v8043_v22 = vld [vmem:[%s10305_s3 + $0x790] sm:$0xff]   ;;  %v683_v7 = vmax.f32 %v549_v51, 0.0  ;;  %v528_v51 = vadd.f32 %v9402_v1, %v8834_v47  ;;  %v8065_v47 = vld [vmem:[%s10305_s3 + $0x8c0] sm:$0xff]  }
 0x1f7   :  { %v9475_v28 = vadd.f32 %v6966_v4, %v5037_v62  ;;  %7370 = vmatprep.subr.bf16.mxu0 %v8026_v44  ;;  %v8044_v39 = vld [vmem:[%s10305_s3 + $0xa30] sm:$0xff]   ;;  %v8047_v62 = vld [vmem:[%s10305_s3 + $0x798] sm:$0xff]   ;;  %v568_v4 = vadd.f32 %v9402_v1, %v9155_v46  ;;  %v8050_v13 = vld [vmem:[%s10305_s3 + $0xb40] sm:$0xff]  }
 0x1f8   :  { %v8051_v46 = vld [vmem:[%s10305_s3 + $0x7a0] sm:$0xff]  }
 0x1f9   :  { %7225 = vmatpush3.bf16.msra.mxu1 %v8027_v57 }
 0x1fa   :  { %7371 = vmatpush3.bf16.msra.mxu0 %v8028_v50  ;;  %7226 = vmatprep.subr.bf16.mxu1 %v8029_v59  ;;  %v8048_v50 = vld [vmem:[%s10305_s3 + $0xa38] sm:$0xff]   ;;  %v688_v59 = vmax.f32 %v568_v4, 0.0 }
 0x1fb   :  { %7372 = vmatprep.subr.bf16.mxu0 %v8030_v14  ;;  %v8052_v14 = vld [vmem:[%s10305_s3 + $0xb00] sm:$0xff]  }
 0x1fd   :  { %7227 = vmatpush3.bf16.msra.mxu1 %v8031_v23  ;;  %v875_v23 = vpack.c.bf16 %v683_v7, %v683_v7 }
 0x1fe   :  { %7373 = vmatpush3.bf16.msra.mxu0 %v8032_v35  ;;  %7256 = vmatprep.subr.bf16.mxu1 %v8033_v32  ;;  %v8054_v35 = vld [vmem:[%s10305_s3 + $0xb48] sm:$0xff]   ;;  %v880_v32 = vpack.c.bf16 %v688_v59, %v688_v59  ;;  %v8074_v59 = vld [vmem:[%s10305_s3 + $0xb70] sm:$0xff]  }
 0x1ff   :  { %7374 = vmatprep.subr.bf16.mxu0 %v8034_v48  ;;  %v8056_v48 = vld [vmem:[%s10305_s3 + $0xb08] sm:$0xff]  }
 0x200   :  { %5555 = vmatmul.mubr.bf16.vlgmr.msra.gmra.mrb[32].mxu1 %v861_v29  ;;  %v8059_v29 = vld [vmem:[%s10305_s3 + $0x7b0] sm:$0xff]  }
 0x201   :  { %7257 = vmatpush3.bf16.msra.mxu1 %v8035_v41  ;;  %5634 = vmatprep.mubr.bf16.mxu1 %v866_v58  ;;  %v8057_v41 = vld [vmem:[%s10305_s3 + $0x7f0] sm:$0xff]  }
 0x202   :  { %7375 = vmatpush3.bf16.msra.mxu0 %v8036_v19  ;;  %7258 = vmatprep.subr.bf16.mxu1 %v8037_v24  ;;  %v8058_v24 = vld [vmem:[%s10305_s3 + $0xb50] sm:$0xff]  }
 0x203   :  { %7376 = vmatprep.subr.bf16.mxu0 %v8038_v17  ;;  %v7074_v40 = vpop.f32.mrb[68].mxu0 }
 0x204   :  { %v7075_v55 = vpop.f32.mrb[69].mxu0 }
 0x205   :  { %7259 = vmatpush3.bf16.msra.mxu1 %v8039_v11  ;;  %v9524_v44 = vadd.f32 %v7075_v55, %v7074_v40  ;;  %v7077_v60 = vpop.f32.mrb[70].mxu0  ;;  %v8061_v40 = vld [vmem:[%s10305_s3 + $0x7f8] sm:$0xff]  }
 0x206   :  { %7377 = vmatpush3.bf16.msra.mxu0 %v8040_v45  ;;  %7260 = vmatprep.subr.bf16.mxu1 %v8041_v31  ;;  %v7078_v57 = vpop.f32.mrb[71].mxu0  ;;  %v8060_v45 = vld [vmem:[%s10305_s3 + $0xb10] sm:$0xff]   ;;  %v509_v31 = vadd.f32 %v9402_v1, %v8730_v54  ;;  %v8062_v55 = vld [vmem:[%s10305_s3 + $0xb58] sm:$0xff]  }
 0x207   :  { %7378 = vmatprep.subr.bf16.mxu0 %v8042_v34  ;;  %v8063_v54 = vld [vmem:[%s10305_s3 + $0x7b8] sm:$0xff]   ;;  %v8068_v57 = vld [vmem:[%s10305_s3 + $0xb20] sm:$0xff]  }
 0x208   :  { %v673_v60 = vmax.f32 %v509_v31, 0.0 }
 0x209   :  { %7261 = vmatpush3.bf16.msra.mxu1 %v8043_v22 }
 0x20a   :  { %7379 = vmatpush3.bf16.msra.mxu0 %v8044_v39  ;;  %7262 = vmatprep.subr.bf16.mxu1 %v8045_v63  ;;  %v8064_v39 = vld [vmem:[%s10305_s3 + $0xb18] sm:$0xff]   ;;  %v678_v63 = vmax.f32 %v528_v51, 0.0  ;;  %v865_v4 = vpack.c.bf16 %v673_v60, %v673_v60 }
 0x20b   :  { %7380 = vmatprep.subr.bf16.mxu0 %v8046_v53  ;;  %v8067_v53 = vld [vmem:[%s10305_s3 + $0x880] sm:$0xff]  }
 0x20c   :  { %v870_v7 = vpack.c.bf16 %v678_v63, %v678_v63 }
 0x20d   :  { %7263 = vmatpush3.bf16.msra.mxu1 %v8047_v62  ;;  %v8069_v62 = vld [vmem:[%s10305_s3 + $0x8c8] sm:$0xff]  }
 0x20e   :  { %7381 = vmatpush3.bf16.msra.mxu0 %v8048_v50  ;;  %7264 = vmatprep.subr.bf16.mxu1 %v8049_v9  ;;  %v8070_v50 = vld [vmem:[%s10305_s3 + $0xb68] sm:$0xff]  }
 0x20f   :  { %7410 = vmatprep.subr.bf16.mxu0 %v8050_v13  ;;  %v8071_v9 = vld [vmem:[%s10305_s3 + $0x888] sm:$0xff]  }
 0x210   :  { %v8072_v13 = vld [vmem:[%s10305_s3 + $0xb28] sm:$0xff]  }
 0x211   :  { %7265 = vmatpush3.bf16.msra.mxu1 %v8051_v46  ;;  %5835 = vmatmul.mubr.bf16.vlgmr.msra.gmra.mrb[96].mxu0 %v875_v23  ;;  %v8073_v46 = vld [vmem:[%s10305_s3 + $0x8d0] sm:$0xff]  }
 0x212   :  { %7411 = vmatpush3.bf16.msra.mxu0 %v8052_v14  ;;  %7266 = vmatprep.subr.bf16.mxu1 %v8053_v49 }
 0x213   :  { %v6986_v19 = vpop.f32.mrb[8].mxu1  ;;  %7412 = vmatprep.subr.bf16.mxu0 %v8054_v35  ;;  %5914 = vmatprep.mubr.bf16.mxu0 %v880_v32 }
 0x214   :  { %v6987_v58 = vpop.f32.mrb[9].mxu1 }
 0x215   :  { %v6988_v17 = vadd.f32 %v6987_v58, %v6986_v19  ;;  %v6989_v11 = vpop.f32.mrb[10].mxu1  ;;  %7267 = vmatpush3.bf16.msra.mxu1 %v8055_v15 }
 0x216   :  { %7413 = vmatpush3.bf16.msra.mxu0 %v8056_v48  ;;  %v6990_v34 = vpop.f32.mrb[11].mxu1  ;;  %7268 = vmatprep.subr.bf16.mxu1 %v8057_v41 }
 0x217   :  { %v9584_v22 = vadd.f32 %v6988_v17, %v9475_v28  ;;  %7414 = vmatprep.subr.bf16.mxu0 %v8058_v24  ;;  %v8066_v28 = vld [vmem:[%s10305_s3 + $0xb60] sm:$0xff]  }
 0x219   :  { %7269 = vmatpush3.bf16.msra.mxu1 %v8059_v29 }
 0x21a   :  { %7415 = vmatpush3.bf16.msra.mxu0 %v8060_v45  ;;  %7270 = vmatprep.subr.bf16.mxu1 %v8061_v40 }
 0x21b   :  { %7416 = vmatprep.subr.bf16.mxu0 %v8062_v55 }
 0x21d   :  { %7271 = vmatpush3.bf16.msra.mxu1 %v8063_v54 }
 0x21e   :  { %7417 = vmatpush3.bf16.msra.mxu0 %v8064_v39  ;;  %7300 = vmatprep.subr.bf16.mxu1 %v8065_v47 }
 0x21f   :  { %7418 = vmatprep.subr.bf16.mxu0 %v8066_v28 }
 0x220   :  { %5635 = vmatmul.mubr.bf16.vlgmr.msra.gmra.mrb[36].mxu1 %v865_v4 }
 0x221   :  { %7301 = vmatpush3.bf16.msra.mxu1 %v8067_v53  ;;  %5714 = vmatprep.mubr.bf16.mxu1 %v870_v7 }
 0x222   :  { %7419 = vmatpush3.bf16.msra.mxu0 %v8068_v57  ;;  %7302 = vmatprep.subr.bf16.mxu1 %v8069_v62 }
 0x223   :  { %7420 = vmatprep.subr.bf16.mxu0 %v8070_v50 }
 0x224   :  { %13 = vsyncpa [#allocation4], 0  ;;  %v7118_v14 = vpop.f32.mrb[72].mxu0  ;;  %v565_v49 = vadd.f32 %v9402_v1, %v9148_v38  ;;  %v8075_v23 = vld [vmem:[%s10305_s3 + $0x890] sm:$0xff]   ;;  %v8077_v32 = vld [vmem:[%s10305_s3 + $0x8d8] sm:$0xff]   ;;  %v584_v38 = vadd.f32 %v9402_v1, %v9182_v2  ;;  %v525_v7 = vadd.f32 %v9402_v1, %v8822_v42  ;;  %vm6301_vm0 = vcmask 7168  }
 0x225   :  { %7303 = vmatpush3.bf16.msra.mxu1 %v8071_v9  ;;  %v7119_v35 = vpop.f32.mrb[73].mxu0  ;;  %v8076_v15 = vld [vmem:[%s10305_s3 + $0xb30] sm:$0xff]   ;;  %v8078_v19 = vld [vmem:[%s10305_s3 + $0xb78] sm:$0xff]   ;;  %v8081_v2 = vld [vmem:[%s10305_s3 + $0x8e0] sm:$0xff]   ;;  %s8272_s22 = scalar_lea.hbm %s10309_s7, 16 }
 0x226   :  { %7421 = vmatpush3.bf16.msra.mxu0 %v8072_v13  ;;  %7304 = vmatprep.subr.bf16.mxu1 %v8073_v46  ;;  %v9636_v48 = vadd.f32 %v7119_v35, %v7118_v14  ;;  %v7121_v41 = vpop.f32.mrb[74].mxu0  ;;  %v687_v58 = vmax.f32 %v565_v49, 0.0  ;;  %v8079_v29 = vld [vmem:[%s10305_s3 + $0x898] sm:$0xff]   ;;  %v692_v11 = vmax.f32 %v584_v38, 0.0  ;;  %v8082_v45 = vld [vmem:[%s10305_s3 + $0xc40] sm:$0xff]   ;;  %v8085_v51 = vld [vmem:[%s10305_s3 + $0x8e8] sm:$0xff]   ;;  %v544_v46 = vadd.f32 %v9402_v1, %v8946_v26  ;;  %p8273_p0 = scmp.ne.s32.totalorder %s10309_s7, %s8272_s22  ;;  %p8276_p1 = scmp.lt.u32.totalorder %s8272_s22, %s10309_s7 }
 0x227   :  { %7422 = vmatprep.subr.bf16.mxu0 %v8074_v59  ;;  %v7122_v24 = vpop.f32.mrb[75].mxu0  ;;  %v8080_v17 = vld [vmem:[%s10305_s3 + $0xb38] sm:$0xff]   ;;  %v8083_v34 = vld [vmem:[%s10305_s3 + $0x8a0] sm:$0xff]   ;;  %v8086_v54 = vld [vmem:[%s10305_s3 + $0xc48] sm:$0xff]  }
 0x228   :  { %v879_v31 = vpack.c.bf16 %v687_v58, %v687_v58  ;;  %v8084_v40 = vld [vmem:[%s10305_s3 + $0xc00] sm:$0xff]   ;;  %v884_v55 = vpack.c.bf16 %v692_v11, %v692_v11  ;;  %v8087_v39 = vld [vmem:[%s10305_s3 + $0x8a8] sm:$0xff]   ;;  %v8089_v47 = vld [vmem:[%s10305_s3 + $0x8f0] sm:$0xff]   ;;  %v682_v35 = vmax.f32 %v544_v46, 0.0  ;;  %p8278_p2 = pnand %p8276_p1, %p8273_p0 }
 0x229   :  { %7305 = vmatpush3.bf16.msra.mxu1 %v8075_v23  ;;  %v8088_v60 = vld [vmem:[%s10305_s3 + $0xc08] sm:$0xff]   ;;  %v8090_v63 = vld [vmem:[%s10305_s3 + $0xc50] sm:$0xff]   ;;  %v8093_v13 = vld [vmem:[%s10305_s3 + $0x8f8] sm:$0xff]   ;;  %v677_v23 = vmax.f32 %v525_v7, 0.0 }
 0x22a   :  { %7423 = vmatpush3.bf16.msra.mxu0 %v8076_v15  ;;  %7306 = vmatprep.subr.bf16.mxu1 %v8077_v32  ;;  %v8091_v4 = vld [vmem:[%s10305_s3 + $0x8b0] sm:$0xff]   ;;  %v8094_v42 = vld [vmem:[%s10305_s3 + $0xc58] sm:$0xff]   ;;  %v8099_v15 = vld [vmem:[%s10305_s3 + $0x980] sm:$0xff]  }
 0x22b   :  { %7424 = vmatprep.subr.bf16.mxu0 %v8078_v19  ;;  %v8092_v9 = vld [vmem:[%s10305_s3 + $0xc10] sm:$0xff]   ;;  %v8095_v49 = vld [vmem:[%s10305_s3 + $0x8b8] sm:$0xff]   ;;  %v869_v32 = vpack.c.bf16 %v677_v23, %v677_v23  ;;  %v8100_v41 = vld [vmem:[%s10305_s3 + $0xc20] sm:$0xff]   ;;  %v874_v19 = vpack.c.bf16 %v682_v35, %v682_v35 }
 0x22c   :  { %v8096_v26 = vld [vmem:[%s10305_s3 + $0xc18] sm:$0xff]   ;;  %v8101_v38 = vld [vmem:[%s10305_s3 + $0x9c8] sm:$0xff]   ;;  %v8122_v23 = vld [vmem:[%s10305_s3 + $0xd50] sm:$0xff]  }
 0x22d   :  { %7307 = vmatpush3.bf16.msra.mxu1 %v8079_v29  ;;  %v8102_v24 = vld [vmem:[%s10305_s3 + $0xc68] sm:$0xff]  }
 0x22e   :  { %7425 = vmatpush3.bf16.msra.mxu0 %v8080_v17  ;;  %7308 = vmatprep.subr.bf16.mxu1 %v8081_v2  ;;  %v8103_v58 = vld [vmem:[%s10305_s3 + $0x988] sm:$0xff]   ;;  %v8105_v17 = vld [vmem:[%s10305_s3 + $0x9d0] sm:$0xff]  }
 0x22f   :  { %7454 = vmatprep.subr.bf16.mxu0 %v8082_v45  ;;  %v8104_v29 = vld [vmem:[%s10305_s3 + $0xc28] sm:$0xff]   ;;  %v8106_v2 = vld [vmem:[%s10305_s3 + $0xc70] sm:$0xff]  }
 0x230   :  { %v8107_v45 = vld [vmem:[%s10305_s3 + $0x990] sm:$0xff]   ;;  %v8119_v46 = vld [vmem:[%s10305_s3 + $0x9a8] sm:$0xff]  }
 0x231   :  { %5915 = vmatmul.mubr.bf16.vlgmr.msra.gmra.mrb[100].mxu0 %v879_v31  ;;  %7309 = vmatpush3.bf16.msra.mxu1 %v8083_v34  ;;  %v8108_v34 = vld [vmem:[%s10305_s3 + $0xc30] sm:$0xff]  }
 0x232   :  { %7455 = vmatpush3.bf16.msra.mxu0 %v8084_v40  ;;  %7310 = vmatprep.subr.bf16.mxu1 %v8085_v51  ;;  %v8109_v40 = vld [vmem:[%s10305_s3 + $0x9d8] sm:$0xff]  }
 0x233   :  { %v7008_v28 = vpop.f32.mrb[12].mxu1  ;;  %7456 = vmatprep.subr.bf16.mxu0 %v8086_v54  ;;  %5994 = vmatprep.mubr.bf16.mxu0 %v884_v55  ;;  %v581_v54 = vadd.f32 %v9402_v1, %v9170_v61  ;;  %v8112_v61 = vld [vmem:[%s10305_s3 + $0xc38] sm:$0xff]  }
 0x234   :  { %v7009_v53 = vpop.f32.mrb[13].mxu1 }
 0x235   :  { %v7010_v57 = vadd.f32 %v7009_v53, %v7008_v28  ;;  %v7011_v62 = vpop.f32.mrb[14].mxu1  ;;  %7311 = vmatpush3.bf16.msra.mxu1 %v8087_v39  ;;  %v8110_v39 = vld [vmem:[%s10305_s3 + $0xc78] sm:$0xff]   ;;  %v691_v53 = vmax.f32 %v581_v54, 0.0  ;;  %v8135_v54 = vld [vmem:[%s10305_s3 + $0xa88] sm:$0xff]  }
 0x236   :  { %7457 = vmatpush3.bf16.msra.mxu0 %v8088_v60  ;;  %v7012_v50 = vpop.f32.mrb[15].mxu1  ;;  %7312 = vmatprep.subr.bf16.mxu1 %v8089_v47  ;;  %v600_v47 = vadd.f32 %v9402_v1, %v9199_v37  ;;  %v8111_v28 = vld [vmem:[%s10305_s3 + $0x998] sm:$0xff]   ;;  %v8114_v37 = vld [vmem:[%s10305_s3 + $0xd40] sm:$0xff]  }
 0x237   :  { %v5157_v59 = vadd.f32 %v7010_v57, %v9584_v22  ;;  %7458 = vmatprep.subr.bf16.mxu0 %v8090_v63  ;;  %v8097_v22 = vld [vmem:[%s10305_s3 + $0x9c0] sm:$0xff]   ;;  %v883_v7 = vpack.c.bf16 %v691_v53, %v691_v53  ;;  %v8117_v50 = vld [vmem:[%s10305_s3 + $0x9e8] sm:$0xff]   ;;  %v8140_v53 = vld [vmem:[%s10305_s3 + $0xd30] sm:$0xff]  }
 0x238   :  { %v8113_v63 = vld [vmem:[%s10305_s3 + $0x9e0] sm:$0xff]   ;;  %v696_v57 = vmax.f32 %v600_v47, 0.0  ;;  %v8138_v47 = vld [vmem:[%s10305_s3 + $0xd70] sm:$0xff]  }
 0x239   :  { %v9697_v14 = vadd.f32 %v9412_v25, %v5157_v59  ;;  %7313 = vmatpush3.bf16.msra.mxu1 %v8091_v4  ;;  %v8098_v25 = vld [vmem:[%s10305_s3 + $0xc60] sm:$0xff]   ;;  %v8120_v59 = vld [vmem:[%s10305_s3 + $0xd08] sm:$0xff]  }
 0x23a   :  { %7459 = vmatpush3.bf16.msra.mxu0 %v8092_v9  ;;  %7314 = vmatprep.subr.bf16.mxu1 %v8093_v13  ;;  %v8115_v62 = vld [vmem:[%s10305_s3 + $0x9a0] sm:$0xff]   ;;  %v8118_v9 = vld [vmem:[%s10305_s3 + $0xd48] sm:$0xff]   ;;  %v888_v13 = vpack.c.bf16 %v696_v57, %v696_v57 }
 0x23b   :  { %7460 = vmatprep.subr.bf16.mxu0 %v8094_v42  ;;  %v8116_v4 = vld [vmem:[%s10305_s3 + $0xd00] sm:$0xff]   ;;  %v8121_v42 = vld [vmem:[%s10305_s3 + $0x9f0] sm:$0xff]  }
 0x23d   :  { %7315 = vmatpush3.bf16.msra.mxu1 %v8095_v49 }
 0x23e   :  { %7461 = vmatpush3.bf16.msra.mxu0 %v8096_v26  ;;  %7344 = vmatprep.subr.bf16.mxu1 %v8097_v22 }
 0x23f   :  { %7462 = vmatprep.subr.bf16.mxu0 %v8098_v25  ;;  %v8123_v25 = vld [vmem:[%s10305_s3 + $0x9b0] sm:$0xff]  }
 0x240   :  { %5715 = vmatmul.mubr.bf16.vlgmr.msra.gmra.mrb[40].mxu1 %v869_v32 }
 0x241   :  { %7345 = vmatpush3.bf16.msra.mxu1 %v8099_v15  ;;  %5794 = vmatprep.mubr.bf16.mxu1 %v874_v19  ;;  %v541_v15 = vadd.f32 %v9402_v1, %v8934_v3  ;;  %v560_v19 = vadd.f32 %v9402_v1, %v9063_v10  ;;  %v8126_v3 = vld [vmem:[%s10305_s3 + $0xd58] sm:$0xff]  }
 0x242   :  { %7463 = vmatpush3.bf16.msra.mxu0 %v8100_v41  ;;  %7346 = vmatprep.subr.bf16.mxu1 %v8101_v38  ;;  %v8124_v41 = vld [vmem:[%s10305_s3 + $0xd10] sm:$0xff]   ;;  %v8125_v38 = vld [vmem:[%s10305_s3 + $0x9f8] sm:$0xff]  }
 0x243   :  { %7464 = vmatprep.subr.bf16.mxu0 %v8102_v24  ;;  %v8128_v10 = vld [vmem:[%s10305_s3 + $0xd18] sm:$0xff]  }
 0x244   :  { %v7162_v11 = vpop.f32.mrb[76].mxu0 }
 0x245   :  { %7347 = vmatpush3.bf16.msra.mxu1 %v8103_v58  ;;  %v7163_v31 = vpop.f32.mrb[77].mxu0 }
 0x246   :  { %7465 = vmatpush3.bf16.msra.mxu0 %v8104_v29  ;;  %7348 = vmatprep.subr.bf16.mxu1 %v8105_v17  ;;  %v9744_v51 = vadd.f32 %v7163_v31, %v7162_v11  ;;  %v7165_v55 = vpop.f32.mrb[78].mxu0  ;;  %v8127_v29 = vld [vmem:[%s10305_s3 + $0x9b8] sm:$0xff]   ;;  %v681_v17 = vmax.f32 %v541_v15, 0.0  ;;  %v8131_v11 = vld [vmem:[%s10305_s3 + $0xa80] sm:$0xff]   ;;  %v8152_v15 = vld [vmem:[%s10305_s3 + $0xe08] sm:$0xff]  }
 0x247   :  { %7466 = vmatprep.subr.bf16.mxu0 %v8106_v2  ;;  %v7166_v60 = vpop.f32.mrb[79].mxu0  ;;  %v686_v2 = vmax.f32 %v560_v19, 0.0  ;;  %v8132_v31 = vld [vmem:[%s10305_s3 + $0xd20] sm:$0xff]   ;;  %v8134_v55 = vld [vmem:[%s10305_s3 + $0xd68] sm:$0xff]  }
 0x248   :  { %v8137_v60 = vld [vmem:[%s10305_s3 + $0xad0] sm:$0xff]  }
 0x249   :  { %7349 = vmatpush3.bf16.msra.mxu1 %v8107_v45  ;;  %v873_v45 = vpack.c.bf16 %v681_v17, %v681_v17  ;;  %v9905_v17 = vld [vmem:[%s10304_s2] ss:$0 sm:$0xff] }
 0x24a   :  { %7467 = vmatpush3.bf16.msra.mxu0 %v8108_v34  ;;  %7350 = vmatprep.subr.bf16.mxu1 %v8109_v40  ;;  %v8133_v34 = vld [vmem:[%s10305_s3 + $0xac8] sm:$0xff]   ;;  %v878_v40 = vpack.c.bf16 %v686_v2, %v686_v2  ;;  %v8156_v2 = vld [vmem:[%s10305_s3 + $0xe10] sm:$0xff]  }
 0x24b   :  { %7468 = vmatprep.subr.bf16.mxu0 %v8110_v39  ;;  %v8136_v39 = vld [vmem:[%s10305_s3 + $0xd28] sm:$0xff]  }
 0x24d   :  { %7351 = vmatpush3.bf16.msra.mxu1 %v8111_v28 }
 0x24e   :  { %7469 = vmatpush3.bf16.msra.mxu0 %v8112_v61  ;;  %7352 = vmatprep.subr.bf16.mxu1 %v8113_v63  ;;  %v8139_v61 = vld [vmem:[%s10305_s3 + $0xa90] sm:$0xff]  }
 0x24f   :  { %7498 = vmatprep.subr.bf16.mxu0 %v8114_v37  ;;  %v8141_v37 = vld [vmem:[%s10305_s3 + $0xad8] sm:$0xff]  }
 0x251   :  { %5995 = vmatmul.mubr.bf16.vlgmr.msra.gmra.mrb[104].mxu0 %v883_v7  ;;  %7353 = vmatpush3.bf16.msra.mxu1 %v8115_v62  ;;  %v8142_v7 = vld [vmem:[%s10305_s3 + $0xd78] sm:$0xff]  }
 0x252   :  { %7499 = vmatpush3.bf16.msra.mxu0 %v8116_v4  ;;  %6074 = vmatprep.mubr.bf16.mxu0 %v888_v13  ;;  %v597_v4 = vadd.f32 %v9402_v1, %v9192_v8  ;;  %v8143_v13 = vld [vmem:[%s10305_s3 + $0xa98] sm:$0xff]  }
 0x253   :  { %v7052_v49 = vpop.f32.mrb[16].mxu1  ;;  %7354 = vmatprep.subr.bf16.mxu1 %v8117_v50  ;;  %7500 = vmatprep.subr.bf16.mxu0 %v8118_v9  ;;  %v616_v9 = vadd.f32 %v9402_v1, %v9222_v18  ;;  %v8144_v8 = vld [vmem:[%s10305_s3 + $0xd38] sm:$0xff]   ;;  %v8146_v18 = vld [vmem:[%s10305_s3 + $0xe40] sm:$0xff]  }
 0x254   :  { %v7053_v26 = vpop.f32.mrb[17].mxu1 }
 0x255   :  { %v7054_v22 = vadd.f32 %v7053_v26, %v7052_v49  ;;  %v7055_v35 = vpop.f32.mrb[18].mxu1  ;;  %7355 = vmatpush3.bf16.msra.mxu1 %v8119_v46  ;;  %v8145_v46 = vld [vmem:[%s10305_s3 + $0xae0] sm:$0xff]   ;;  %v700_v1 = vmax.f32 %v616_v9, 0.0  ;;  %v8149_v26 = vld [vmem:[%s10305_s3 + $0xae8] sm:$0xff]   ;;  %v8172_v9 = vld [vmem:[%s10305_s3 + $0xe30] sm:$0xff]  }
 0x256   :  { %7501 = vmatpush3.bf16.msra.mxu0 %v8120_v59  ;;  %v7056_v32 = vpop.f32.mrb[19].mxu1  ;;  %7356 = vmatprep.subr.bf16.mxu1 %v8121_v42  ;;  %v695_v59 = vmax.f32 %v597_v4, 0.0  ;;  %v8147_v42 = vld [vmem:[%s10305_s3 + $0xaa0] sm:$0xff]  }
 0x257   :  { %v5237_v24 = vadd.f32 %v7054_v22, %v9697_v14  ;;  %7502 = vmatprep.subr.bf16.mxu0 %v8122_v23  ;;  %v8129_v14 = vld [vmem:[%s10305_s3 + $0xac0] sm:$0xff]   ;;  %v8150_v22 = vld [vmem:[%s10305_s3 + $0xe48] sm:$0xff]   ;;  %v892_v35 = vpack.c.bf16 %v700_v1, %v700_v1  ;;  %v8153_v32 = vld [vmem:[%s10305_s3 + $0xaf0] sm:$0xff]  }
 0x258   :  { %v8148_v49 = vld [vmem:[%s10305_s3 + $0xe00] sm:$0xff]   ;;  %v887_v23 = vpack.c.bf16 %v695_v59, %v695_v59  ;;  %v613_v59 = vadd.f32 %v9905_v17, %v9212_v5  ;;  %v8176_v5 = vld [vmem:[%s10305_s3 + $0xe38] sm:$0xff]  }
 0x259   :  { %v9807_v58 = vadd.f32 %v9524_v44, %v5237_v24  ;;  %7357 = vmatpush3.bf16.msra.mxu1 %v8123_v25  ;;  %v8130_v44 = vld [vmem:[%s10305_s3 + $0xd60] sm:$0xff]   ;;  %v8151_v25 = vld [vmem:[%s10305_s3 + $0xaa8] sm:$0xff]  }
 0x25a   :  { %7503 = vmatpush3.bf16.msra.mxu0 %v8124_v41  ;;  %7358 = vmatprep.subr.bf16.mxu1 %v8125_v38  ;;  %v8154_v38 = vld [vmem:[%s10305_s3 + $0xe50] sm:$0xff]  }
 0x25b   :  { %7504 = vmatprep.subr.bf16.mxu0 %v8126_v3 }
 0x25d   :  { %7359 = vmatpush3.bf16.msra.mxu1 %v8127_v29  ;;  %v8155_v29 = vld [vmem:[%s10305_s3 + $0xab0] sm:$0xff]  }
 0x25e   :  { %7505 = vmatpush3.bf16.msra.mxu0 %v8128_v10  ;;  %7388 = vmatprep.subr.bf16.mxu1 %v8129_v14  ;;  %v557_v10 = vadd.f32 %v9905_v17, %v9051_v20  ;;  %v8158_v20 = vld [vmem:[%s10305_s3 + $0xe58] sm:$0xff]  }
 0x25f   :  { %7506 = vmatprep.subr.bf16.mxu0 %v8130_v44  ;;  %v8157_v44 = vld [vmem:[%s10305_s3 + $0xaf8] sm:$0xff]  }
 0x260   :  { %5795 = vmatmul.mubr.bf16.vlgmr.msra.gmra.mrb[44].mxu1 %v873_v45 }
 0x261   :  { %7389 = vmatpush3.bf16.msra.mxu1 %v8131_v11  ;;  %5874 = vmatprep.mubr.bf16.mxu1 %v878_v40  ;;  %v576_v11 = vadd.f32 %v9905_v17, %v9153_v43  ;;  %v685_v40 = vmax.f32 %v557_v10, 0.0  ;;  %v8160_v43 = vld [vmem:[%s10305_s3 + $0xe18] sm:$0xff]   ;;  %v8186_v10 = vld [vmem:[%s10305_s3 + $0xf50] sm:$0xff]  }
 0x262   :  { %7507 = vmatpush3.bf16.msra.mxu0 %v8132_v31  ;;  %7390 = vmatprep.subr.bf16.mxu1 %v8133_v34  ;;  %v8159_v34 = vld [vmem:[%s10305_s3 + $0xab8] sm:$0xff]  }
 0x263   :  { %7508 = vmatprep.subr.bf16.mxu0 %v8134_v55  ;;  %v690_v55 = vmax.f32 %v576_v11, 0.0  ;;  %v8187_v11 = vld [vmem:[%s10305_s3 + $0xbb0] sm:$0xff]  }
 0x264   :  { %v7206_v28 = vpop.f32.mrb[80].mxu0 }
 0x265   :  { %7391 = vmatpush3.bf16.msra.mxu1 %v8135_v54  ;;  %v7207_v63 = vpop.f32.mrb[81].mxu0  ;;  %v8163_v54 = vld [vmem:[%s10305_s3 + $0xb80] sm:$0xff]  }
 0x266   :  { %7509 = vmatpush3.bf16.msra.mxu0 %v8136_v39  ;;  %7392 = vmatprep.subr.bf16.mxu1 %v8137_v60  ;;  %v9854_v57 = vadd.f32 %v7207_v63, %v7206_v28  ;;  %v7209_v62 = vpop.f32.mrb[82].mxu0  ;;  %v877_v39 = vpack.c.bf16 %v685_v40, %v685_v40  ;;  %v8164_v60 = vld [vmem:[%s10305_s3 + $0xe20] sm:$0xff]   ;;  %v882_v28 = vpack.c.bf16 %v690_v55, %v690_v55  ;;  %v8167_v63 = vld [vmem:[%s10305_s3 + $0xb88] sm:$0xff]   ;;  %v8189_v40 = vld [vmem:[%s10305_s3 + $0xbf8] sm:$0xff]  }
 0x267   :  { %7510 = vmatprep.subr.bf16.mxu0 %v8138_v47  ;;  %v7210_v50 = vpop.f32.mrb[83].mxu0  ;;  %v8165_v47 = vld [vmem:[%s10305_s3 + $0xbc8] sm:$0xff]   ;;  %v8170_v62 = vld [vmem:[%s10305_s3 + $0xe70] sm:$0xff]  }
 0x269   :  { %7393 = vmatpush3.bf16.msra.mxu1 %v8139_v61  ;;  %v8166_v61 = vld [vmem:[%s10305_s3 + $0xe68] sm:$0xff]  }
 0x26a   :  { %7511 = vmatpush3.bf16.msra.mxu0 %v8140_v53  ;;  %7394 = vmatprep.subr.bf16.mxu1 %v8141_v37  ;;  %v8168_v53 = vld [vmem:[%s10305_s3 + $0xe28] sm:$0xff]   ;;  %v8169_v37 = vld [vmem:[%s10305_s3 + $0xbd0] sm:$0xff]  }
 0x26b   :  { %7512 = vmatprep.subr.bf16.mxu0 %v8142_v7  ;;  %v8171_v7 = vld [vmem:[%s10305_s3 + $0xb90] sm:$0xff]  }
 0x26d   :  { %7395 = vmatpush3.bf16.msra.mxu1 %v8143_v13  ;;  %v8173_v13 = vld [vmem:[%s10305_s3 + $0xbd8] sm:$0xff]  }
 0x26e   :  { %7513 = vmatpush3.bf16.msra.mxu0 %v8144_v8  ;;  %7396 = vmatprep.subr.bf16.mxu1 %v8145_v46 }
 0x26f   :  { %7542 = vmatprep.subr.bf16.mxu0 %v8146_v18  ;;  %v8174_v18 = vld [vmem:[%s10305_s3 + $0xe78] sm:$0xff]  }
 0x271   :  { %6075 = vmatmul.mubr.bf16.vlgmr.msra.gmra.mrb[108].mxu0 %v887_v23  ;;  %7397 = vmatpush3.bf16.msra.mxu1 %v8147_v42  ;;  %v632_v42 = vadd.f32 %v9905_v17, %v9244_v36  ;;  %v8177_v23 = vld [vmem:[%s10305_s3 + $0xbe0] sm:$0xff]  }
 0x272   :  { %7543 = vmatpush3.bf16.msra.mxu0 %v8148_v49  ;;  %6154 = vmatprep.mubr.bf16.mxu0 %v892_v35  ;;  %v8175_v49 = vld [vmem:[%s10305_s3 + $0xb98] sm:$0xff]   ;;  %v8178_v36 = vld [vmem:[%s10305_s3 + $0xf40] sm:$0xff]  }
 0x273   :  { %v7096_v41 = vpop.f32.mrb[20].mxu1  ;;  %7398 = vmatprep.subr.bf16.mxu1 %v8149_v26  ;;  %7544 = vmatprep.subr.bf16.mxu0 %v8150_v22  ;;  %v699_v26 = vmax.f32 %v613_v59, 0.0  ;;  %v704_v22 = vmax.f32 %v632_v42, 0.0  ;;  %v8179_v35 = vld [vmem:[%s10305_s3 + $0xba0] sm:$0xff]   ;;  %v8205_v59 = vld [vmem:[%s10305_s3 + $0xcd8] sm:$0xff]   ;;  %v629_v42 = vadd.f32 %v9905_v17, %v9232_v27 }
 0x274   :  { %v7097_v19 = vpop.f32.mrb[21].mxu1  ;;  %v8209_v27 = vld [vmem:[%s10305_s3 + $0xce0] sm:$0xff]  }
 0x275   :  { %v7098_v24 = vadd.f32 %v7097_v19, %v7096_v41  ;;  %v7099_v3 = vpop.f32.mrb[22].mxu1  ;;  %7399 = vmatpush3.bf16.msra.mxu1 %v8151_v25  ;;  %v8180_v25 = vld [vmem:[%s10305_s3 + $0xf00] sm:$0xff]   ;;  %v8182_v41 = vld [vmem:[%s10305_s3 + $0xf48] sm:$0xff]  }
 0x276   :  { %7545 = vmatpush3.bf16.msra.mxu0 %v8152_v15  ;;  %v7100_v14 = vpop.f32.mrb[23].mxu1  ;;  %7400 = vmatprep.subr.bf16.mxu1 %v8153_v32  ;;  %v891_v15 = vpack.c.bf16 %v699_v26, %v699_v26  ;;  %v8181_v32 = vld [vmem:[%s10305_s3 + $0xbe8] sm:$0xff]   ;;  %v8185_v3 = vld [vmem:[%s10305_s3 + $0xbf0] sm:$0xff]   ;;  %v8208_v26 = vld [vmem:[%s10305_s3 + $0xf38] sm:$0xff]  }
 0x277   :  { %v5317_v45 = vadd.f32 %v7098_v24, %v9807_v58  ;;  %7546 = vmatprep.subr.bf16.mxu0 %v8154_v38  ;;  %v8161_v58 = vld [vmem:[%s10305_s3 + $0xbc0] sm:$0xff]   ;;  %v896_v38 = vpack.c.bf16 %v704_v22, %v704_v22  ;;  %v8183_v19 = vld [vmem:[%s10305_s3 + $0xba8] sm:$0xff]  }
 0x278   :  { %v8184_v24 = vld [vmem:[%s10305_s3 + $0xf08] sm:$0xff]   ;;  %v8210_v22 = vld [vmem:[%s10305_s3 + $0xca0] sm:$0xff]  }
 0x279   :  { %v9922_v31 = vadd.f32 %v9636_v48, %v5317_v45  ;;  %7401 = vmatpush3.bf16.msra.mxu1 %v8155_v29  ;;  %v8162_v48 = vld [vmem:[%s10305_s3 + $0xe60] sm:$0xff]   ;;  %v573_v45 = vadd.f32 %v9905_v17, %v9140_v33  ;;  %v8190_v33 = vld [vmem:[%s10305_s3 + $0xf58] sm:$0xff]  }
 0x27a   :  { %7547 = vmatpush3.bf16.msra.mxu0 %v8156_v2  ;;  %7402 = vmatprep.subr.bf16.mxu1 %v8157_v44 }
 0x27b   :  { %7548 = vmatprep.subr.bf16.mxu0 %v8158_v20 }
 0x27d   :  { %7403 = vmatpush3.bf16.msra.mxu1 %v8159_v34  ;;  %v8188_v34 = vld [vmem:[%s10305_s3 + $0xf10] sm:$0xff]  }
 0x27e   :  { %7549 = vmatpush3.bf16.msra.mxu0 %v8160_v43  ;;  %7432 = vmatprep.subr.bf16.mxu1 %v8161_v58  ;;  %v592_v43 = vadd.f32 %v9905_v17, %v9177_v0  ;;  %v8192_v0 = vld [vmem:[%s10305_s3 + $0xf18] sm:$0xff]  }
 0x27f   :  { %7550 = vmatprep.subr.bf16.mxu0 %v8162_v48  ;;  %v8191_v48 = vld [vmem:[%s10305_s3 + $0xbb8] sm:$0xff]  }
 0x280   :  { %5875 = vmatmul.mubr.bf16.vlgmr.msra.gmra.mrb[48].mxu1 %v877_v39  ;;  %v694_v39 = vmax.f32 %v592_v43, 0.0 }
 0x281   :  { %7433 = vmatpush3.bf16.msra.mxu1 %v8163_v54  ;;  %5954 = vmatprep.mubr.bf16.mxu1 %v882_v28  ;;  %v689_v54 = vmax.f32 %v573_v45, 0.0  ;;  %v8196_v28 = vld [vmem:[%s10305_s3 + $0xf20] sm:$0xff]   ;;  %v8216_v45 = vld [vmem:[%s10305_s3 + $0xcb8] sm:$0xff]  }
 0x282   :  { %7551 = vmatpush3.bf16.msra.mxu0 %v8164_v60  ;;  %7434 = vmatprep.subr.bf16.mxu1 %v8165_v47  ;;  %v8195_v60 = vld [vmem:[%s10305_s3 + $0xc80] sm:$0xff]  }
 0x283   :  { %7552 = vmatprep.subr.bf16.mxu0 %v8166_v61  ;;  %v881_v47 = vpack.c.bf16 %v689_v54, %v689_v54  ;;  %v8197_v61 = vld [vmem:[%s10305_s3 + $0xcc8] sm:$0xff]  }
 0x284   :  { %v7250_v4 = vpop.f32.mrb[84].mxu0 }
 0x285   :  { %7435 = vmatpush3.bf16.msra.mxu1 %v8167_v63  ;;  %v7251_v50 = vpop.f32.mrb[85].mxu0  ;;  %v886_v63 = vpack.c.bf16 %v694_v39, %v694_v39 }
 0x286   :  { %7553 = vmatpush3.bf16.msra.mxu0 %v8168_v53  ;;  %7436 = vmatprep.subr.bf16.mxu1 %v8169_v37  ;;  %v9969_v8 = vadd.f32 %v7251_v50, %v7250_v4  ;;  %v7253_v46 = vpop.f32.mrb[86].mxu0  ;;  %v8198_v53 = vld [vmem:[%s10305_s3 + $0xf68] sm:$0xff]   ;;  %v8201_v4 = vld [vmem:[%s10305_s3 + $0xcd0] sm:$0xff]  }
 0x287   :  { %7554 = vmatprep.subr.bf16.mxu0 %v8170_v62  ;;  %v7254_v1 = vpop.f32.mrb[87].mxu0  ;;  %v8199_v37 = vld [vmem:[%s10305_s3 + $0xc88] sm:$0xff]   ;;  %v8204_v46 = vld [vmem:[%s10305_s3 + $0xf30] sm:$0xff]  }
 0x288   :  { %v8200_v62 = vld [vmem:[%s10305_s3 + $0xf28] sm:$0xff]  }
 0x289   :  { %7437 = vmatpush3.bf16.msra.mxu1 %v8171_v7  ;;  %v8202_v7 = vld [vmem:[%s10305_s3 + $0xf70] sm:$0xff]  }
 0x28a   :  { %7555 = vmatpush3.bf16.msra.mxu0 %v8172_v9  ;;  %7438 = vmatprep.subr.bf16.mxu1 %v8173_v13  ;;  %v8203_v9 = vld [vmem:[%s10305_s3 + $0xc90] sm:$0xff]  }
 0x28b   :  { %7556 = vmatprep.subr.bf16.mxu0 %v8174_v18 }
 0x28d   :  { %7439 = vmatpush3.bf16.msra.mxu1 %v8175_v49  ;;  %v8206_v49 = vld [vmem:[%s10305_s3 + $0xf78] sm:$0xff]  }
 0x28e   :  { %7557 = vmatpush3.bf16.msra.mxu0 %v8176_v5  ;;  %7440 = vmatprep.subr.bf16.mxu1 %v8177_v23  ;;  %v8207_v23 = vld [vmem:[%s10305_s3 + $0xc98] sm:$0xff]  }
 0x28f   :  { %7586 = vmatprep.subr.bf16.mxu0 %v8178_v36  ;;  %v703_v36 = vmax.f32 %v629_v42, 0.0 }
 0x291   :  { %6155 = vmatmul.mubr.bf16.vlgmr.msra.gmra.mrb[112].mxu0 %v891_v15  ;;  %7441 = vmatpush3.bf16.msra.mxu1 %v8179_v35  ;;  %v8211_v35 = vld [vmem:[%s10305_s3 + $0xce8] sm:$0xff]  }
 0x292   :  { %7587 = vmatpush3.bf16.msra.mxu0 %v8180_v25  ;;  %6234 = vmatprep.mubr.bf16.mxu0 %v896_v38  ;;  %v895_v25 = vpack.c.bf16 %v703_v36, %v703_v36  ;;  %v8212_v15 = vld [vmem:[%s10305_s3 + $0xca8] sm:$0xff]  }
 0x293   :  { %v7140_v29 = vpop.f32.mrb[24].mxu1  ;;  %7442 = vmatprep.subr.bf16.mxu1 %v8181_v32  ;;  %7588 = vmatprep.subr.bf16.mxu0 %v8182_v41  ;;  %v8213_v32 = vld [vmem:[%s10305_s3 + $0xcf0] sm:$0xff]   ;;  %v8236_v36 = vld [vmem:[%s10305_s3 + $0xe88] sm:$0xff]  }
 0x294   :  { %v7141_v14 = vpop.f32.mrb[25].mxu1 }
 0x295   :  { %v7142_v2 = vadd.f32 %v7141_v14, %v7140_v29  ;;  %v7143_v44 = vpop.f32.mrb[26].mxu1  ;;  %7443 = vmatpush3.bf16.msra.mxu1 %v8183_v19  ;;  %v589_v29 = vadd.f32 %v9905_v17, %v9162_v56  ;;  %v8215_v14 = vld [vmem:[%s10305_s3 + $0xcf8] sm:$0xff]   ;;  %v8217_v56 = vld [vmem:[%s10305_s3 + $0xdc0] sm:$0xff]  }
 0x296   :  { %7589 = vmatpush3.bf16.msra.mxu0 %v8184_v24  ;;  %v7144_v20 = vpop.f32.mrb[27].mxu1  ;;  %7444 = vmatprep.subr.bf16.mxu1 %v8185_v3  ;;  %v8214_v3 = vld [vmem:[%s10305_s3 + $0xcb0] sm:$0xff]  }
 0x297   :  { %v5397_v58 = vadd.f32 %v7142_v2, %v9922_v31  ;;  %7590 = vmatprep.subr.bf16.mxu0 %v8186_v10  ;;  %v8193_v31 = vld [vmem:[%s10305_s3 + $0xcc0] sm:$0xff]   ;;  %v608_v2 = vadd.f32 %v9905_v17, %v9197_v12  ;;  %v693_v20 = vmax.f32 %v589_v29, 0.0 }
 0x298   :  { %v8218_v12 = vld [vmem:[%s10305_s3 + $0xd80] sm:$0xff]  }
 0x299   :  { %v10032_v55 = vadd.f32 %v9744_v51, %v5397_v58  ;;  %7445 = vmatpush3.bf16.msra.mxu1 %v8187_v11  ;;  %v8194_v51 = vld [vmem:[%s10305_s3 + $0xf60] sm:$0xff]   ;;  %v8220_v58 = vld [vmem:[%s10305_s3 + $0xd88] sm:$0xff]  }
 0x29a   :  { %7591 = vmatpush3.bf16.msra.mxu0 %v8188_v34  ;;  %7446 = vmatprep.subr.bf16.mxu1 %v8189_v40  ;;  %v698_v34 = vmax.f32 %v608_v2, 0.0  ;;  %v885_v40 = vpack.c.bf16 %v693_v20, %v693_v20  ;;  %v8242_v29 = vld [vmem:[%s10305_s3 + $0xea0] sm:$0xff]   ;;  %v8245_v2 = vld [vmem:[%s10305_s3 + $0xef0] sm:$0xff]  }
 0x29b   :  { %7592 = vmatprep.subr.bf16.mxu0 %v8190_v33  ;;  %v8221_v33 = vld [vmem:[%s10305_s3 + $0xdd0] sm:$0xff]  }
 0x29c   :  { %v890_v43 = vpack.c.bf16 %v698_v34, %v698_v34  ;;  %v621_v34 = vadd.f32 %v9905_v17, %v9204_v52  ;;  %v8249_v52 = vld [vmem:[%s10305_s3 + $0xfc0] sm:$0xff]  }
 0x29d   :  { %7447 = vmatpush3.bf16.msra.mxu1 %v8191_v48  ;;  %v8222_v48 = vld [vmem:[%s10305_s3 + $0xd90] sm:$0xff]  }
 0x29e   :  { %7593 = vmatpush3.bf16.msra.mxu0 %v8192_v0  ;;  %7476 = vmatprep.subr.bf16.mxu1 %v8193_v31  ;;  %v8223_v0 = vld [vmem:[%s10305_s3 + $0xdd8] sm:$0xff]  }
 0x29f   :  { %7594 = vmatprep.subr.bf16.mxu0 %v8194_v51 }
 0x2a0   :  { %5955 = vmatmul.mubr.bf16.vlgmr.msra.gmra.mrb[52].mxu1 %v881_v47  ;;  %v8225_v47 = vld [vmem:[%s10305_s3 + $0xde0] sm:$0xff]  }
 0x2a1   :  { %7477 = vmatpush3.bf16.msra.mxu1 %v8195_v60  ;;  %6034 = vmatprep.mubr.bf16.mxu1 %v886_v63  ;;  %v8224_v60 = vld [vmem:[%s10305_s3 + $0xd98] sm:$0xff]   ;;  %v8228_v63 = vld [vmem:[%s10305_s3 + $0xda8] sm:$0xff]  }
 0x2a2   :  { %7595 = vmatpush3.bf16.msra.mxu0 %v8196_v28  ;;  %7478 = vmatprep.subr.bf16.mxu1 %v8197_v61  ;;  %v8226_v28 = vld [vmem:[%s10305_s3 + $0xda0] sm:$0xff]   ;;  %v8227_v61 = vld [vmem:[%s10305_s3 + $0xde8] sm:$0xff]  }
 0x2a3   :  { %7596 = vmatprep.subr.bf16.mxu0 %v8198_v53  ;;  %v8229_v53 = vld [vmem:[%s10305_s3 + $0xdf0] sm:$0xff]  }
 0x2a4   :  { %v7294_v50 = vpop.f32.mrb[88].mxu0 }
 0x2a5   :  { %7479 = vmatpush3.bf16.msra.mxu1 %v8199_v37  ;;  %v7295_v13 = vpop.f32.mrb[89].mxu0 }
 0x2a6   :  { %7597 = vmatpush3.bf16.msra.mxu0 %v8200_v62  ;;  %7480 = vmatprep.subr.bf16.mxu1 %v8201_v4  ;;  %v10079_v18 = vadd.f32 %v7295_v13, %v7294_v50  ;;  %v7297_v1 = vpop.f32.mrb[90].mxu0  ;;  %v8230_v50 = vld [vmem:[%s10305_s3 + $0xdb0] sm:$0xff]  }
 0x2a7   :  { %7598 = vmatprep.subr.bf16.mxu0 %v8202_v7  ;;  %v7298_v5 = vpop.f32.mrb[91].mxu0 }
 0x2a9   :  { %7481 = vmatpush3.bf16.msra.mxu1 %v8203_v9  ;;  %v605_v9 = vadd.f32 %v9905_v17, %v9184_v6  ;;  %v8233_v6 = vld [vmem:[%s10305_s3 + $0xec0] sm:$0xff]  }
 0x2aa   :  { %7599 = vmatpush3.bf16.msra.mxu0 %v8204_v46  ;;  %7482 = vmatprep.subr.bf16.mxu1 %v8205_v59  ;;  %v8231_v46 = vld [vmem:[%s10305_s3 + $0xdf8] sm:$0xff]   ;;  %v624_v59 = vadd.f32 %v9905_v17, %v9217_v16  ;;  %v8234_v16 = vld [vmem:[%s10305_s3 + $0xe80] sm:$0xff]  }
 0x2ab   :  { %7600 = vmatprep.subr.bf16.mxu0 %v8206_v49  ;;  %v8232_v49 = vld [vmem:[%s10305_s3 + $0xdb8] sm:$0xff]   ;;  %v697_v5 = vmax.f32 %v605_v9, 0.0  ;;  %v8260_v9 = vld [vmem:[%s10305_s3 + $0xfa8] sm:$0xff]  }
 0x2ad   :  { %7483 = vmatpush3.bf16.msra.mxu1 %v8207_v23  ;;  %v702_v23 = vmax.f32 %v624_v59, 0.0 }
 0x2ae   :  { %7601 = vmatpush3.bf16.msra.mxu0 %v8208_v26  ;;  %7484 = vmatprep.subr.bf16.mxu1 %v8209_v27  ;;  %v889_v26 = vpack.c.bf16 %v697_v5, %v697_v5  ;;  %v637_v5 = vadd.f32 %v9905_v17, %v9227_v21 }
 0x2af   :  { %v894_v27 = vpack.c.bf16 %v702_v23, %v702_v23  ;;  %v8263_v23 = vld [vmem:[%s10305_s3 + $0xff8] sm:$0xff]  }
 0x2b1   :  { %6235 = vmatmul.mubr.bf16.vlgmr.msra.gmra.mrb[116].mxu0 %v895_v25  ;;  %7485 = vmatpush3.bf16.msra.mxu1 %v8210_v22  ;;  %v8237_v22 = vld [vmem:[%s10305_s3 + $0xed0] sm:$0xff]  }
 0x2b2   :  { %7486 = vmatprep.subr.bf16.mxu1 %v8211_v35  ;;  %v8238_v25 = vld [vmem:[%s10305_s3 + $0xe90] sm:$0xff]  }
 0x2b3   :  { %v7184_v41 = vpop.f32.mrb[28].mxu1 }
 0x2b4   :  { %v7185_v38 = vpop.f32.mrb[29].mxu1 }
 0x2b5   :  { %v7186_v19 = vadd.f32 %v7185_v38, %v7184_v41  ;;  %v7187_v24 = vpop.f32.mrb[30].mxu1  ;;  %7487 = vmatpush3.bf16.msra.mxu1 %v8212_v15 }
 0x2b6   :  { %v7188_v10 = vpop.f32.mrb[31].mxu1  ;;  %7488 = vmatprep.subr.bf16.mxu1 %v8213_v32  ;;  %v8239_v32 = vld [vmem:[%s10305_s3 + $0xed8] sm:$0xff]  }
 0x2b7   :  { %v5477_v44 = vadd.f32 %v7186_v19, %v10032_v55  ;;  %v8240_v24 = vld [vmem:[%s10305_s3 + $0xe98] sm:$0xff]   ;;  %v8243_v10 = vld [vmem:[%s10305_s3 + $0xee8] sm:$0xff]  }
 0x2b9   :  { %v5517_v11 = vadd.f32 %v9854_v57, %v5477_v44  ;;  %7489 = vmatpush3.bf16.msra.mxu1 %v8214_v3  ;;  %v8219_v57 = vld [vmem:[%s10305_s3 + $0xdc8] sm:$0xff]   ;;  %v8241_v3 = vld [vmem:[%s10305_s3 + $0xee0] sm:$0xff]  }
 0x2ba   :  { %7490 = vmatprep.subr.bf16.mxu1 %v8215_v14  ;;  %v8244_v14 = vld [vmem:[%s10305_s3 + $0xea8] sm:$0xff]  }
 0x2bd   :  { %7491 = vmatpush3.bf16.msra.mxu1 %v8216_v45 }
 0x2be   :  { %7520 = vmatprep.subr.bf16.mxu1 %v8217_v56  ;;  %v8246_v56 = vld [vmem:[%s10305_s3 + $0xeb0] sm:$0xff]  }
 0x2c0   :  { %6035 = vmatmul.mubr.bf16.vlgmr.msra.gmra.mrb[56].mxu1 %v885_v40  ;;  %v8247_v40 = vld [vmem:[%s10305_s3 + $0xef8] sm:$0xff]  }
 0x2c1   :  { %7521 = vmatpush3.bf16.msra.mxu1 %v8218_v12  ;;  %6114 = vmatprep.mubr.bf16.mxu1 %v890_v43 }
 0x2c2   :  { %7522 = vmatprep.subr.bf16.mxu1 %v8219_v57  ;;  %v640_v57 = vadd.f32 %v9905_v17, %v9237_v30  ;;  %v8250_v30 = vld [vmem:[%s10305_s3 + $0xf80] sm:$0xff]  }
 0x2c4   :  { %v7338_v55 = vpop.f32.mrb[92].mxu0 }
 0x2c5   :  { %7523 = vmatpush3.bf16.msra.mxu1 %v8220_v58  ;;  %v7339_v54 = vpop.f32.mrb[93].mxu0  ;;  %v8248_v58 = vld [vmem:[%s10305_s3 + $0xeb8] sm:$0xff]  }
 0x2c6   :  { %7524 = vmatprep.subr.bf16.mxu1 %v8221_v33  ;;  %v10143_v31 = vadd.f32 %v7339_v54, %v7338_v55  ;;  %v7341_v39 = vpop.f32.mrb[94].mxu0  ;;  %v701_v55 = vmax.f32 %v621_v34, 0.0 }
 0x2c7   :  { %v7342_v51 = vpop.f32.mrb[95].mxu0 }
 0x2c8   :  { %v893_v54 = vpack.c.bf16 %v701_v55, %v701_v55  ;;  %v8253_v51 = vld [vmem:[%s10305_s3 + $0xfd0] sm:$0xff]  }
 0x2c9   :  { %7525 = vmatpush3.bf16.msra.mxu1 %v8222_v48  ;;  %v706_v48 = vmax.f32 %v640_v57, 0.0 }
 0x2ca   :  { %7526 = vmatprep.subr.bf16.mxu1 %v8223_v0  ;;  %v8251_v0 = vld [vmem:[%s10305_s3 + $0xfc8] sm:$0xff]  }
 0x2cb   :  { %v898_v39 = vpack.c.bf16 %v706_v48, %v706_v48 }
 0x2cd   :  { %7527 = vmatpush3.bf16.msra.mxu1 %v8224_v60 }
 0x2ce   :  { %7528 = vmatprep.subr.bf16.mxu1 %v8225_v47 }
 0x2d1   :  { %7529 = vmatpush3.bf16.msra.mxu1 %v8226_v28  ;;  %v8254_v28 = vld [vmem:[%s10305_s3 + $0xf90] sm:$0xff]  }
 0x2d2   :  { %7530 = vmatprep.subr.bf16.mxu1 %v8227_v61 }
 0x2d3   :  { %v7228_v37 = vpop.f32.mrb[32].mxu1 }
 0x2d4   :  { %v7229_v62 = vpop.f32.mrb[33].mxu1 }
 0x2d5   :  { %v7230_v4 = vadd.f32 %v7229_v62, %v7228_v37  ;;  %v7231_v7 = vpop.f32.mrb[34].mxu1  ;;  %7531 = vmatpush3.bf16.msra.mxu1 %v8228_v63  ;;  %v8256_v62 = vld [vmem:[%s10305_s3 + $0xf98] sm:$0xff]  }
 0x2d6   :  { %v7232_v13 = vpop.f32.mrb[35].mxu1  ;;  %7532 = vmatprep.subr.bf16.mxu1 %v8229_v53  ;;  %v8255_v53 = vld [vmem:[%s10305_s3 + $0xfd8] sm:$0xff]   ;;  %v8258_v7 = vld [vmem:[%s10305_s3 + $0xfa0] sm:$0xff]  }
 0x2d7   :  { %v5557_v1 = vadd.f32 %v7230_v4, %v5517_v11  ;;  %v8257_v4 = vld [vmem:[%s10305_s3 + $0xfe0] sm:$0xff]   ;;  %v8261_v13 = vld [vmem:[%s10305_s3 + $0xff0] sm:$0xff]  }
 0x2d9   :  { %v5597_v42 = vadd.f32 %v9969_v8, %v5557_v1  ;;  %7533 = vmatpush3.bf16.msra.mxu1 %v8230_v50  ;;  %v8235_v8 = vld [vmem:[%s10305_s3 + $0xec8] sm:$0xff]  }
 0x2da   :  { %7534 = vmatprep.subr.bf16.mxu1 %v8231_v46  ;;  %v8259_v50 = vld [vmem:[%s10305_s3 + $0xfe8] sm:$0xff]  }
 0x2dd   :  { %7535 = vmatpush3.bf16.msra.mxu1 %v8232_v49  ;;  %v8262_v49 = vld [vmem:[%s10305_s3 + $0xfb0] sm:$0xff]  }
 0x2de   :  { %7564 = vmatprep.subr.bf16.mxu1 %v8233_v6 }
 0x2e0   :  { %6115 = vmatmul.mubr.bf16.vlgmr.msra.gmra.mrb[60].mxu1 %v889_v26  ;;  %v8264_v26 = vld [vmem:[%s10305_s3 + $0xfb8] sm:$0xff]  }
 0x2e1   :  { %7565 = vmatpush3.bf16.msra.mxu1 %v8234_v16  ;;  %6194 = vmatprep.mubr.bf16.mxu1 %v894_v27  ;;  %v705_v27 = vmax.f32 %v637_v5, 0.0 }
 0x2e2   :  { %7566 = vmatprep.subr.bf16.mxu1 %v8235_v8 }
 0x2e4   :  { %v7382_v35 = vpop.f32.mrb[96].mxu0 }
 0x2e5   :  { %7567 = vmatpush3.bf16.msra.mxu1 %v8236_v36  ;;  %v7383_v15 = vpop.f32.mrb[97].mxu0  ;;  %v897_v36 = vpack.c.bf16 %v705_v27, %v705_v27 }
 0x2e6   :  { %7568 = vmatprep.subr.bf16.mxu1 %v8237_v22  ;;  %v10198_v41 = vadd.f32 %v7383_v15, %v7382_v35  ;;  %v7385_v38 = vpop.f32.mrb[98].mxu0 }
 0x2e7   :  { %v7386_v19 = vpop.f32.mrb[99].mxu0 }
 0x2e9   :  { %7569 = vmatpush3.bf16.msra.mxu1 %v8238_v25 }
 0x2ea   :  { %7570 = vmatprep.subr.bf16.mxu1 %v8239_v32 }
 0x2ed   :  { %7571 = vmatpush3.bf16.msra.mxu1 %v8240_v24 }
 0x2ee   :  { %7572 = vmatprep.subr.bf16.mxu1 %v8241_v3 }
 0x2f1   :  { %7573 = vmatpush3.bf16.msra.mxu1 %v8242_v29 }
 0x2f2   :  { %7574 = vmatprep.subr.bf16.mxu1 %v8243_v10 }
 0x2f3   :  { %v7272_v44 = vpop.f32.mrb[36].mxu1 }
 0x2f4   :  { %v7273_v11 = vpop.f32.mrb[37].mxu1 }
 0x2f5   :  { %v7274_v45 = vadd.f32 %v7273_v11, %v7272_v44  ;;  %v7275_v20 = vpop.f32.mrb[38].mxu1  ;;  %7575 = vmatpush3.bf16.msra.mxu1 %v8244_v14 }
 0x2f6   :  { %v7276_v12 = vpop.f32.mrb[39].mxu1  ;;  %7576 = vmatprep.subr.bf16.mxu1 %v8245_v2 }
 0x2f7   :  { %v5637_v43 = vadd.f32 %v7274_v45, %v5597_v42 }
 0x2f9   :  { %7577 = vmatpush3.bf16.msra.mxu1 %v8246_v56  ;;  %v5677_v33 = vadd.f32 %v10079_v18, %v5637_v43  ;;  %v8252_v18 = vld [vmem:[%s10305_s3 + $0xf88] sm:$0xff]  }
 0x2fa   :  { %7578 = vmatprep.subr.bf16.mxu1 %v8247_v40 }
 0x2fd   :  { %7579 = vmatpush3.bf16.msra.mxu1 %v8248_v58 }
 0x2fe   :  { %7608 = vmatprep.subr.bf16.mxu1 %v8249_v52 }
 0x300   :  { %6195 = vmatmul.mubr.bf16.vlgmr.msra.gmra.mrb[64].mxu1 %v893_v54 }
 0x301   :  { %7609 = vmatpush3.bf16.msra.mxu1 %v8250_v30  ;;  %6274 = vmatprep.mubr.bf16.mxu1 %v898_v39 }
 0x302   :  { %7610 = vmatprep.subr.bf16.mxu1 %v8251_v0 }
 0x304   :  { %v7426_v60 = vpop.f32.mrb[100].mxu0 }
 0x305   :  { %v7427_v47 = vpop.f32.mrb[101].mxu0  ;;  %7611 = vmatpush3.bf16.msra.mxu1 %v8252_v18 }
 0x306   :  { %v7428_v61 = vadd.f32 %v7427_v47, %v7426_v60  ;;  %v7429_v63 = vpop.f32.mrb[102].mxu0  ;;  %7612 = vmatprep.subr.bf16.mxu1 %v8253_v51 }
 0x307   :  { %v7430_v37 = vpop.f32.mrb[103].mxu0 }
 0x309   :  { %7613 = vmatpush3.bf16.msra.mxu1 %v8254_v28 }
 0x30a   :  { %7614 = vmatprep.subr.bf16.mxu1 %v8255_v53 }
 0x30d   :  { %7615 = vmatpush3.bf16.msra.mxu1 %v8256_v62 }
 0x30e   :  { %7616 = vmatprep.subr.bf16.mxu1 %v8257_v4 }
 0x311   :  { %7617 = vmatpush3.bf16.msra.mxu1 %v8258_v7 }
 0x312   :  { %7618 = vmatprep.subr.bf16.mxu1 %v8259_v50 }
 0x313   :  { %v7316_v46 = vpop.f32.mrb[40].mxu1 }
 0x314   :  { %v7317_v59 = vpop.f32.mrb[41].mxu1 }
 0x315   :  { %v7318_v1 = vadd.f32 %v7317_v59, %v7316_v46  ;;  %v7319_v42 = vpop.f32.mrb[42].mxu1  ;;  %7619 = vmatpush3.bf16.msra.mxu1 %v8260_v9 }
 0x316   :  { %v7320_v6 = vpop.f32.mrb[43].mxu1  ;;  %7620 = vmatprep.subr.bf16.mxu1 %v8261_v13 }
 0x317   :  { %v5717_v16 = vadd.f32 %v7318_v1, %v5677_v33 }
 0x319   :  { %7621 = vmatpush3.bf16.msra.mxu1 %v8262_v49  ;;  %v5757_v8 = vadd.f32 %v10143_v31, %v5717_v16 }
 0x31a   :  { %7622 = vmatprep.subr.bf16.mxu1 %v8263_v23 }
 0x31d   :  { %7623 = vmatpush3.bf16.msra.mxu1 %v8264_v26 }
 0x320   :  { %6275 = vmatmul.mubr.bf16.vlgmr.msra.gmra.mrb[68].mxu1 %v897_v36 }
 0x324   :  { %v7470_v21 = vpop.f32.mrb[104].mxu0 }
 0x325   :  { %v7471_v17 = vpop.f32.mrb[105].mxu0 }
 0x326   :  { %v7472_v22 = vadd.f32 %v7471_v17, %v7470_v21  ;;  %v7473_v35 = vpop.f32.mrb[106].mxu0 }
 0x327   :  { %v7474_v25 = vpop.f32.mrb[107].mxu0  ;;  %v6283_v35 = vld [vmem:[%s10307_s5] sm:$0xff] }
 0x333   :  { %v7360_v15 = vpop.f32.mrb[44].mxu1 }
 0x334   :  { %v7361_v32 = vpop.f32.mrb[45].mxu1 }
 0x335   :  { %v7362_v38 = vadd.f32 %v7361_v32, %v7360_v15  ;;  %v7363_v19 = vpop.f32.mrb[46].mxu1 }
 0x336   :  { %v7364_v24 = vpop.f32.mrb[47].mxu1 }
 0x337   :  { %v5797_v3 = vadd.f32 %v7362_v38, %v5757_v8 }
 0x339   :  { %v5837_v29 = vadd.f32 %v10198_v41, %v5797_v3 }
 0x344   :  { %v7514_v10 = vpop.f32.mrb[108].mxu0 }
 0x345   :  { %v7515_v31 = vpop.f32.mrb[109].mxu0 }
 0x346   :  { %v7516_v14 = vadd.f32 %v7515_v31, %v7514_v10  ;;  %v7517_v2 = vpop.f32.mrb[110].mxu0 }
 0x347   :  { %v7518_v44 = vpop.f32.mrb[111].mxu0 }
 0x353   :  { %v7404_v11 = vpop.f32.mrb[48].mxu1 }
 0x354   :  { %v7405_v45 = vpop.f32.mrb[49].mxu1 }
 0x355   :  { %v7406_v20 = vadd.f32 %v7405_v45, %v7404_v11  ;;  %v7407_v56 = vpop.f32.mrb[50].mxu1 }
 0x356   :  { %v7408_v34 = vpop.f32.mrb[51].mxu1 }
 0x357   :  { %v5877_v12 = vadd.f32 %v7406_v20, %v5837_v29 }
 0x359   :  { %v5917_v40 = vadd.f32 %v7428_v61, %v5877_v12 }
 0x364   :  { %v7558_v57 = vpop.f32.mrb[112].mxu0 }
 0x365   :  { %v7559_v43 = vpop.f32.mrb[113].mxu0 }
 0x366   :  { %v7560_v58 = vadd.f32 %v7559_v43, %v7558_v57  ;;  %v7561_v33 = vpop.f32.mrb[114].mxu0 }
 0x367   :  { %v7562_v55 = vpop.f32.mrb[115].mxu0 }
 0x373   :  { %v7448_v52 = vpop.f32.mrb[52].mxu1 }
 0x374   :  { %v7449_v48 = vpop.f32.mrb[53].mxu1 }
 0x375   :  { %v7450_v41 = vadd.f32 %v7449_v48, %v7448_v52  ;;  %v7451_v30 = vpop.f32.mrb[54].mxu1 }
 0x376   :  { %v7452_v54 = vpop.f32.mrb[55].mxu1 }
 0x377   :  { %v5957_v0 = vadd.f32 %v7450_v41, %v5917_v40 }
 0x379   :  { %v5997_v39 = vadd.f32 %v7472_v22, %v5957_v0 }
 0x384   :  { %v7602_v18 = vpop.f32.mrb[116].mxu0 }
 0x385   :  { %v7603_v51 = vpop.f32.mrb[117].mxu0 }
 0x386   :  { %v7604_v60 = vadd.f32 %v7603_v51, %v7602_v18  ;;  %v7605_v47 = vpop.f32.mrb[118].mxu0 }
 0x387   :  { %v7606_v28 = vpop.f32.mrb[119].mxu0 }
 0x393   :  { %v7492_v63 = vpop.f32.mrb[56].mxu1 }
 0x394   :  { %v7493_v53 = vpop.f32.mrb[57].mxu1 }
 0x395   :  { %v7494_v61 = vadd.f32 %v7493_v53, %v7492_v63  ;;  %v7495_v37 = vpop.f32.mrb[58].mxu1 }
 0x396   :  { %v7496_v62 = vpop.f32.mrb[59].mxu1 }
 0x397   :  { %v6037_v4 = vadd.f32 %v7494_v61, %v5997_v39 }
 0x399   :  { %v6077_v7 = vadd.f32 %v7516_v14, %v6037_v4 }
 0x3b3   :  { %v7536_v50 = vpop.f32.mrb[60].mxu1 }
 0x3b4   :  { %v7537_v9 = vpop.f32.mrb[61].mxu1 }
 0x3b5   :  { %v7538_v13 = vadd.f32 %v7537_v9, %v7536_v50  ;;  %v7539_v46 = vpop.f32.mrb[62].mxu1 }
 0x3b6   :  { %v7540_v59 = vpop.f32.mrb[63].mxu1 }
 0x3b7   :  { %v6117_v1 = vadd.f32 %v7538_v13, %v6077_v7 }
 0x3b9   :  { %v6157_v42 = vadd.f32 %v7560_v58, %v6117_v1 }
 0x3d3   :  { %v7580_v49 = vpop.f32.mrb[64].mxu1 }
 0x3d4   :  { %v7581_v5 = vpop.f32.mrb[65].mxu1 }
 0x3d5   :  { %v7582_v6 = vadd.f32 %v7581_v5, %v7580_v49  ;;  %v7583_v23 = vpop.f32.mrb[66].mxu1 }
 0x3d6   :  { %v7584_v16 = vpop.f32.mrb[67].mxu1 }
 0x3d7   :  { %v6197_v26 = vadd.f32 %v7582_v6, %v6157_v42 }
 0x3d9   :  { %v6237_v8 = vadd.f32 %v7604_v60, %v6197_v26 }
 0x3f3   :  { %v7624_v27 = vpop.f32.mrb[68].mxu1 }
 0x3f4   :  { %v7625_v36 = vpop.f32.mrb[69].mxu1 }
 0x3f5   :  { %v7626_v21 = vadd.f32 %v7625_v36, %v7624_v27  ;;  %v7627_v17 = vpop.f32.mrb[70].mxu1 }
 0x3f6   :  { %v7628_v22 = vpop.f32.mrb[71].mxu1 }
 0x3f7   :  { %v6277_v25 = vadd.f32 %v7626_v21, %v6237_v8 }
 0x3f9   :  { %6282 = vst [vmem:[%s10308_s6] sm:$0xff] %v6277_v25  ;;  %6284 = vmax.xlane.f32.xlu0 %v6277_v25  ;;  %v6294_v15 = vmul.f32 %v6283_v35, %v6277_v25 }
 0x3fb   :  { %6295 = vadd.xlane.f32.xlu1 %v6294_v15 }
 0x3ff   :  { %6297 = vadd.xlane.f32.xlu1 %v6283_v35 }
 0x486   :  { %v6285_v32 = vpop.xlane.xlu0 %6284 }
 0x487   :  { %v6286_v38 = vsub.f32 %v6277_v25, %v6285_v32 }
 0x488   :  { %v6296_v10 = vpop.xlane.xlu1 %6295 }
 0x489   :  { %v6287_v19 = vmul.f32 1.442695, %v6286_v38 }
 0x48b   :  { %8265 = vpow2.f32 %v6287_v19 }
 0x48c   :  { %v6298_v2 = vpop.xlane.xlu1 %6297 }
 0x495   :  { %v8266_v24 = vpop.eup %8265 }
 0x496   :  { %6289 = vadd.xlane.f32.xlu0 %v8266_v24 }
 0x523   :  { %v6290_v3 = vpop.xlane.xlu0 %6289 }
 0x524   :  { %8267 = vlog2.f32 %v6290_v3 }
 0x52e   :  { %v8268_v29 = vpop.eup %8267 }
 0x52f   :  { %v6292_v31 = vmul.f32 0.6931472, %v8268_v29 }
 0x531   :  { %v6293_v14 = vadd.f32 %v6292_v31, %v6285_v32 }
 0x533   :  { %v6299_v44 = vsub.f32 %v6293_v14, %v6296_v10 }
 0x535   :  { %v6300_v11 = vmul.f32 %v6299_v44, %v6298_v2 }
 0x537   :  { %v6302_v45 = vsel %vm6301_vm0, %v6300_v11, 0.0 }
 0x538   :  { %6303 = vadd.xlane.f32.xlu0 %v6302_v45 }
 0x5c5   :  { %v6304_v20 = vpop.xlane.xlu0 %6303 }
 0x5c6   :  { %v6305_v56 = vrot.slane %v6304_v20, 4 }
 0x5c8   :  { %v6306_v34 = vadd.f32 %v6305_v56, %v6304_v20 }
 0x5ca   :  { %v6307_v12 = vrot.slane %v6306_v34, 2 }
 0x5cc   :  { %v6308_v40 = vadd.f32 %v6307_v12, %v6306_v34 }
 0x5ce   :  { %v6309_v57 = vrot.slane %v6308_v40, 1 }
 0x5d0   :  { %v6310_v43 = vadd.f32 %v6309_v57, %v6308_v40 }
 0x5d2   :  { %7710 = vpush %v6310_v43 }
 0x603   :  { %s7711_s5 = spop %7710 }
 0x604   :  { %s6312_s6 = smul.f32 0.5, %s7711_s5 }
 0x606   :  { %6314 = sst [smem:[#allocation3]] %s6312_s6 }
 0x607   :  { %8281 = shalt.err (!%p8278_p2)
}
 0x608   :  { %s8284_s1 = smov [#allocation3]  }
 0x609   :  { %6324 = dma.smem_to_hbm %s8284_s1, 16, %s10309_s7, [#allocation4]  }
 0x60a   :  { %8282 = dma.done.wait [#allocation4], 16  }
 0x60b   :  { %8283 = vsyncadd [#allocation4], 4294967280 }
 0x60c   :  { %6330 = sfence }
 0x60d   :  { %6331 = vsyncpa [#allocation4], 1 }

</bundles_post_ra>
